<compile_context>
chip_gen: v7x
topology: tpu7x:2x2x1
jax: 0.10.0
libtpu: 0.0.40
codegen_flags: <defaults>
</compile_context>

<pallas_src>
import functools

import jax
import jax.numpy as jnp
from jax import lax
from jax.experimental import pallas as pl
from jax.experimental.pallas import tpu as pltpu


def _round_up(x, m):
    return ((x + m - 1) // m) * m


# ----------------------------------------------------------------------------
# Pallas kernel: full generator MLP forward pass.
# ----------------------------------------------------------------------------
def _generator_kernel(z_ref,
                      w1_ref, b1_ref,
                      w2_ref, b2_ref, g2_ref, be2_ref,
                      w3_ref, b3_ref, g3_ref, be3_ref,
                      w4_ref, b4_ref, g4_ref, be4_ref,
                      w5_ref, b5_ref,
                      out_ref):
    def linear(x, w_ref, b_ref):
        # bf16 x bf16 operands on the MXU, f32 accumulation; bias add in f32.
        return jnp.dot(x.astype(jnp.bfloat16), w_ref[...],
                       preferred_element_type=jnp.float32) + b_ref[...]

    def leaky_relu(x):
        return jnp.where(x >= 0, x, 0.2 * x)

    def batch_norm(x, g_ref, be_ref):
        # PyTorch BatchNorm1d in training mode: biased batch statistics, eps=1e-5.
        mean = jnp.mean(x, axis=0, keepdims=True)
        var = jnp.mean((x - mean) * (x - mean), axis=0, keepdims=True)
        x_hat = (x - mean) * lax.rsqrt(var + 1e-5)
        return x_hat * g_ref[...] + be_ref[...]

    h = leaky_relu(linear(z_ref[...], w1_ref, b1_ref))
    h = leaky_relu(batch_norm(linear(h, w2_ref, b2_ref), g2_ref, be2_ref))
    h = leaky_relu(batch_norm(linear(h, w3_ref, b3_ref), g3_ref, be3_ref))
    h = leaky_relu(batch_norm(linear(h, w4_ref, b4_ref), g4_ref, be4_ref))
    out_ref[...] = jnp.tanh(linear(h, w5_ref, b5_ref))


# ----------------------------------------------------------------------------
# Parameter construction (deterministic, synthetic).
# Weights are padded to lane/sublane-friendly shapes and stored in bf16.
# ----------------------------------------------------------------------------
def init_generator_params(key, classes, channels, img_size, latent_dim):
    img_flat = channels * img_size * img_size
    k_in = latent_dim + classes
    k_in_pad = _round_up(k_in, 128)
    img_flat_pad = _round_up(img_flat, 128)
    dims = [k_in, 128, 256, 512, 1024, img_flat]
    keys = jax.random.split(key, 2 * len(dims) + 1)

    def lin(kw, kb, fan_in, fan_out):
        bound = float(1.0 / (fan_in ** 0.5))
        w = jax.random.uniform(kw, (fan_in, fan_out), jnp.float32, -bound, bound)
        b = jax.random.uniform(kb, (1, fan_out), jnp.float32, -bound, bound)
        return w, b

    params = {}
    params["emb"] = jax.random.normal(keys[0], (classes, classes), jnp.float32)
    for i in range(5):
        w, b = lin(keys[1 + 2 * i], keys[2 + 2 * i], dims[i], dims[i + 1])
        params[f"w{i + 1}"] = w
        params[f"b{i + 1}"] = b

    # Zero-pad the K dim of the first layer (42 -> 128): padded z columns are zero,
    # so the extra rows contribute nothing.
    params["w1"] = jnp.pad(params["w1"], ((0, k_in_pad - k_in), (0, 0)))
    # Zero-pad the output feature dim to a multiple of 128; sliced off in wrapper.
    params["w5"] = jnp.pad(params["w5"], ((0, 0), (0, img_flat_pad - img_flat)))
    params["b5"] = jnp.pad(params["b5"], ((0, 0), (0, img_flat_pad - img_flat)))

    # Store matmul weights in bf16 (halves weight DMA; bf16-native MXU on v6e/v7x).
    for i in range(5):
        params[f"w{i + 1}"] = params[f"w{i + 1}"].astype(jnp.bfloat16)

    # BatchNorm affine params (PyTorch default init: gamma=1, beta=0) — kept f32.
    for i, f in zip((2, 3, 4), (256, 512, 1024)):
        params[f"g{i}"] = jnp.ones((1, f), jnp.float32)
        params[f"be{i}"] = jnp.zeros((1, f), jnp.float32)
    return params


# ----------------------------------------------------------------------------
# Wrapper: embedding lookup + concat (glue), Pallas kernel, reshape to NCHW.
# ----------------------------------------------------------------------------
@functools.partial(jax.jit, static_argnames=("channels", "img_size"))
def generator_forward(params, noise, labels, *, channels, img_size):
    # Embedding lookup (gather) + concat are cheap glue in plain JAX.
    emb = jnp.take(params["emb"], labels, axis=0)          # (B, classes)
    z = jnp.concatenate([emb, noise], axis=-1)             # (B, classes + latent)

    batch, k_in = z.shape
    k_in_pad = params["w1"].shape[0]
    img_flat = channels * img_size * img_size
    img_flat_pad = params["w5"].shape[1]

    # Lane-dense zero padding of the concatenated input.
    if k_in_pad > k_in:
        z = jnp.pad(z, ((0, 0), (0, k_in_pad - k_in)))

    kernel_inputs = [
        z,
        params["w1"], params["b1"],
        params["w2"], params["b2"], params["g2"], params["be2"],
        params["w3"], params["b3"], params["g3"], params["be3"],
        params["w4"], params["b4"], params["g4"], params["be4"],
        params["w5"], params["b5"],
    ]

    # Advisory cost estimate so XLA can schedule surrounding ops around the call.
    layer_dims = [(k_in_pad, 128), (128, 256), (256, 512), (512, 1024),
                  (1024, img_flat_pad)]
    flops = 2 * batch * sum(fi * fo for fi, fo in layer_dims)
    weight_bytes = 2 * sum(fi * fo for fi, fo in layer_dims)          # bf16
    small_bytes = 4 * (128 + 3 * (256 + 512 + 1024) + img_flat_pad)   # b / gamma / beta
    io_bytes = 4 * batch * (k_in_pad + img_flat_pad)
    cost = pl.CostEstimate(
        flops=flops,
        transcendentals=batch * img_flat_pad + (256 + 512 + 1024),
        bytes_accessed=weight_bytes + small_bytes + io_bytes,
    )

    vmem_spec = pl.BlockSpec(memory_space=pltpu.MemorySpace.VMEM)
    out_flat = pl.pallas_call(
        _generator_kernel,
        out_shape=jax.ShapeDtypeStruct((batch, img_flat_pad), jnp.float32),
        in_specs=[vmem_spec] * len(kernel_inputs),
        out_specs=vmem_spec,
        # 32 MiB: actual footprint is ~2 MiB; 96 MiB would exceed v7x's 64 MiB VMEM.
        compiler_params=pltpu.CompilerParams(vmem_limit_bytes=32 << 20),
        cost_estimate=cost,
    )(*kernel_inputs)

    # Slice off output padding, then x.view(B, C, H, W) — NCHW like the PyTorch module.
    return out_flat[:, :img_flat].reshape(batch, channels, img_size, img_size)


# ----------------------------------------------------------------------------
# Pure-JAX reference (same bf16-weight math) for a lightweight sanity check.
# ----------------------------------------------------------------------------
def generator_reference(params, noise, labels, *, channels, img_size):
    emb = jnp.take(params["emb"], labels, axis=0)
    z = jnp.concatenate([emb, noise], axis=-1)
    k_in = z.shape[1]
    k_in_pad = params["w1"].shape[0]
    img_flat = channels * img_size * img_size
    if k_in_pad > k_in:
        z = jnp.pad(z, ((0, 0), (0, k_in_pad - k_in)))

    def mm(x, w, b):
        return jnp.dot(x.astype(jnp.bfloat16), w,
                       preferred_element_type=jnp.float32) + b

    def leaky(x):
        return jnp.where(x >= 0, x, 0.2 * x)

    def bn(x, g, be):
        m = jnp.mean(x, axis=0, keepdims=True)
        v = jnp.mean((x - m) ** 2, axis=0, keepdims=True)
        return (x - m) / jnp.sqrt(v + 1e-5) * g + be

    h = leaky(mm(z, params["w1"], params["b1"]))
    h = leaky(bn(mm(h, params["w2"], params["b2"]), params["g2"], params["be2"]))
    h = leaky(bn(mm(h, params["w3"], params["b3"]), params["g3"], params["be3"]))
    h = leaky(bn(mm(h, params["w4"], params["b4"]), params["g4"], params["be4"]))
    x = jnp.tanh(mm(h, params["w5"], params["b5"]))
    return x[:, :img_flat].reshape(x.shape[0], channels, img_size, img_size)


if __name__ == "__main__":
    # Small, MNIST-like configuration.
    classes, channels, img_size, latent_dim = 10, 1, 16, 32
    batch = 8

    root = jax.random.PRNGKey(0)
    k_params, k_noise, k_labels = jax.random.split(root, 3)

    params = init_generator_params(k_params, classes, channels, img_size, latent_dim)
    noise = jax.random.normal(k_noise, (batch, latent_dim), jnp.float32)
    labels = jax.random.randint(k_labels, (batch,), 0, classes, jnp.int32)

    out = generator_forward(params, noise, labels,
                            channels=channels, img_size=img_size)
    out = jax.block_until_ready(out)

    ref = generator_reference(params, noise, labels,
                              channels=channels, img_size=img_size)
    assert out.shape == (batch, channels, img_size, img_size)
    # Same bf16-weight math in both paths; tolerance covers MXU accumulation-order
    # differences amplified through train-mode BN at B=8.
    assert jnp.allclose(out, ref, atol=1e-2, rtol=1e-2), "mismatch vs JAX reference"

    print("KERNEL_OK")
</pallas_src>

<mosaic_0001>
module attributes {stable_mosaic.version = 11 : i64} {
  func.func @_generator_kernel(%arg0: memref<8x128xf32, #tpu.memory_space<vmem>>, %arg1: memref<128x128xbf16, #tpu.memory_space<vmem>>, %arg2: memref<1x128xf32, #tpu.memory_space<vmem>>, %arg3: memref<128x256xbf16, #tpu.memory_space<vmem>>, %arg4: memref<1x256xf32, #tpu.memory_space<vmem>>, %arg5: memref<1x256xf32, #tpu.memory_space<vmem>>, %arg6: memref<1x256xf32, #tpu.memory_space<vmem>>, %arg7: memref<256x512xbf16, #tpu.memory_space<vmem>>, %arg8: memref<1x512xf32, #tpu.memory_space<vmem>>, %arg9: memref<1x512xf32, #tpu.memory_space<vmem>>, %arg10: memref<1x512xf32, #tpu.memory_space<vmem>>, %arg11: memref<512x1024xbf16, #tpu.memory_space<vmem>>, %arg12: memref<1x1024xf32, #tpu.memory_space<vmem>>, %arg13: memref<1x1024xf32, #tpu.memory_space<vmem>>, %arg14: memref<1x1024xf32, #tpu.memory_space<vmem>>, %arg15: memref<1024x256xbf16, #tpu.memory_space<vmem>>, %arg16: memref<1x256xf32, #tpu.memory_space<vmem>>, %arg17: memref<8x256xf32, #tpu.memory_space<vmem>>) attributes {dimension_semantics = [], scalar_prefetch = 0 : i64, scratch_operands = 0 : i64, tpu.core_type = #tpu.core_type<tc>} {
    %c0 = arith.constant 0 : index
    %c0_0 = arith.constant 0 : index
    %0 = vector.load %arg0[%c0, %c0_0] : memref<8x128xf32, #tpu.memory_space<vmem>>, vector<8x128xf32>
    %1 = arith.truncf %0 : vector<8x128xf32> to vector<8x128xbf16>
    %c0_1 = arith.constant 0 : index
    %c0_2 = arith.constant 0 : index
    %2 = vector.load %arg1[%c0_1, %c0_2] : memref<128x128xbf16, #tpu.memory_space<vmem>>, vector<128x128xbf16>
    %cst = arith.constant dense<0.000000e+00> : vector<8x128xf32>
    %3 = tpu.matmul %1, %2, %cst {dimension_numbers = #tpu.dot_dimension_numbers<[1], [0], [0], [1], [0, 0, 1, 1], [], []>} : vector<8x128xbf16>, vector<128x128xbf16>, vector<8x128xf32> -> vector<8x128xf32>
    %c0_3 = arith.constant 0 : index
    %c0_4 = arith.constant 0 : index
    %4 = vector.load %arg2[%c0_3, %c0_4] : memref<1x128xf32, #tpu.memory_space<vmem>>, vector<1x128xf32>
    %5 = vector.broadcast %4 : vector<1x128xf32> to vector<8x128xf32>
    %6 = arith.addf %3, %5 : vector<8x128xf32>
    %cst_5 = arith.constant 0.000000e+00 : f32
    %7 = vector.broadcast %cst_5 : f32 to vector<8x128xf32>
    %8 = arith.cmpf oge, %6, %7 : vector<8x128xf32>
    %cst_6 = arith.constant 2.000000e-01 : f32
    %9 = vector.broadcast %cst_6 : f32 to vector<8x128xf32>
    %10 = arith.mulf %9, %6 : vector<8x128xf32>
    %11 = arith.select %8, %6, %10 : vector<8x128xi1>, vector<8x128xf32>
    %12 = arith.truncf %11 : vector<8x128xf32> to vector<8x128xbf16>
    %c0_7 = arith.constant 0 : index
    %c0_8 = arith.constant 0 : index
    %13 = vector.load %arg3[%c0_7, %c0_8] : memref<128x256xbf16, #tpu.memory_space<vmem>>, vector<128x256xbf16>
    %cst_9 = arith.constant dense<0.000000e+00> : vector<8x256xf32>
    %14 = tpu.matmul %12, %13, %cst_9 {dimension_numbers = #tpu.dot_dimension_numbers<[1], [0], [0], [1], [0, 0, 1, 1], [], []>} : vector<8x128xbf16>, vector<128x256xbf16>, vector<8x256xf32> -> vector<8x256xf32>
    %c0_10 = arith.constant 0 : index
    %c0_11 = arith.constant 0 : index
    %15 = vector.load %arg4[%c0_10, %c0_11] : memref<1x256xf32, #tpu.memory_space<vmem>>, vector<1x256xf32>
    %16 = vector.broadcast %15 : vector<1x256xf32> to vector<8x256xf32>
    %17 = arith.addf %14, %16 : vector<8x256xf32>
    %cst_12 = arith.constant dense<0.000000e+00> : vector<256xf32>
    %18 = vector.multi_reduction <add>, %17, %cst_12 [0] : vector<8x256xf32> to vector<256xf32>
    %19 = vector.shape_cast %18 : vector<256xf32> to vector<1x256xf32>
    %cst_13 = arith.constant 8.000000e+00 : f32
    %20 = vector.broadcast %cst_13 : f32 to vector<1x256xf32>
    %21 = arith.divf %19, %20 : vector<1x256xf32>
    %22 = vector.broadcast %21 : vector<1x256xf32> to vector<8x256xf32>
    %23 = arith.subf %17, %22 : vector<8x256xf32>
    %24 = vector.broadcast %21 : vector<1x256xf32> to vector<8x256xf32>
    %25 = arith.subf %17, %24 : vector<8x256xf32>
    %26 = arith.mulf %23, %25 : vector<8x256xf32>
    %cst_14 = arith.constant dense<0.000000e+00> : vector<256xf32>
    %27 = vector.multi_reduction <add>, %26, %cst_14 [0] : vector<8x256xf32> to vector<256xf32>
    %28 = vector.shape_cast %27 : vector<256xf32> to vector<1x256xf32>
    %cst_15 = arith.constant 8.000000e+00 : f32
    %29 = vector.broadcast %cst_15 : f32 to vector<1x256xf32>
    %30 = arith.divf %28, %29 : vector<1x256xf32>
    %31 = vector.broadcast %21 : vector<1x256xf32> to vector<8x256xf32>
    %32 = arith.subf %17, %31 : vector<8x256xf32>
    %cst_16 = arith.constant 9.99999974E-6 : f32
    %33 = vector.broadcast %cst_16 : f32 to vector<1x256xf32>
    %34 = arith.addf %30, %33 : vector<1x256xf32>
    %35 = math.rsqrt %34 : vector<1x256xf32>
    %36 = vector.broadcast %35 : vector<1x256xf32> to vector<8x256xf32>
    %37 = arith.mulf %32, %36 : vector<8x256xf32>
    %c0_17 = arith.constant 0 : index
    %c0_18 = arith.constant 0 : index
    %38 = vector.load %arg5[%c0_17, %c0_18] : memref<1x256xf32, #tpu.memory_space<vmem>>, vector<1x256xf32>
    %39 = vector.broadcast %38 : vector<1x256xf32> to vector<8x256xf32>
    %40 = arith.mulf %37, %39 : vector<8x256xf32>
    %c0_19 = arith.constant 0 : index
    %c0_20 = arith.constant 0 : index
    %41 = vector.load %arg6[%c0_19, %c0_20] : memref<1x256xf32, #tpu.memory_space<vmem>>, vector<1x256xf32>
    %42 = vector.broadcast %41 : vector<1x256xf32> to vector<8x256xf32>
    %43 = arith.addf %40, %42 : vector<8x256xf32>
    %cst_21 = arith.constant 0.000000e+00 : f32
    %44 = vector.broadcast %cst_21 : f32 to vector<8x256xf32>
    %45 = arith.cmpf oge, %43, %44 : vector<8x256xf32>
    %cst_22 = arith.constant 2.000000e-01 : f32
    %46 = vector.broadcast %cst_22 : f32 to vector<8x256xf32>
    %47 = arith.mulf %46, %43 : vector<8x256xf32>
    %48 = arith.select %45, %43, %47 : vector<8x256xi1>, vector<8x256xf32>
    %49 = arith.truncf %48 : vector<8x256xf32> to vector<8x256xbf16>
    %c0_23 = arith.constant 0 : index
    %c0_24 = arith.constant 0 : index
    %50 = vector.load %arg7[%c0_23, %c0_24] : memref<256x512xbf16, #tpu.memory_space<vmem>>, vector<256x512xbf16>
    %cst_25 = arith.constant dense<0.000000e+00> : vector<8x512xf32>
    %51 = tpu.matmul %49, %50, %cst_25 {dimension_numbers = #tpu.dot_dimension_numbers<[1], [0], [0], [1], [0, 0, 1, 1], [], []>} : vector<8x256xbf16>, vector<256x512xbf16>, vector<8x512xf32> -> vector<8x512xf32>
    %c0_26 = arith.constant 0 : index
    %c0_27 = arith.constant 0 : index
    %52 = vector.load %arg8[%c0_26, %c0_27] : memref<1x512xf32, #tpu.memory_space<vmem>>, vector<1x512xf32>
    %53 = vector.broadcast %52 : vector<1x512xf32> to vector<8x512xf32>
    %54 = arith.addf %51, %53 : vector<8x512xf32>
    %cst_28 = arith.constant dense<0.000000e+00> : vector<512xf32>
    %55 = vector.multi_reduction <add>, %54, %cst_28 [0] : vector<8x512xf32> to vector<512xf32>
    %56 = vector.shape_cast %55 : vector<512xf32> to vector<1x512xf32>
    %cst_29 = arith.constant 8.000000e+00 : f32
    %57 = vector.broadcast %cst_29 : f32 to vector<1x512xf32>
    %58 = arith.divf %56, %57 : vector<1x512xf32>
    %59 = vector.broadcast %58 : vector<1x512xf32> to vector<8x512xf32>
    %60 = arith.subf %54, %59 : vector<8x512xf32>
    %61 = vector.broadcast %58 : vector<1x512xf32> to vector<8x512xf32>
    %62 = arith.subf %54, %61 : vector<8x512xf32>
    %63 = arith.mulf %60, %62 : vector<8x512xf32>
    %cst_30 = arith.constant dense<0.000000e+00> : vector<512xf32>
    %64 = vector.multi_reduction <add>, %63, %cst_30 [0] : vector<8x512xf32> to vector<512xf32>
    %65 = vector.shape_cast %64 : vector<512xf32> to vector<1x512xf32>
    %cst_31 = arith.constant 8.000000e+00 : f32
    %66 = vector.broadcast %cst_31 : f32 to vector<1x512xf32>
    %67 = arith.divf %65, %66 : vector<1x512xf32>
    %68 = vector.broadcast %58 : vector<1x512xf32> to vector<8x512xf32>
    %69 = arith.subf %54, %68 : vector<8x512xf32>
    %cst_32 = arith.constant 9.99999974E-6 : f32
    %70 = vector.broadcast %cst_32 : f32 to vector<1x512xf32>
    %71 = arith.addf %67, %70 : vector<1x512xf32>
    %72 = math.rsqrt %71 : vector<1x512xf32>
    %73 = vector.broadcast %72 : vector<1x512xf32> to vector<8x512xf32>
    %74 = arith.mulf %69, %73 : vector<8x512xf32>
    %c0_33 = arith.constant 0 : index
    %c0_34 = arith.constant 0 : index
    %75 = vector.load %arg9[%c0_33, %c0_34] : memref<1x512xf32, #tpu.memory_space<vmem>>, vector<1x512xf32>
    %76 = vector.broadcast %75 : vector<1x512xf32> to vector<8x512xf32>
    %77 = arith.mulf %74, %76 : vector<8x512xf32>
    %c0_35 = arith.constant 0 : index
    %c0_36 = arith.constant 0 : index
    %78 = vector.load %arg10[%c0_35, %c0_36] : memref<1x512xf32, #tpu.memory_space<vmem>>, vector<1x512xf32>
    %79 = vector.broadcast %78 : vector<1x512xf32> to vector<8x512xf32>
    %80 = arith.addf %77, %79 : vector<8x512xf32>
    %cst_37 = arith.constant 0.000000e+00 : f32
    %81 = vector.broadcast %cst_37 : f32 to vector<8x512xf32>
    %82 = arith.cmpf oge, %80, %81 : vector<8x512xf32>
    %cst_38 = arith.constant 2.000000e-01 : f32
    %83 = vector.broadcast %cst_38 : f32 to vector<8x512xf32>
    %84 = arith.mulf %83, %80 : vector<8x512xf32>
    %85 = arith.select %82, %80, %84 : vector<8x512xi1>, vector<8x512xf32>
    %86 = arith.truncf %85 : vector<8x512xf32> to vector<8x512xbf16>
    %c0_39 = arith.constant 0 : index
    %c0_40 = arith.constant 0 : index
    %87 = vector.load %arg11[%c0_39, %c0_40] : memref<512x1024xbf16, #tpu.memory_space<vmem>>, vector<512x1024xbf16>
    %cst_41 = arith.constant dense<0.000000e+00> : vector<8x1024xf32>
    %88 = tpu.matmul %86, %87, %cst_41 {dimension_numbers = #tpu.dot_dimension_numbers<[1], [0], [0], [1], [0, 0, 1, 1], [], []>} : vector<8x512xbf16>, vector<512x1024xbf16>, vector<8x1024xf32> -> vector<8x1024xf32>
    %c0_42 = arith.constant 0 : index
    %c0_43 = arith.constant 0 : index
    %89 = vector.load %arg12[%c0_42, %c0_43] : memref<1x1024xf32, #tpu.memory_space<vmem>>, vector<1x1024xf32>
    %90 = vector.broadcast %89 : vector<1x1024xf32> to vector<8x1024xf32>
    %91 = arith.addf %88, %90 : vector<8x1024xf32>
    %cst_44 = arith.constant dense<0.000000e+00> : vector<1024xf32>
    %92 = vector.multi_reduction <add>, %91, %cst_44 [0] : vector<8x1024xf32> to vector<1024xf32>
    %93 = vector.shape_cast %92 : vector<1024xf32> to vector<1x1024xf32>
    %cst_45 = arith.constant 8.000000e+00 : f32
    %94 = vector.broadcast %cst_45 : f32 to vector<1x1024xf32>
    %95 = arith.divf %93, %94 : vector<1x1024xf32>
    %96 = vector.broadcast %95 : vector<1x1024xf32> to vector<8x1024xf32>
    %97 = arith.subf %91, %96 : vector<8x1024xf32>
    %98 = vector.broadcast %95 : vector<1x1024xf32> to vector<8x1024xf32>
    %99 = arith.subf %91, %98 : vector<8x1024xf32>
    %100 = arith.mulf %97, %99 : vector<8x1024xf32>
    %cst_46 = arith.constant dense<0.000000e+00> : vector<1024xf32>
    %101 = vector.multi_reduction <add>, %100, %cst_46 [0] : vector<8x1024xf32> to vector<1024xf32>
    %102 = vector.shape_cast %101 : vector<1024xf32> to vector<1x1024xf32>
    %cst_47 = arith.constant 8.000000e+00 : f32
    %103 = vector.broadcast %cst_47 : f32 to vector<1x1024xf32>
    %104 = arith.divf %102, %103 : vector<1x1024xf32>
    %105 = vector.broadcast %95 : vector<1x1024xf32> to vector<8x1024xf32>
    %106 = arith.subf %91, %105 : vector<8x1024xf32>
    %cst_48 = arith.constant 9.99999974E-6 : f32
    %107 = vector.broadcast %cst_48 : f32 to vector<1x1024xf32>
    %108 = arith.addf %104, %107 : vector<1x1024xf32>
    %109 = math.rsqrt %108 : vector<1x1024xf32>
    %110 = vector.broadcast %109 : vector<1x1024xf32> to vector<8x1024xf32>
    %111 = arith.mulf %106, %110 : vector<8x1024xf32>
    %c0_49 = arith.constant 0 : index
    %c0_50 = arith.constant 0 : index
    %112 = vector.load %arg13[%c0_49, %c0_50] : memref<1x1024xf32, #tpu.memory_space<vmem>>, vector<1x1024xf32>
    %113 = vector.broadcast %112 : vector<1x1024xf32> to vector<8x1024xf32>
    %114 = arith.mulf %111, %113 : vector<8x1024xf32>
    %c0_51 = arith.constant 0 : index
    %c0_52 = arith.constant 0 : index
    %115 = vector.load %arg14[%c0_51, %c0_52] : memref<1x1024xf32, #tpu.memory_space<vmem>>, vector<1x1024xf32>
    %116 = vector.broadcast %115 : vector<1x1024xf32> to vector<8x1024xf32>
    %117 = arith.addf %114, %116 : vector<8x1024xf32>
    %cst_53 = arith.constant 0.000000e+00 : f32
    %118 = vector.broadcast %cst_53 : f32 to vector<8x1024xf32>
    %119 = arith.cmpf oge, %117, %118 : vector<8x1024xf32>
    %cst_54 = arith.constant 2.000000e-01 : f32
    %120 = vector.broadcast %cst_54 : f32 to vector<8x1024xf32>
    %121 = arith.mulf %120, %117 : vector<8x1024xf32>
    %122 = arith.select %119, %117, %121 : vector<8x1024xi1>, vector<8x1024xf32>
    %123 = arith.truncf %122 : vector<8x1024xf32> to vector<8x1024xbf16>
    %c0_55 = arith.constant 0 : index
    %c0_56 = arith.constant 0 : index
    %124 = vector.load %arg15[%c0_55, %c0_56] : memref<1024x256xbf16, #tpu.memory_space<vmem>>, vector<1024x256xbf16>
    %cst_57 = arith.constant dense<0.000000e+00> : vector<8x256xf32>
    %125 = tpu.matmul %123, %124, %cst_57 {dimension_numbers = #tpu.dot_dimension_numbers<[1], [0], [0], [1], [0, 0, 1, 1], [], []>} : vector<8x1024xbf16>, vector<1024x256xbf16>, vector<8x256xf32> -> vector<8x256xf32>
    %c0_58 = arith.constant 0 : index
    %c0_59 = arith.constant 0 : index
    %126 = vector.load %arg16[%c0_58, %c0_59] : memref<1x256xf32, #tpu.memory_space<vmem>>, vector<1x256xf32>
    %127 = vector.broadcast %126 : vector<1x256xf32> to vector<8x256xf32>
    %128 = arith.addf %125, %127 : vector<8x256xf32>
    %129 = math.tanh %128 : vector<8x256xf32>
    %c0_60 = arith.constant 0 : index
    %c0_61 = arith.constant 0 : index
    %130 = vector.load %arg17[%c0_60, %c0_61] : memref<8x256xf32, #tpu.memory_space<vmem>>, vector<8x256xf32>
    tpu.vector_store %arg17[%c0_60, %c0_61], %129 {strides = array<i32>} : memref<8x256xf32, #tpu.memory_space<vmem>>, vector<8x256xf32>,
    return
  }
}

</mosaic_0001>

<bundles_post_ra>
// kernel: generator_forward.1
= control target key start
LH: loop header
LB: loop body
LE: loop exit
PB: predicated region body
PF: predicated region fallthrough
CT: control target
= control target key end

     0   :  { %s5700_s0 = inlined_call_operand.vmem [shape: f32[8,128], index: 0, kind: input, shape index: {}]   ;;  %s5701_s1 = inlined_call_operand.hbm [shape: bf16[128,128], index: 1, kind: input, shape index: {}]   ;;  %s5702_s2 = inlined_call_operand.vmem [shape: f32[1,128], index: 2, kind: input, shape index: {}]   ;;  %s5703_s3 = inlined_call_operand.vmem [shape: bf16[128,256], index: 3, kind: input, shape index: {}]   ;;  %s5704_s4 = inlined_call_operand.vmem [shape: f32[1,256], index: 4, kind: input, shape index: {}]   ;;  %s5705_s5 = inlined_call_operand.vmem [shape: f32[1,256], index: 5, kind: input, shape index: {}]   ;;  %s5706_s6 = inlined_call_operand.vmem [shape: f32[1,256], index: 6, kind: input, shape index: {}]   ;;  %s5707_s7 = inlined_call_operand.hbm [shape: bf16[256,512], index: 7, kind: input, shape index: {}]   ;;  %s5708_s8 = inlined_call_operand.vmem [shape: f32[1,512], index: 8, kind: input, shape index: {}]   ;;  %s5709_s9 = inlined_call_operand.vmem [shape: f32[1,512], index: 9, kind: input, shape index: {}]   ;;  %s5710_s10 = inlined_call_operand.vmem [shape: f32[1,512], index: 10, kind: input, shape index: {}]   ;;  %s5711_s11 = inlined_call_operand.hbm [shape: bf16[512,1024], index: 11, kind: input, shape index: {}]   ;;  %s5712_s12 = inlined_call_operand.vmem [shape: f32[1,1024], index: 12, kind: input, shape index: {}]   ;;  %s5713_s13 = inlined_call_operand.vmem [shape: f32[1,1024], index: 13, kind: input, shape index: {}]   ;;  %s5714_s14 = inlined_call_operand.vmem [shape: f32[1,1024], index: 14, kind: input, shape index: {}]   ;;  %s5715_s15 = inlined_call_operand.hbm [shape: bf16[1024,256], index: 15, kind: input, shape index: {}]   ;;  %s5716_s16 = inlined_call_operand.hbm [shape: f32[1,256], index: 16, kind: input, shape index: {}]   ;;  %s5717_s17 = inlined_call_operand.vmem [shape: f32[8,256], index: 17, kind: output, shape index: {}]  }
   0x1   :  { %5719 = sst [smem:[#allocation13_spill]] %s5700_s0 }
   0x2   :  { %5720 = sst [smem:[#allocation14_spill]] %s5701_s1 }
   0x3   :  { %22 = vsyncpa [#allocation3], 0 }
   0x4   :  { %23 = vsyncpa [#allocation5], 0 }
   0x5   :  { %24 = vsyncpa [#allocation8], 0  ;;  %s5263_s24 = smov [#allocation4]   ;;  %s5147_s28 = scalar_lea.hbm %s5707_s7, 8192 }
   0x6   :  { %s54_s25 = sshll.u32 %s5263_s24, 4  ;;  %p5148_p0 = scmp.ne.s32.totalorder %s5707_s7, %s5147_s28  ;;  %s55_s25 = int_to_ptr.vmem [resolvable:$true] %s54_s25 }
   0x7   :  { %p5151_p1 = scmp.lt.u32.totalorder %s5147_s28, %s5707_s7 }
   0x9   :  { %p5153_p2 = pnand %p5151_p1, %p5148_p0 }
   0xb   :  { %5156 = shalt.err (!%p5153_p2)
}
   0xc   :  { %s5157_s19 = scalar_lea.vmem %s55_s25, 8192  ;;  %p5162_p4 = scmp.lt.s32.totalorder %s55_s25, %s55_s25 }
   0xd   :  { %p5158_p3 = scmp.ne.s32.totalorder %s55_s25, %s5157_s19  ;;  %p5163_p5 = scmp.lt.s32.totalorder %s5157_s19, %s5157_s19 }
   0xf   :  { %p5164_p6 = por %p5163_p5, %p5162_p4 }
  0x11   :  { %p5165_p7 = pnand %p5164_p6, %p5158_p3 }
  0x13   :  { %5168 = shalt.err (!%p5165_p7)
}
  0x14   :  { %s5264_s1 = smov 256   ;;  %s5265_s20 = smov 16  }
  0x15   :  { %60 = dma.hbm_to_vmem [thread:$0]  %s5707_s7, 8192, %s55_s25, [#allocation5], %s5264_s1, %s5264_s1, %s5265_s20  }
  0x16   :  { %s5266_s23 = smov [#allocation7]   ;;  %s5169_s28 = scalar_lea.hbm %s5715_s15, 16384 }
  0x17   :  { %s90_s24 = sshll.u32 %s5266_s23, 4  ;;  %p5170_p8 = scmp.ne.s32.totalorder %s5715_s15, %s5169_s28  ;;  %s91_s24 = int_to_ptr.vmem [resolvable:$true] %s90_s24 }
  0x18   :  { %p5173_p9 = scmp.lt.u32.totalorder %s5169_s28, %s5715_s15 }
  0x1a   :  { %p5175_p10 = pnand %p5173_p9, %p5170_p8 }
  0x1c   :  { %5178 = shalt.err (!%p5175_p10)
}
  0x1d   :  { %s5179_s19 = scalar_lea.vmem %s91_s24, 16384  ;;  %p5184_p12 = scmp.lt.s32.totalorder %s91_s24, %s91_s24 }
  0x1e   :  { %p5180_p11 = scmp.ne.s32.totalorder %s91_s24, %s5179_s19  ;;  %p5185_p13 = scmp.lt.s32.totalorder %s5179_s19, %s5179_s19 }
  0x20   :  { %p5186_p0 = por %p5185_p13, %p5184_p12 }
  0x22   :  { %p5187_p1 = pnand %p5186_p0, %p5180_p11 }
  0x24   :  { %5190 = shalt.err (!%p5187_p1)
}
  0x25   :  { %s5267_s7 = smov 128   ;;  %s5268_s25 = smov 8  }
  0x26   :  { %96 = dma.hbm_to_vmem [thread:$0]  %s5715_s15, 16384, %s91_s24, [#allocation8], %s5267_s7, %s5267_s7, %s5268_s25  }
  0x27   :  { %s5269_s21 = smov [#allocation2]   ;;  %s5721_s27 = sld [smem:[#allocation14_spill]] }
  0x28   :  { %s32_s22 = sshll.u32 %s5269_s21, 4  ;;  %s33_s22 = int_to_ptr.vmem [resolvable:$true] %s32_s22 }
  0x2d   :  { %s5191_s28 = scalar_lea.hbm %s5721_s27, 1024 }
  0x2e   :  { %p5192_p2 = scmp.ne.s32.totalorder %s5721_s27, %s5191_s28  ;;  %p5195_p3 = scmp.lt.u32.totalorder %s5191_s28, %s5721_s27 }
  0x30   :  { %p5197_p4 = pnand %p5195_p3, %p5192_p2 }
  0x32   :  { %5200 = shalt.err (!%p5197_p4)
}
  0x33   :  { %s5201_s19 = scalar_lea.vmem %s33_s22, 1024  ;;  %p5206_p6 = scmp.lt.s32.totalorder %s33_s22, %s33_s22 }
  0x34   :  { %p5202_p5 = scmp.ne.s32.totalorder %s33_s22, %s5201_s19  ;;  %p5207_p7 = scmp.lt.s32.totalorder %s5201_s19, %s5201_s19 }
  0x36   :  { %p5208_p8 = por %p5207_p7, %p5206_p6 }
  0x38   :  { %p5209_p9 = pnand %p5208_p8, %p5202_p5 }
  0x3a   :  { %5212 = shalt.err (!%p5209_p9)
}
  0x3b   :  { %s5270_s15 = smov 64   ;;  %s5271_s24 = smov 4  }
  0x3c   :  { %38 = dma.hbm_to_vmem [thread:$0]  %s5721_s27, 1024, %s33_s22, [#allocation3], %s5270_s15, %s5270_s15, %s5271_s24  }
  0x3d   :  { %s5272_s1 = smov [#allocation6]   ;;  %s5213_s26 = scalar_lea.hbm %s5711_s11, 32768 }
  0x3e   :  { %s72_s20 = sshll.u32 %s5272_s1, 4  ;;  %p5214_p10 = scmp.ne.s32.totalorder %s5711_s11, %s5213_s26  ;;  %s73_s20 = int_to_ptr.vmem [resolvable:$true] %s72_s20 }
  0x3f   :  { %p5217_p11 = scmp.lt.u32.totalorder %s5213_s26, %s5711_s11 }
  0x41   :  { %p5219_p12 = pnand %p5217_p11, %p5214_p10 }
  0x43   :  { %5222 = shalt.err (!%p5219_p12)
}
  0x44   :  { %s5223_s18 = scalar_lea.vmem %s73_s20, 32768  ;;  %p5228_p0 = scmp.lt.s32.totalorder %s73_s20, %s73_s20 }
  0x45   :  { %p5224_p13 = scmp.ne.s32.totalorder %s73_s20, %s5223_s18  ;;  %p5229_p1 = scmp.lt.s32.totalorder %s5223_s18, %s5223_s18 }
  0x47   :  { %p5230_p2 = por %p5229_p1, %p5228_p0 }
  0x49   :  { %p5231_p3 = pnand %p5230_p2, %p5224_p13 }
  0x4b   :  { %5234 = shalt.err (!%p5231_p3)
}
  0x4c   :  { %s5273_s22 = smov 512   ;;  %s5274_s27 = smov 32  }
  0x4d   :  { %78 = dma.hbm_to_vmem [thread:$0]  %s5711_s11, 32768, %s73_s20, [#allocation5], %s5273_s22, %s5273_s22, %s5274_s27  }
  0x4e   :  { %s5275_s24 = smov [#allocation9]   ;;  %s5235_s21 = scalar_lea.hbm %s5716_s16, 32 }
  0x4f   :  { %s103_s7 = sshll.u32 %s5275_s24, 4  ;;  %p5236_p4 = scmp.ne.s32.totalorder %s5716_s16, %s5235_s21  ;;  %s104_s7 = int_to_ptr.vmem [resolvable:$true] %s103_s7 }
  0x50   :  { %p5239_p5 = scmp.lt.u32.totalorder %s5235_s21, %s5716_s16 }
  0x52   :  { %p5241_p6 = pnand %p5239_p5, %p5236_p4 }
  0x54   :  { %5244 = shalt.err (!%p5241_p6)
}
  0x55   :  { %s5245_s0 = scalar_lea.vmem %s104_s7, 32  ;;  %p5250_p8 = scmp.lt.s32.totalorder %s104_s7, %s104_s7 }
  0x56   :  { %p5246_p7 = scmp.ne.s32.totalorder %s104_s7, %s5245_s0  ;;  %p5251_p9 = scmp.lt.s32.totalorder %s5245_s0, %s5245_s0 }
  0x58   :  { %p5252_p10 = por %p5251_p9, %p5250_p8 }
  0x5a   :  { %p5253_p11 = pnand %p5252_p10, %p5246_p7 }
  0x5c   :  { %5256 = shalt.err (!%p5253_p11)
}
  0x5d   :  { %106 = dma.hbm_to_vmem [thread:$0]  %s5716_s16, 32, %s104_s7, [#allocation8]  }
  0x5e   :  { %5257 = dma.done.wait [#allocation3], 1024  }
  0x5f   :  { %5258 = vsyncadd [#allocation3], 4294966272 }
  0x60   :  { %5259 = dma.done.wait [#allocation5], 40960  }
  0x61   :  { %5260 = vsyncadd [#allocation5], 4294926336 }
  0x62   :  { %5261 = dma.done.wait [#allocation8], 16416  }
  0x63   :  { %5262 = vsyncadd [#allocation8], 4294950880  ;;  %v5276_v0 = vmov 0.0   ;;  %vm5277_vm0 = vmmov 0   ;;  %v4795_v1 = vld [vmem:[#allocation2] sm:$0xff]   ;;  %v4796_v2 = vld [vmem:[#allocation2 + $0x8] sm:$0xff]  }
  0x64   :  { %4723 = vmatprep.subr.bf16.mxu0 %v5276_v0  ;;  %4739 = vmatprep.mubr.msk.bf16.mxu0 %vm5277_vm0, %v5276_v0  ;;  %v4797_v3 = vld [vmem:[#allocation2 + $0x10] sm:$0xff]   ;;  %v4803_v4 = vld [vmem:[%s5703_s3 + $0x4] ss:$8 sps:$4 sm:$0xff]   ;;  %v4805_v5 = vld [vmem:[%s5703_s3] ss:$8 sps:$4 sm:$0xff]   ;;  %s5722_s19 = sld [smem:[#allocation13_spill]] }
  0x65   :  { %4724 = vmatpush3.bf16.msra.mxu0 %v4795_v1  ;;  %v4798_v6 = vld [vmem:[#allocation2 + $0x18] sm:$0xff]   ;;  %348 = vmatprep.subr.bf16.mxu1 %v4803_v4  ;;  %v4809_v9 = vld [vmem:[%s5703_s3 + $0x24] ss:$8 sps:$4 sm:$0xff]   ;;  %v4811_v12 = vld [vmem:[%s5703_s3 + $0x20] ss:$8 sps:$4 sm:$0xff]   ;;  %v5278_v27 = vmov 0  }
  0x66   :  { %4725 = vmatprep.subr.bf16.mxu0 %v5276_v0  ;;  %v4806_v7 = vld [vmem:[%s5703_s3 + $0x14] ss:$8 sps:$4 sm:$0xff]   ;;  %349 = vmatpush1.bf16.msra.mxu1 %v4805_v5  ;;  %v4808_v8 = vld [vmem:[%s5703_s3 + $0x10] ss:$8 sps:$4 sm:$0xff]   ;;  %v4799_v10 = vld [vmem:[#allocation2 + $0x20] sm:$0xff]  }
  0x67   :  { %350 = vmatprep.subr.bf16.mxu1 %v4806_v7  ;;  %v4800_v11 = vld [vmem:[#allocation2 + $0x28] sm:$0xff]   ;;  %v4812_v13 = vld [vmem:[%s5703_s3 + $0x34] ss:$8 sps:$4 sm:$0xff]   ;;  %v4814_v14 = vld [vmem:[%s5703_s3 + $0x30] ss:$8 sps:$4 sm:$0xff]   ;;  %380 = vmatprep.mubr.bf16.mxu1 %v5278_v27 }
  0x68   :  { %v4815_v15 = vld [vmem:[%s5703_s3 + $0x44] ss:$8 sps:$4 sm:$0xff]   ;;  %v4801_v16 = vld [vmem:[#allocation2 + $0x30] sm:$0xff]   ;;  %v4817_v17 = vld [vmem:[%s5703_s3 + $0x40] ss:$8 sps:$4 sm:$0xff]  }
  0x69   :  { %4726 = vmatpush3.bf16.msra.mxu0 %v4796_v2  ;;  %v4818_v18 = vld [vmem:[%s5703_s3 + $0x54] ss:$8 sps:$4 sm:$0xff]   ;;  %v4820_v21 = vld [vmem:[%s5703_s3 + $0x50] ss:$8 sps:$4 sm:$0xff]   ;;  %v4821_v23 = vld [vmem:[%s5703_s3 + $0x64] ss:$8 sps:$4 sm:$0xff]  }
  0x6a   :  { %4727 = vmatprep.subr.bf16.mxu0 %v5276_v0  ;;  %351 = vmatpush1.bf16.msra.mxu1 %v4808_v8  ;;  %v4802_v19 = vld [vmem:[#allocation2 + $0x38] sm:$0xff]   ;;  %v123_v20 = vld [vmem:[%s5722_s19] sm:$0xff] }
  0x6b   :  { %352 = vmatprep.subr.bf16.mxu1 %v4809_v9  ;;  %v124_v22 = vpack.c.bf16 %v123_v20, %v123_v20  ;;  %v4823_v24 = vld [vmem:[%s5703_s3 + $0x60] ss:$8 sps:$4 sm:$0xff]   ;;  %v4824_v25 = vld [vmem:[%s5703_s3 + $0x74] ss:$8 sps:$4 sm:$0xff]   ;;  %v4826_v26 = vld [vmem:[%s5703_s3 + $0x70] ss:$8 sps:$4 sm:$0xff]  }
  0x6c   :  { %v4829_v28 = vld [vmem:[#allocation4 + $0x4] ss:$16 sps:$4 sm:$0xff]   ;;  %v4241_v29 = vld [vmem:[%s5702_s2] ss:$0 sm:$0xff]  ;;  %v4877_v5 = vld [vmem:[#allocation4 + $0xc] ss:$16 sps:$4 sm:$0xff]  }
  0x6d   :  { %4728 = vmatpush3.bf16.msra.mxu0 %v4797_v3  ;;  %v4827_v37 = vld [vmem:[#allocation4] ss:$16 sps:$4 sm:$0xff]   ;;  %v4832_v39 = vld [vmem:[#allocation4 + $0x24] ss:$16 sps:$4 sm:$0xff]  }
  0x6e   :  { %4729 = vmatprep.subr.bf16.mxu0 %v5276_v0  ;;  %353 = vmatpush1.bf16.msra.mxu1 %v4811_v12  ;;  %v4830_v40 = vld [vmem:[#allocation4 + $0x20] ss:$16 sps:$4 sm:$0xff]   ;;  %v4835_v41 = vld [vmem:[#allocation4 + $0x44] ss:$16 sps:$4 sm:$0xff]  }
  0x6f   :  { %354 = vmatprep.subr.bf16.mxu1 %v4812_v13  ;;  %v4833_v42 = vld [vmem:[#allocation4 + $0x40] ss:$16 sps:$4 sm:$0xff]   ;;  %v4838_v43 = vld [vmem:[#allocation4 + $0x64] ss:$16 sps:$4 sm:$0xff]  }
  0x70   :  { %v4836_v44 = vld [vmem:[#allocation4 + $0x60] ss:$16 sps:$4 sm:$0xff]   ;;  %v4841_v45 = vld [vmem:[#allocation4 + $0x84] ss:$16 sps:$4 sm:$0xff]  }
  0x71   :  { %4730 = vmatpush3.bf16.msra.mxu0 %v4798_v6  ;;  %v4839_v46 = vld [vmem:[#allocation4 + $0x80] ss:$16 sps:$4 sm:$0xff]   ;;  %v4844_v47 = vld [vmem:[#allocation4 + $0xa4] ss:$16 sps:$4 sm:$0xff]   ;;  %v258_v6 = vlaneseq }
  0x72   :  { %4731 = vmatprep.subr.bf16.mxu0 %v5276_v0  ;;  %355 = vmatpush1.bf16.msra.mxu1 %v4814_v14  ;;  %v4842_v48 = vld [vmem:[#allocation4 + $0xa0] ss:$16 sps:$4 sm:$0xff]   ;;  %v4847_v49 = vld [vmem:[#allocation4 + $0xc4] ss:$16 sps:$4 sm:$0xff]  }
  0x73   :  { %356 = vmatprep.subr.bf16.mxu1 %v4815_v15  ;;  %v4845_v50 = vld [vmem:[#allocation4 + $0xc0] ss:$16 sps:$4 sm:$0xff]   ;;  %v4850_v51 = vld [vmem:[#allocation4 + $0xe4] ss:$16 sps:$4 sm:$0xff]   ;;  %v5483_v7 = vshrl.u32 %v258_v6, 7 }
  0x74   :  { %v4848_v52 = vld [vmem:[#allocation4 + $0xe0] ss:$16 sps:$4 sm:$0xff]   ;;  %v4853_v53 = vld [vmem:[#allocation4 + $0x104] ss:$16 sps:$4 sm:$0xff]  }
  0x75   :  { %4732 = vmatpush3.bf16.msra.mxu0 %v4799_v10  ;;  %v4851_v54 = vld [vmem:[#allocation4 + $0x100] ss:$16 sps:$4 sm:$0xff]   ;;  %v4856_v55 = vld [vmem:[#allocation4 + $0x124] ss:$16 sps:$4 sm:$0xff]   ;;  %v5486_v8 = vsub.s32 0, %v5483_v7  ;;  %v5492_v10 = vsub.s32 1, %v5483_v7 }
  0x76   :  { %4733 = vmatprep.subr.bf16.mxu0 %v5276_v0  ;;  %357 = vmatpush1.bf16.msra.mxu1 %v4817_v17  ;;  %v4854_v56 = vld [vmem:[#allocation4 + $0x120] ss:$16 sps:$4 sm:$0xff]   ;;  %v4859_v57 = vld [vmem:[#allocation4 + $0x144] ss:$16 sps:$4 sm:$0xff]  }
  0x77   :  { %358 = vmatprep.subr.bf16.mxu1 %v4818_v18  ;;  %v4857_v58 = vld [vmem:[#allocation4 + $0x140] ss:$16 sps:$4 sm:$0xff]   ;;  %v4862_v59 = vld [vmem:[#allocation4 + $0x164] ss:$16 sps:$4 sm:$0xff]  }
  0x78   :  { %v4860_v60 = vld [vmem:[#allocation4 + $0x160] ss:$16 sps:$4 sm:$0xff]   ;;  %v4865_v61 = vld [vmem:[#allocation4 + $0x184] ss:$16 sps:$4 sm:$0xff]  }
  0x79   :  { %4734 = vmatpush3.bf16.msra.mxu0 %v4800_v11  ;;  %v4863_v62 = vld [vmem:[#allocation4 + $0x180] ss:$16 sps:$4 sm:$0xff]   ;;  %v4868_v63 = vld [vmem:[#allocation4 + $0x1a4] ss:$16 sps:$4 sm:$0xff]  }
  0x7a   :  { %4735 = vmatprep.subr.bf16.mxu0 %v5276_v0  ;;  %359 = vmatpush1.bf16.msra.mxu1 %v4820_v21  ;;  %v4871_v1 = vld [vmem:[#allocation4 + $0x1c4] ss:$16 sps:$4 sm:$0xff]   ;;  %v4869_v2 = vld [vmem:[#allocation4 + $0x1c0] ss:$16 sps:$4 sm:$0xff]  }
  0x7b   :  { %360 = vmatprep.subr.bf16.mxu1 %v4821_v23  ;;  %v4874_v3 = vld [vmem:[#allocation4 + $0x1e4] ss:$16 sps:$4 sm:$0xff]   ;;  %v4872_v4 = vld [vmem:[#allocation4 + $0x1e0] ss:$16 sps:$4 sm:$0xff]  }
  0x7c   :  { %v256_v9 = vld [vmem:[%s5704_s4] sm:$0x3] }
  0x7d   :  { %4736 = vmatpush3.bf16.msra.mxu0 %v4801_v16  ;;  %v261_v11 = vrot.slane %v256_v9, %v5486_v8  ;;  %v265_v12 = vrot.slane %v256_v9, %v5492_v10 }
  0x7e   :  { %4737 = vmatprep.subr.bf16.mxu0 %v5276_v0  ;;  %361 = vmatpush1.bf16.msra.mxu1 %v4823_v24  ;;  %v4866_v0 = vld [vmem:[#allocation4 + $0x1a0] ss:$16 sps:$4 sm:$0xff]  }
  0x7f   :  { %362 = vmatprep.subr.bf16.mxu1 %v4824_v25 }
  0x81   :  { %4738 = vmatpush3.bf16.msra.mxu0 %v4802_v19 }
  0x82   :  { %363 = vmatpush1.bf16.msra.mxu1 %v4826_v26 }
  0x83   :  { %870 = vmatprep.subr.bf16.mxu1 %v4829_v28 }
  0x84   :  { %4740 = vmatmul.mubr.bf16.vlgmr.msra.gmra.mrb[0].mxu0 %v124_v22 }
 0x157   :  { %v230_v30 = vpop.f32.mrb[0].mxu0 }
 0x158   :  { %v231_v31 = vadd.f32 %v4241_v29, %v230_v30  ;;  %v4741_v32 = vpop.f32.mrb[1].mxu0 }
 0x159   :  { %v233_v33 = vpop.f32.mrb[2].mxu0 }
 0x15a   :  { %vm236_vm1 = vcmp.ge.f32.partialorder %v231_v31, 0.0  ;;  %v237_v34 = vmul.f32 0.2, %v231_v31  ;;  %v4742_v35 = vpop.f32.mrb[3].mxu0 }
 0x15c   :  { %v238_v36 = vsel %vm236_vm1, %v231_v31, %v237_v34 }
 0x15d   :  { %v239_v38 = vpack.c.bf16 %v238_v36, %v238_v36 }
 0x15f   :  { %381 = vmatmul.mubr.bf16.vlgmr.msra.gmra.mrb[0].mxu1 %v239_v38 }
 0x160   :  { %871 = vmatpush1.bf16.msra.mxu1 %v4827_v37 }
 0x161   :  { %872 = vmatprep.subr.bf16.mxu1 %v4832_v39 }
 0x164   :  { %873 = vmatpush1.bf16.msra.mxu1 %v4830_v40 }
 0x165   :  { %874 = vmatprep.subr.bf16.mxu1 %v4835_v41 }
 0x168   :  { %875 = vmatpush1.bf16.msra.mxu1 %v4833_v42 }
 0x169   :  { %876 = vmatprep.subr.bf16.mxu1 %v4838_v43 }
 0x16c   :  { %877 = vmatpush1.bf16.msra.mxu1 %v4836_v44 }
 0x16d   :  { %878 = vmatprep.subr.bf16.mxu1 %v4841_v45 }
 0x170   :  { %879 = vmatpush1.bf16.msra.mxu1 %v4839_v46 }
 0x171   :  { %880 = vmatprep.subr.bf16.mxu1 %v4844_v47 }
 0x174   :  { %881 = vmatpush1.bf16.msra.mxu1 %v4842_v48 }
 0x175   :  { %882 = vmatprep.subr.bf16.mxu1 %v4847_v49 }
 0x178   :  { %883 = vmatpush1.bf16.msra.mxu1 %v4845_v50 }
 0x179   :  { %884 = vmatprep.subr.bf16.mxu1 %v4850_v51 }
 0x17c   :  { %885 = vmatpush1.bf16.msra.mxu1 %v4848_v52 }
 0x17d   :  { %886 = vmatprep.subr.bf16.mxu1 %v4853_v53  ;;  %v428_v53 = vld [vmem:[%s5705_s5] sm:$0x3] }
 0x180   :  { %887 = vmatpush1.bf16.msra.mxu1 %v4851_v54  ;;  %v442_v54 = vld [vmem:[%s5706_s6] sm:$0x3] }
 0x181   :  { %888 = vmatprep.subr.bf16.mxu1 %v4856_v55  ;;  %v433_v55 = vrot.slane %v428_v53, %v5486_v8 }
 0x184   :  { %889 = vmatpush1.bf16.msra.mxu1 %v4854_v56 }
 0x185   :  { %890 = vmatprep.subr.bf16.mxu1 %v4859_v57  ;;  %v437_v57 = vrot.slane %v428_v53, %v5492_v10 }
 0x188   :  { %891 = vmatpush1.bf16.msra.mxu1 %v4857_v58 }
 0x189   :  { %892 = vmatprep.subr.bf16.mxu1 %v4862_v59 }
 0x18c   :  { %893 = vmatpush1.bf16.msra.mxu1 %v4860_v60  ;;  %v447_v60 = vrot.slane %v442_v54, %v5486_v8 }
 0x18d   :  { %894 = vmatprep.subr.bf16.mxu1 %v4865_v61 }
 0x190   :  { %895 = vmatpush1.bf16.msra.mxu1 %v4863_v62  ;;  %v451_v62 = vrot.slane %v442_v54, %v5492_v10 }
 0x191   :  { %896 = vmatprep.subr.bf16.mxu1 %v4868_v63 }
 0x194   :  { %897 = vmatpush1.bf16.msra.mxu1 %v4866_v0 }
 0x195   :  { %898 = vmatprep.subr.bf16.mxu1 %v4871_v1 }
 0x198   :  { %899 = vmatpush1.bf16.msra.mxu1 %v4869_v2 }
 0x199   :  { %900 = vmatprep.subr.bf16.mxu1 %v4874_v3 }
 0x19c   :  { %901 = vmatpush1.bf16.msra.mxu1 %v4872_v4 }
 0x19d   :  { %911 = vmatprep.subr.bf16.mxu1 %v4877_v5 }
 0x232   :  { %v382_v13 = vpop.f32.mrb[0].mxu1 }
 0x233   :  { %v383_v14 = vadd.f32 %v382_v13, %v261_v11  ;;  %v384_v15 = vpop.f32.mrb[1].mxu1  ;;  %v4875_v11 = vld [vmem:[#allocation4 + $0x8] ss:$16 sps:$4 sm:$0xff]   ;;  %v4880_v13 = vld [vmem:[#allocation4 + $0x2c] ss:$16 sps:$4 sm:$0xff]  }
 0x234   :  { %v385_v16 = vadd.f32 %v384_v15, %v265_v12  ;;  %v386_v17 = vpop.f32.mrb[2].mxu1  ;;  %v4883_v15 = vld [vmem:[#allocation4 + $0x4c] ss:$16 sps:$4 sm:$0xff]  }
 0x235   :  { %v389_v18 = vrot.slane %v383_v14, 4  ;;  %v387_v19 = vpop.f32.mrb[3].mxu1  ;;  %v4886_v17 = vld [vmem:[#allocation4 + $0x6c] ss:$16 sps:$4 sm:$0xff]  }
 0x236   :  { %v395_v20 = vrot.slane %v385_v16, 4  ;;  %v4889_v19 = vld [vmem:[#allocation4 + $0x8c] ss:$16 sps:$4 sm:$0xff]  }
 0x237   :  { %v390_v21 = vadd.f32 %v389_v18, %v383_v14  ;;  %v4884_v18 = vld [vmem:[#allocation4 + $0x68] ss:$16 sps:$4 sm:$0xff]  }
 0x238   :  { %v396_v22 = vadd.f32 %v395_v20, %v385_v16  ;;  %v4887_v20 = vld [vmem:[#allocation4 + $0x88] ss:$16 sps:$4 sm:$0xff]  }
 0x239   :  { %v391_v23 = vrot.slane %v390_v21, 2 }
 0x23a   :  { %v397_v24 = vrot.slane %v396_v22, 2 }
 0x23b   :  { %v392_v25 = vadd.f32 %v391_v23, %v390_v21  ;;  %v4892_v21 = vld [vmem:[#allocation4 + $0xac] ss:$16 sps:$4 sm:$0xff]  }
 0x23c   :  { %v398_v26 = vadd.f32 %v397_v24, %v396_v22  ;;  %v4890_v22 = vld [vmem:[#allocation4 + $0xa8] ss:$16 sps:$4 sm:$0xff]   ;;  %v4895_v23 = vld [vmem:[#allocation4 + $0xcc] ss:$16 sps:$4 sm:$0xff]  }
 0x23d   :  { %v393_v27 = vrot.slane %v392_v25, 1  ;;  %v4893_v24 = vld [vmem:[#allocation4 + $0xc8] ss:$16 sps:$4 sm:$0xff]  }
 0x23e   :  { %v399_v28 = vrot.slane %v398_v26, 1 }
 0x23f   :  { %v394_v29 = vadd.f32 %v393_v27, %v392_v25  ;;  %v4898_v25 = vld [vmem:[#allocation4 + $0xec] ss:$16 sps:$4 sm:$0xff]  }
 0x240   :  { %v400_v30 = vadd.f32 %v399_v28, %v398_v26  ;;  %v4896_v26 = vld [vmem:[#allocation4 + $0xe8] ss:$16 sps:$4 sm:$0xff]   ;;  %v4901_v27 = vld [vmem:[#allocation4 + $0x10c] ss:$16 sps:$4 sm:$0xff]  }
 0x241   :  { %v402_v31 = vmul.f32 0.125, %v394_v29  ;;  %v4899_v28 = vld [vmem:[#allocation4 + $0x108] ss:$16 sps:$4 sm:$0xff]   ;;  %v4904_v29 = vld [vmem:[#allocation4 + $0x12c] ss:$16 sps:$4 sm:$0xff]  }
 0x242   :  { %v403_v32 = vmul.f32 0.125, %v400_v30  ;;  %v4902_v30 = vld [vmem:[#allocation4 + $0x128] ss:$16 sps:$4 sm:$0xff]  }
 0x243   :  { %v404_v33 = vsub.f32 %v383_v14, %v402_v31  ;;  %v4878_v14 = vld [vmem:[#allocation4 + $0x28] ss:$16 sps:$4 sm:$0xff]   ;;  %v4907_v31 = vld [vmem:[#allocation4 + $0x14c] ss:$16 sps:$4 sm:$0xff]  }
 0x244   :  { %v405_v34 = vsub.f32 %v385_v16, %v403_v32  ;;  %v4881_v16 = vld [vmem:[#allocation4 + $0x48] ss:$16 sps:$4 sm:$0xff]  }
 0x245   :  { %v406_v35 = vmul.f32 %v404_v33, %v404_v33  ;;  %v4905_v32 = vld [vmem:[#allocation4 + $0x148] ss:$16 sps:$4 sm:$0xff]  }
 0x246   :  { %v407_v36 = vmul.f32 %v405_v34, %v405_v34 }
 0x247   :  { %v408_v37 = vrot.slane %v406_v35, 4 }
 0x248   :  { %v414_v38 = vrot.slane %v407_v36, 4 }
 0x249   :  { %v409_v39 = vadd.f32 %v408_v37, %v406_v35  ;;  %v4913_v35 = vld [vmem:[#allocation4 + $0x18c] ss:$16 sps:$4 sm:$0xff]  }
 0x24a   :  { %v415_v40 = vadd.f32 %v414_v38, %v407_v36  ;;  %v4911_v36 = vld [vmem:[#allocation4 + $0x188] ss:$16 sps:$4 sm:$0xff]   ;;  %v4916_v37 = vld [vmem:[#allocation4 + $0x1ac] ss:$16 sps:$4 sm:$0xff]  }
 0x24b   :  { %v410_v41 = vrot.slane %v409_v39, 2  ;;  %v4914_v38 = vld [vmem:[#allocation4 + $0x1a8] ss:$16 sps:$4 sm:$0xff]  }
 0x24c   :  { %v416_v42 = vrot.slane %v415_v40, 2 }
 0x24d   :  { %v411_v43 = vadd.f32 %v410_v41, %v409_v39  ;;  %v4919_v39 = vld [vmem:[#allocation4 + $0x1cc] ss:$16 sps:$4 sm:$0xff]  }
 0x24e   :  { %v417_v44 = vadd.f32 %v416_v42, %v415_v40  ;;  %v4917_v40 = vld [vmem:[#allocation4 + $0x1c8] ss:$16 sps:$4 sm:$0xff]   ;;  %v4922_v41 = vld [vmem:[#allocation4 + $0x1ec] ss:$16 sps:$4 sm:$0xff]   ;;  %v1096_v42 = vld [vmem:[#allocation6] sm:$0xff] }
 0x24f   :  { %v412_v45 = vrot.slane %v411_v43, 1 }
 0x250   :  { %v418_v46 = vrot.slane %v417_v44, 1 }
 0x251   :  { %v413_v47 = vadd.f32 %v412_v45, %v411_v43  ;;  %v1100_v43 = vld [vmem:[#allocation6 + $0x20] sm:$0xff] }
 0x252   :  { %v419_v48 = vadd.f32 %v418_v46, %v417_v44  ;;  %v4920_v44 = vld [vmem:[#allocation4 + $0x1e8] ss:$16 sps:$4 sm:$0xff]   ;;  %v4331_v45 = vcombine.high %v1096_v42, %v1100_v43  ;;  %v4330_v46 = vcombine.low %v1096_v42, %v1100_v43  ;;  %v1216_v42 = vld [vmem:[#allocation6 + $0x3c0] sm:$0xff] }
 0x253   :  { %v420_v49 = vmul.f32 0.125, %v413_v47  ;;  %v1104_v47 = vld [vmem:[#allocation6 + $0x40] sm:$0xff] }
 0x254   :  { %v421_v50 = vmul.f32 0.125, %v419_v48  ;;  %v1108_v48 = vld [vmem:[#allocation6 + $0x60] sm:$0xff] }
 0x255   :  { %v422_v51 = vadd.f32 1e-05, %v420_v49  ;;  %v4339_v49 = vcombine.high %v1104_v47, %v1108_v48  ;;  %v1220_v43 = vld [vmem:[#allocation6 + $0x3e0] sm:$0xff] }
 0x256   :  { %v423_v52 = vadd.f32 1e-05, %v421_v50  ;;  %v4338_v50 = vcombine.low %v1104_v47, %v1108_v48  ;;  %v1228_v47 = vld [vmem:[#allocation6 + $0x420] sm:$0xff] }
 0x257   :  { %5115 = vrsqrt.f32 %v422_v51  ;;  %v1112_v51 = vld [vmem:[#allocation6 + $0x80] sm:$0xff] }
 0x258   :  { %5117 = vrsqrt.f32 %v423_v52  ;;  %v1116_v52 = vld [vmem:[#allocation6 + $0xa0] sm:$0xff] }
 0x259   :  { %v4347_v53 = vcombine.high %v1112_v51, %v1116_v52  ;;  %v4346_v54 = vcombine.low %v1112_v51, %v1116_v52  ;;  %v5512_v51 = vld [vmem:[#allocation6 + $0x28] sm:$0xff] }
 0x261   :  { %v5116_v56 = vpop.eup %5115 }
 0x262   :  { %v5118_v58 = vpop.eup %5117  ;;  %v426_v59 = vmul.f32 %v5116_v56, %v404_v33  ;;  %v4910_v33 = vld [vmem:[#allocation4 + $0x16c] ss:$16 sps:$4 sm:$0xff]   ;;  %v1124_v56 = vld [vmem:[#allocation6 + $0xe0] sm:$0xff] }
 0x263   :  { %v427_v61 = vmul.f32 %v5118_v58, %v405_v34  ;;  %v4908_v34 = vld [vmem:[#allocation4 + $0x168] ss:$16 sps:$4 sm:$0xff]  }
 0x264   :  { %v440_v63 = vmul.f32 %v433_v55, %v426_v59  ;;  %v1120_v55 = vld [vmem:[#allocation6 + $0xc0] sm:$0xff] }
 0x265   :  { %v441_v0 = vmul.f32 %v437_v57, %v427_v61  ;;  %v4355_v57 = vcombine.high %v1120_v55, %v1124_v56  ;;  %v4354_v58 = vcombine.low %v1120_v55, %v1124_v56  ;;  %v1128_v59 = vld [vmem:[#allocation6 + $0x100] sm:$0xff] }
 0x266   :  { %v454_v1 = vadd.f32 %v447_v60, %v440_v63  ;;  %v1132_v60 = vld [vmem:[#allocation6 + $0x120] sm:$0xff] }
 0x267   :  { %v455_v2 = vadd.f32 %v451_v62, %v441_v0  ;;  %v4363_v61 = vcombine.high %v1128_v59, %v1132_v60  ;;  %v4362_v62 = vcombine.low %v1128_v59, %v1132_v60  ;;  %v1136_v63 = vld [vmem:[#allocation6 + $0x140] sm:$0xff] }
 0x268   :  { %vm456_vm2 = vcmp.ge.f32.partialorder %v454_v1, 0.0  ;;  %v458_v3 = vmul.f32 0.2, %v454_v1  ;;  %v1140_v0 = vld [vmem:[#allocation6 + $0x160] sm:$0xff] }
 0x269   :  { %vm457_vm3 = vcmp.ge.f32.partialorder %v455_v2, 0.0  ;;  %v459_v4 = vmul.f32 0.2, %v455_v2  ;;  %v1236_v55 = vld [vmem:[#allocation6 + $0x460] sm:$0xff] }
 0x26a   :  { %v460_v5 = vsel %vm456_vm2, %v454_v1, %v458_v3  ;;  %v4371_v1 = vcombine.high %v1136_v63, %v1140_v0  ;;  %v1144_v3 = vld [vmem:[#allocation6 + $0x180] sm:$0xff] }
 0x26b   :  { %v461_v6 = vsel %vm457_vm3, %v455_v2, %v459_v4  ;;  %v5506_v12 = vpack.c.bf16 %v460_v5, %v460_v5  ;;  %v4370_v2 = vcombine.low %v1136_v63, %v1140_v0  ;;  %v1148_v4 = vld [vmem:[#allocation6 + $0x1a0] sm:$0xff] }
 0x26c   :  { %v463_v9 = vpack.c.bf16 %v461_v6, %v461_v6  ;;  %v4379_v5 = vcombine.high %v1144_v3, %v1148_v4  ;;  %v4378_v6 = vcombine.low %v1144_v3, %v1148_v4  ;;  %v1244_v59 = vld [vmem:[#allocation6 + $0x4a0] sm:$0xff] }
 0x26d   :  { %v1252_v63 = vld [vmem:[#allocation6 + $0x4e0] sm:$0xff] }
 0x26e   :  { %902 = vmatprep.mubr.bf16.mxu1 %v463_v9  ;;  %v1260_v3 = vld [vmem:[#allocation6 + $0x520] sm:$0xff] }
 0x26f   :  { %903 = vmatmul.mubr.bf16.vlgmr.msra.gmra.mrb[4].mxu1 %v5506_v12 }
 0x270   :  { %912 = vmatpush1.bf16.msra.mxu1 %v4875_v11  ;;  %943 = vmatprep.mubr.bf16.mxu1 %v463_v9  ;;  %v1152_v9 = vld [vmem:[#allocation6 + $0x1c0] sm:$0xff] }
 0x271   :  { %913 = vmatprep.subr.bf16.mxu1 %v4880_v13  ;;  %v1156_v11 = vld [vmem:[#allocation6 + $0x1e0] sm:$0xff] }
 0x272   :  { %v4386_v13 = vcombine.low %v1152_v9, %v1156_v11 }
 0x274   :  { %914 = vmatpush1.bf16.msra.mxu1 %v4878_v14  ;;  %v1160_v14 = vld [vmem:[#allocation6 + $0x200] sm:$0xff] }
 0x275   :  { %915 = vmatprep.subr.bf16.mxu1 %v4883_v15  ;;  %v1164_v15 = vld [vmem:[#allocation6 + $0x220] sm:$0xff] }
 0x278   :  { %916 = vmatpush1.bf16.msra.mxu1 %v4881_v16  ;;  %v4395_v16 = vcombine.high %v1160_v14, %v1164_v15 }
 0x279   :  { %917 = vmatprep.subr.bf16.mxu1 %v4886_v17  ;;  %v4394_v17 = vcombine.low %v1160_v14, %v1164_v15  ;;  %v1276_v14 = vld [vmem:[#allocation6 + $0x5a0] sm:$0xff] }
 0x27c   :  { %918 = vmatpush1.bf16.msra.mxu1 %v4884_v18  ;;  %v1168_v18 = vld [vmem:[#allocation6 + $0x240] sm:$0xff] }
 0x27d   :  { %919 = vmatprep.subr.bf16.mxu1 %v4889_v19  ;;  %v1172_v19 = vld [vmem:[#allocation6 + $0x260] sm:$0xff] }
 0x280   :  { %920 = vmatpush1.bf16.msra.mxu1 %v4887_v20  ;;  %v4403_v20 = vcombine.high %v1168_v18, %v1172_v19 }
 0x281   :  { %921 = vmatprep.subr.bf16.mxu1 %v4892_v21  ;;  %v4402_v21 = vcombine.low %v1168_v18, %v1172_v19  ;;  %v1284_v18 = vld [vmem:[#allocation6 + $0x5e0] sm:$0xff] }
 0x284   :  { %922 = vmatpush1.bf16.msra.mxu1 %v4890_v22  ;;  %v1176_v22 = vld [vmem:[#allocation6 + $0x280] sm:$0xff] }
 0x285   :  { %923 = vmatprep.subr.bf16.mxu1 %v4895_v23  ;;  %v1180_v23 = vld [vmem:[#allocation6 + $0x2a0] sm:$0xff] }
 0x288   :  { %924 = vmatpush1.bf16.msra.mxu1 %v4893_v24  ;;  %v4411_v24 = vcombine.high %v1176_v22, %v1180_v23 }
 0x289   :  { %925 = vmatprep.subr.bf16.mxu1 %v4898_v25  ;;  %v4410_v25 = vcombine.low %v1176_v22, %v1180_v23  ;;  %v1292_v22 = vld [vmem:[#allocation6 + $0x620] sm:$0xff] }
 0x28c   :  { %926 = vmatpush1.bf16.msra.mxu1 %v4896_v26  ;;  %v1184_v26 = vld [vmem:[#allocation6 + $0x2c0] sm:$0xff] }
 0x28d   :  { %927 = vmatprep.subr.bf16.mxu1 %v4901_v27  ;;  %v1188_v27 = vld [vmem:[#allocation6 + $0x2e0] sm:$0xff] }
 0x290   :  { %928 = vmatpush1.bf16.msra.mxu1 %v4899_v28  ;;  %v4419_v28 = vcombine.high %v1184_v26, %v1188_v27 }
 0x291   :  { %929 = vmatprep.subr.bf16.mxu1 %v4904_v29  ;;  %v4418_v29 = vcombine.low %v1184_v26, %v1188_v27  ;;  %v1300_v26 = vld [vmem:[#allocation6 + $0x660] sm:$0xff] }
 0x294   :  { %930 = vmatpush1.bf16.msra.mxu1 %v4902_v30  ;;  %v1192_v30 = vld [vmem:[#allocation6 + $0x300] sm:$0xff] }
 0x295   :  { %931 = vmatprep.subr.bf16.mxu1 %v4907_v31  ;;  %v1196_v31 = vld [vmem:[#allocation6 + $0x320] sm:$0xff] }
 0x298   :  { %932 = vmatpush1.bf16.msra.mxu1 %v4905_v32  ;;  %v4427_v32 = vcombine.high %v1192_v30, %v1196_v31 }
 0x299   :  { %933 = vmatprep.subr.bf16.mxu1 %v4910_v33  ;;  %v4426_v33 = vcombine.low %v1192_v30, %v1196_v31  ;;  %v1308_v30 = vld [vmem:[#allocation6 + $0x6a0] sm:$0xff] }
 0x29c   :  { %934 = vmatpush1.bf16.msra.mxu1 %v4908_v34  ;;  %v1200_v34 = vld [vmem:[#allocation6 + $0x340] sm:$0xff] }
 0x29d   :  { %935 = vmatprep.subr.bf16.mxu1 %v4913_v35  ;;  %v1204_v35 = vld [vmem:[#allocation6 + $0x360] sm:$0xff] }
 0x2a0   :  { %936 = vmatpush1.bf16.msra.mxu1 %v4911_v36  ;;  %v4435_v36 = vcombine.high %v1200_v34, %v1204_v35 }
 0x2a1   :  { %937 = vmatprep.subr.bf16.mxu1 %v4916_v37  ;;  %v4434_v37 = vcombine.low %v1200_v34, %v1204_v35  ;;  %v1316_v34 = vld [vmem:[#allocation6 + $0x6e0] sm:$0xff] }
 0x2a4   :  { %938 = vmatpush1.bf16.msra.mxu1 %v4914_v38  ;;  %v1208_v38 = vld [vmem:[#allocation6 + $0x380] sm:$0xff] }
 0x2a5   :  { %939 = vmatprep.subr.bf16.mxu1 %v4919_v39  ;;  %v1212_v39 = vld [vmem:[#allocation6 + $0x3a0] sm:$0xff] }
 0x2a8   :  { %940 = vmatpush1.bf16.msra.mxu1 %v4917_v40  ;;  %v4443_v40 = vcombine.high %v1208_v38, %v1212_v39 }
 0x2a9   :  { %941 = vmatprep.subr.bf16.mxu1 %v4922_v41  ;;  %v4442_v41 = vcombine.low %v1208_v38, %v1212_v39  ;;  %v1324_v38 = vld [vmem:[#allocation6 + $0x720] sm:$0xff] }
 0x2ac   :  { %942 = vmatpush1.bf16.msra.mxu1 %v4920_v44  ;;  %v1224_v44 = vld [vmem:[#allocation6 + $0x400] sm:$0xff] }
 0x2ad   :  { %2674 = vmatprep.subr.bf16.mxu1 %v4331_v45  ;;  %v4450_v45 = vcombine.low %v1216_v42, %v1220_v43  ;;  %v4458_v48 = vcombine.low %v1224_v44, %v1228_v47 }
 0x2af   :  { %944 = vmatmul.mubr.bf16.vlgmr.msra.gmra.mrb[8].mxu1 %v5506_v12  ;;  %v4387_v12 = vcombine.high %v1152_v9, %v1156_v11  ;;  %v1268_v9 = vld [vmem:[#allocation6 + $0x560] sm:$0xff] }
 0x2b0   :  { %2675 = vmatpush1.bf16.msra.mxu1 %v4330_v46  ;;  %v4451_v46 = vcombine.high %v1216_v42, %v1220_v43  ;;  %v1332_v42 = vld [vmem:[#allocation6 + $0x760] sm:$0xff] }
 0x2b1   :  { %2676 = vmatprep.subr.bf16.mxu1 %v4339_v49  ;;  %v4459_v49 = vcombine.high %v1224_v44, %v1228_v47 }
 0x2b3   :  { %2715 = vmatprep.subr.bf16.mxu0 %v4459_v49  ;;  %v1344_v49 = vld [vmem:[#allocation6 + $0x7c0] sm:$0xff] }
 0x2b4   :  { %2677 = vmatpush1.bf16.msra.mxu1 %v4338_v50  ;;  %2716 = vmatpush1.bf16.msra.mxu0 %v4458_v48  ;;  %v5510_v50 = vld [vmem:[#allocation6 + $0x8] sm:$0xff] }
 0x2b5   :  { %2678 = vmatprep.subr.bf16.mxu1 %v4347_v53  ;;  %v4333_v52 = vcombine.high %v5510_v50, %v5512_v51  ;;  %v4332_v53 = vcombine.low %v5510_v50, %v5512_v51 }
 0x2b8   :  { %2679 = vmatpush1.bf16.msra.mxu1 %v4346_v54  ;;  %v1232_v54 = vld [vmem:[#allocation6 + $0x440] sm:$0xff] }
 0x2b9   :  { %2680 = vmatprep.subr.bf16.mxu1 %v4355_v57  ;;  %v4467_v56 = vcombine.high %v1232_v54, %v1236_v55  ;;  %v4466_v57 = vcombine.low %v1232_v54, %v1236_v55 }
 0x2bb   :  { %2717 = vmatprep.subr.bf16.mxu0 %v4467_v56  ;;  %v5518_v56 = vld [vmem:[#allocation6 + $0x10] sm:$0xff] }
 0x2bc   :  { %2681 = vmatpush1.bf16.msra.mxu1 %v4354_v58  ;;  %2718 = vmatpush1.bf16.msra.mxu0 %v4466_v57  ;;  %v1240_v58 = vld [vmem:[#allocation6 + $0x480] sm:$0xff]  ;;  %v5520_v57 = vld [vmem:[#allocation6 + $0x30] sm:$0xff] }
 0x2bd   :  { %2682 = vmatprep.subr.bf16.mxu1 %v4363_v61  ;;  %v4475_v60 = vcombine.high %v1240_v58, %v1244_v59  ;;  %v4474_v61 = vcombine.low %v1240_v58, %v1244_v59  ;;  %v5525_v58 = vld [vmem:[%s5708_s8] sm:$0xf]  ;;  %v4335_v59 = vcombine.high %v5518_v56, %v5520_v57 }
 0x2bf   :  { %2719 = vmatprep.subr.bf16.mxu0 %v4475_v60  ;;  %v4334_v60 = vcombine.low %v5518_v56, %v5520_v57 }
 0x2c0   :  { %2683 = vmatpush1.bf16.msra.mxu1 %v4362_v62  ;;  %2720 = vmatpush1.bf16.msra.mxu0 %v4474_v61  ;;  %v1248_v62 = vld [vmem:[#allocation6 + $0x4c0] sm:$0xff]  ;;  %v533_v61 = vrot.slane %v5525_v58, %v5486_v8 }
 0x2c1   :  { %2684 = vmatprep.subr.bf16.mxu1 %v4371_v1  ;;  %v4483_v0 = vcombine.high %v1248_v62, %v1252_v63  ;;  %v4482_v1 = vcombine.low %v1248_v62, %v1252_v63  ;;  %v537_v62 = vrot.slane %v5525_v58, %v5492_v10 }
 0x2c3   :  { %2721 = vmatprep.subr.bf16.mxu0 %v4483_v0 }
 0x2c4   :  { %2685 = vmatpush1.bf16.msra.mxu1 %v4370_v2  ;;  %2722 = vmatpush1.bf16.msra.mxu0 %v4482_v1  ;;  %v1256_v2 = vld [vmem:[#allocation6 + $0x500] sm:$0xff] }
 0x2c5   :  { %2686 = vmatprep.subr.bf16.mxu1 %v4379_v5  ;;  %v4491_v4 = vcombine.high %v1256_v2, %v1260_v3  ;;  %v4490_v5 = vcombine.low %v1256_v2, %v1260_v3 }
 0x2c7   :  { %2723 = vmatprep.subr.bf16.mxu0 %v4491_v4 }
 0x2c8   :  { %2687 = vmatpush1.bf16.msra.mxu1 %v4378_v6  ;;  %2724 = vmatpush1.bf16.msra.mxu0 %v4490_v5  ;;  %v1264_v6 = vld [vmem:[#allocation6 + $0x540] sm:$0xff] }
 0x2c9   :  { %2688 = vmatprep.subr.bf16.mxu1 %v4387_v12  ;;  %v4499_v11 = vcombine.high %v1264_v6, %v1268_v9  ;;  %v4498_v12 = vcombine.low %v1264_v6, %v1268_v9 }
 0x2cb   :  { %2725 = vmatprep.subr.bf16.mxu0 %v4499_v11 }
 0x2cc   :  { %2689 = vmatpush1.bf16.msra.mxu1 %v4386_v13  ;;  %2726 = vmatpush1.bf16.msra.mxu0 %v4498_v12  ;;  %v1272_v13 = vld [vmem:[#allocation6 + $0x580] sm:$0xff] }
 0x2cd   :  { %2690 = vmatprep.subr.bf16.mxu1 %v4395_v16  ;;  %v4507_v15 = vcombine.high %v1272_v13, %v1276_v14  ;;  %v4506_v16 = vcombine.low %v1272_v13, %v1276_v14 }
 0x2cf   :  { %2727 = vmatprep.subr.bf16.mxu0 %v4507_v15 }
 0x2d0   :  { %2691 = vmatpush1.bf16.msra.mxu1 %v4394_v17  ;;  %2728 = vmatpush1.bf16.msra.mxu0 %v4506_v16  ;;  %v1280_v17 = vld [vmem:[#allocation6 + $0x5c0] sm:$0xff] }
 0x2d1   :  { %2692 = vmatprep.subr.bf16.mxu1 %v4403_v20  ;;  %v4515_v19 = vcombine.high %v1280_v17, %v1284_v18  ;;  %v4514_v20 = vcombine.low %v1280_v17, %v1284_v18 }
 0x2d3   :  { %2729 = vmatprep.subr.bf16.mxu0 %v4515_v19 }
 0x2d4   :  { %2693 = vmatpush1.bf16.msra.mxu1 %v4402_v21  ;;  %2730 = vmatpush1.bf16.msra.mxu0 %v4514_v20  ;;  %v1288_v21 = vld [vmem:[#allocation6 + $0x600] sm:$0xff] }
 0x2d5   :  { %2694 = vmatprep.subr.bf16.mxu1 %v4411_v24  ;;  %v4523_v23 = vcombine.high %v1288_v21, %v1292_v22  ;;  %v4522_v24 = vcombine.low %v1288_v21, %v1292_v22 }
 0x2d7   :  { %2731 = vmatprep.subr.bf16.mxu0 %v4523_v23 }
 0x2d8   :  { %2695 = vmatpush1.bf16.msra.mxu1 %v4410_v25  ;;  %2732 = vmatpush1.bf16.msra.mxu0 %v4522_v24  ;;  %v1296_v25 = vld [vmem:[#allocation6 + $0x640] sm:$0xff] }
 0x2d9   :  { %2696 = vmatprep.subr.bf16.mxu1 %v4419_v28  ;;  %v4531_v27 = vcombine.high %v1296_v25, %v1300_v26  ;;  %v4530_v28 = vcombine.low %v1296_v25, %v1300_v26 }
 0x2db   :  { %2733 = vmatprep.subr.bf16.mxu0 %v4531_v27 }
 0x2dc   :  { %2697 = vmatpush1.bf16.msra.mxu1 %v4418_v29  ;;  %2734 = vmatpush1.bf16.msra.mxu0 %v4530_v28  ;;  %v1304_v29 = vld [vmem:[#allocation6 + $0x680] sm:$0xff] }
 0x2dd   :  { %2698 = vmatprep.subr.bf16.mxu1 %v4427_v32  ;;  %v4539_v31 = vcombine.high %v1304_v29, %v1308_v30  ;;  %v4538_v32 = vcombine.low %v1304_v29, %v1308_v30 }
 0x2df   :  { %2735 = vmatprep.subr.bf16.mxu0 %v4539_v31 }
 0x2e0   :  { %2699 = vmatpush1.bf16.msra.mxu1 %v4426_v33  ;;  %2736 = vmatpush1.bf16.msra.mxu0 %v4538_v32  ;;  %v1312_v33 = vld [vmem:[#allocation6 + $0x6c0] sm:$0xff] }
 0x2e1   :  { %2700 = vmatprep.subr.bf16.mxu1 %v4435_v36  ;;  %v4547_v35 = vcombine.high %v1312_v33, %v1316_v34  ;;  %v4546_v36 = vcombine.low %v1312_v33, %v1316_v34 }
 0x2e3   :  { %2737 = vmatprep.subr.bf16.mxu0 %v4547_v35 }
 0x2e4   :  { %2701 = vmatpush1.bf16.msra.mxu1 %v4434_v37  ;;  %2738 = vmatpush1.bf16.msra.mxu0 %v4546_v36  ;;  %v1320_v37 = vld [vmem:[#allocation6 + $0x700] sm:$0xff] }
 0x2e5   :  { %2702 = vmatprep.subr.bf16.mxu1 %v4443_v40  ;;  %v4555_v39 = vcombine.high %v1320_v37, %v1324_v38  ;;  %v4554_v40 = vcombine.low %v1320_v37, %v1324_v38 }
 0x2e7   :  { %2739 = vmatprep.subr.bf16.mxu0 %v4555_v39 }
 0x2e8   :  { %2703 = vmatpush1.bf16.msra.mxu1 %v4442_v41  ;;  %2740 = vmatpush1.bf16.msra.mxu0 %v4554_v40  ;;  %v1328_v41 = vld [vmem:[#allocation6 + $0x740] sm:$0xff] }
 0x2e9   :  { %2704 = vmatprep.subr.bf16.mxu1 %v4451_v46  ;;  %v4563_v43 = vcombine.high %v1328_v41, %v1332_v42  ;;  %v4562_v44 = vcombine.low %v1328_v41, %v1332_v42  ;;  %v1340_v46 = vld [vmem:[#allocation6 + $0x7a0] sm:$0xff] }
 0x2ea   :  { %v5538_v42 = vld [vmem:[%s5709_s9] sm:$0xf] }
 0x2eb   :  { %2741 = vmatprep.subr.bf16.mxu0 %v4563_v43  ;;  %v5543_v43 = vld [vmem:[%s5710_s10] sm:$0xf] }
 0x2ec   :  { %2705 = vmatpush1.bf16.msra.mxu1 %v4450_v45  ;;  %2742 = vmatpush1.bf16.msra.mxu0 %v4562_v44  ;;  %v1336_v45 = vld [vmem:[#allocation6 + $0x780] sm:$0xff]  ;;  %v1033_v44 = vrot.slane %v5538_v42, %v5486_v8 }
 0x2ed   :  { %2756 = vmatprep.subr.bf16.mxu1 %v4333_v52  ;;  %v4571_v47 = vcombine.high %v1336_v45, %v1340_v46  ;;  %v4570_v48 = vcombine.low %v1336_v45, %v1340_v46  ;;  %v1348_v52 = vld [vmem:[#allocation6 + $0x7e0] sm:$0xff]  ;;  %v1037_v46 = vrot.slane %v5538_v42, %v5492_v10 }
 0x2ee   :  { %v4578_v54 = vcombine.low %v1344_v49, %v1348_v52  ;;  %v4579_v55 = vcombine.high %v1344_v49, %v1348_v52  ;;  %v1059_v49 = vrot.slane %v5543_v43, %v5486_v8 }
 0x2ef   :  { %2743 = vmatprep.subr.bf16.mxu0 %v4571_v47 }
 0x2f0   :  { %2744 = vmatpush1.bf16.msra.mxu0 %v4570_v48 }
 0x2f1   :  { %2745 = vmatprep.subr.bf16.mxu0 %v4579_v55 }
 0x2f4   :  { %2746 = vmatpush1.bf16.msra.mxu0 %v4578_v54  ;;  %v1063_v54 = vrot.slane %v5543_v43, %v5492_v10 }
 0x2f5   :  { %2838 = vmatprep.subr.bf16.mxu0 %v4335_v59 }
 0x342   :  { %v904_v63 = vpop.f32.mrb[4].mxu1 }
 0x343   :  { %v905_v0 = vadd.f32 %v904_v63, %v533_v61  ;;  %v906_v1 = vpop.f32.mrb[5].mxu1 }
 0x344   :  { %v907_v2 = vadd.f32 %v906_v1, %v537_v62  ;;  %v908_v3 = vpop.f32.mrb[6].mxu1 }
 0x345   :  { %v952_v4 = vrot.slane %v905_v0, 4  ;;  %v909_v5 = vpop.f32.mrb[7].mxu1  ;;  %v1109_v3 = vld [vmem:[#allocation6 + $0x68] sm:$0xff] }
 0x346   :  { %v958_v6 = vrot.slane %v907_v2, 4  ;;  %v5554_v5 = vsub.s32 2, %v5483_v7 }
 0x347   :  { %v953_v9 = vadd.f32 %v952_v4, %v905_v0 }
 0x348   :  { %v959_v11 = vadd.f32 %v958_v6, %v907_v2 }
 0x349   :  { %v954_v12 = vrot.slane %v953_v9, 2 }
 0x34a   :  { %v960_v13 = vrot.slane %v959_v11, 2 }
 0x34b   :  { %v955_v14 = vadd.f32 %v954_v12, %v953_v9  ;;  %v5559_v9 = vsub.s32 3, %v5483_v7 }
 0x34c   :  { %v961_v15 = vadd.f32 %v960_v13, %v959_v11  ;;  %v1113_v13 = vld [vmem:[#allocation6 + $0x88] sm:$0xff] }
 0x34d   :  { %v956_v16 = vrot.slane %v955_v14, 1 }
 0x34e   :  { %v962_v17 = vrot.slane %v961_v15, 1 }
 0x34f   :  { %v957_v18 = vadd.f32 %v956_v16, %v955_v14  ;;  %v1117_v14 = vld [vmem:[#allocation6 + $0xa8] sm:$0xff]  ;;  %v545_v16 = vrot.slane %v5525_v58, %v5559_v9 }
 0x350   :  { %v963_v19 = vadd.f32 %v962_v17, %v961_v15  ;;  %v541_v15 = vrot.slane %v5525_v58, %v5554_v5 }
 0x351   :  { %v976_v20 = vmul.f32 0.125, %v957_v18  ;;  %v4349_v18 = vcombine.high %v1113_v13, %v1117_v14 }
 0x352   :  { %v977_v21 = vmul.f32 0.125, %v963_v19 }
 0x353   :  { %v980_v22 = vsub.f32 %v905_v0, %v976_v20  ;;  %v1121_v20 = vld [vmem:[#allocation6 + $0xc8] sm:$0xff] }
 0x354   :  { %v981_v23 = vsub.f32 %v907_v2, %v977_v21  ;;  %v1105_v2 = vld [vmem:[#allocation6 + $0x48] sm:$0xff] }
 0x355   :  { %v984_v24 = vmul.f32 %v980_v22, %v980_v22  ;;  %v4341_v12 = vcombine.high %v1105_v2, %v1109_v3  ;;  %v4340_v17 = vcombine.low %v1105_v2, %v1109_v3  ;;  %v1125_v21 = vld [vmem:[#allocation6 + $0xe8] sm:$0xff] }
 0x356   :  { %v985_v25 = vmul.f32 %v981_v23, %v981_v23  ;;  %v4357_v51 = vcombine.high %v1121_v20, %v1125_v21 }
 0x357   :  { %v988_v26 = vrot.slane %v984_v24, 4 }
 0x358   :  { %v994_v27 = vrot.slane %v985_v25, 4 }
 0x359   :  { %v989_v28 = vadd.f32 %v988_v26, %v984_v24  ;;  %v4348_v26 = vcombine.low %v1113_v13, %v1117_v14 }
 0x35a   :  { %v995_v29 = vadd.f32 %v994_v27, %v985_v25 }
 0x35b   :  { %v990_v30 = vrot.slane %v989_v28, 2 }
 0x35c   :  { %v996_v31 = vrot.slane %v995_v29, 2 }
 0x35d   :  { %v991_v32 = vadd.f32 %v990_v30, %v989_v28  ;;  %v1129_v28 = vld [vmem:[#allocation6 + $0x108] sm:$0xff] }
 0x35e   :  { %v997_v33 = vadd.f32 %v996_v31, %v995_v29  ;;  %v1133_v29 = vld [vmem:[#allocation6 + $0x128] sm:$0xff]  ;;  %v4356_v31 = vcombine.low %v1121_v20, %v1125_v21 }
 0x35f   :  { %v992_v34 = vrot.slane %v991_v32, 1  ;;  %v1173_v20 = vld [vmem:[#allocation6 + $0x268] sm:$0xff] }
 0x360   :  { %v998_v35 = vrot.slane %v997_v33, 1 }
 0x361   :  { %v993_v36 = vadd.f32 %v992_v34, %v991_v32 }
 0x362   :  { %v999_v37 = vadd.f32 %v998_v35, %v997_v33  ;;  %v4365_v33 = vcombine.high %v1129_v28, %v1133_v29  ;;  %v1137_v35 = vld [vmem:[#allocation6 + $0x148] sm:$0xff] }
 0x363   :  { %v1012_v38 = vmul.f32 0.125, %v993_v36  ;;  %v1141_v36 = vld [vmem:[#allocation6 + $0x168] sm:$0xff] }
 0x364   :  { %v1013_v39 = vmul.f32 0.125, %v999_v37 }
 0x365   :  { %v1016_v40 = vadd.f32 1e-05, %v1012_v38 }
 0x366   :  { %v1017_v41 = vadd.f32 1e-05, %v1013_v39  ;;  %v4364_v39 = vcombine.low %v1129_v28, %v1133_v29 }
 0x367   :  { %5119 = vrsqrt.f32 %v1016_v40 }
 0x368   :  { %5121 = vrsqrt.f32 %v1017_v41  ;;  %v4373_v41 = vcombine.high %v1137_v35, %v1141_v36 }
 0x371   :  { %v5120_v45 = vpop.eup %5119 }
 0x372   :  { %v5122_v47 = vpop.eup %5121  ;;  %v1024_v48 = vmul.f32 %v5120_v45, %v980_v22  ;;  %v1145_v45 = vld [vmem:[#allocation6 + $0x188] sm:$0xff] }
 0x373   :  { %v1025_v52 = vmul.f32 %v5122_v47, %v981_v23 }
 0x374   :  { %v1050_v55 = vmul.f32 %v1033_v44, %v1024_v48 }
 0x375   :  { %v1051_v59 = vmul.f32 %v1037_v46, %v1025_v52  ;;  %v1149_v46 = vld [vmem:[#allocation6 + $0x1a8] sm:$0xff] }
 0x376   :  { %v1076_v61 = vadd.f32 %v1059_v49, %v1050_v55  ;;  %v4372_v49 = vcombine.low %v1137_v35, %v1141_v36 }
 0x377   :  { %v1077_v62 = vadd.f32 %v1063_v54, %v1051_v59  ;;  %v4381_v54 = vcombine.high %v1145_v45, %v1149_v46  ;;  %v1153_v59 = vld [vmem:[#allocation6 + $0x1c8] sm:$0xff] }
 0x378   :  { %vm1080_vm4 = vcmp.ge.f32.partialorder %v1076_v61, 0.0  ;;  %v1084_v63 = vmul.f32 0.2, %v1076_v61 }
 0x379   :  { %vm1081_vm5 = vcmp.ge.f32.partialorder %v1077_v62, 0.0  ;;  %v1085_v0 = vmul.f32 0.2, %v1077_v62 }
 0x37a   :  { %v1088_v1 = vsel %vm1080_vm4, %v1076_v61, %v1084_v63  ;;  %v1157_v61 = vld [vmem:[#allocation6 + $0x1e8] sm:$0xff] }
 0x37b   :  { %v1089_v4 = vsel %vm1081_vm5, %v1077_v62, %v1085_v0  ;;  %v5561_v11 = vpack.c.bf16 %v1088_v1, %v1088_v1  ;;  %v4380_v0 = vcombine.low %v1145_v45, %v1149_v46  ;;  %v4389_v2 = vcombine.high %v1153_v59, %v1157_v61  ;;  %v1201_v45 = vld [vmem:[#allocation6 + $0x348] sm:$0xff] }
 0x37c   :  { %v5556_v6 = vpack.c.bf16 %v1089_v4, %v1089_v4  ;;  %v1161_v4 = vld [vmem:[#allocation6 + $0x208] sm:$0xff] }
 0x37d   :  { %v1205_v46 = vld [vmem:[#allocation6 + $0x368] sm:$0xff] }
 0x37e   :  { %2706 = vmatprep.mubr.bf16.mxu1 %v5556_v6 }
 0x37f   :  { %2707 = vmatmul.mubr.bf16.vlgmr.msra.gmra.mrb[12].mxu1 %v5561_v11 }
 0x380   :  { %2757 = vmatpush1.bf16.msra.mxu1 %v4332_v53  ;;  %2788 = vmatprep.mubr.bf16.mxu1 %v5556_v6 }
 0x381   :  { %2758 = vmatprep.subr.bf16.mxu1 %v4341_v12  ;;  %v1165_v12 = vld [vmem:[#allocation6 + $0x228] sm:$0xff] }
 0x382   :  { %v945_v19 = vpop.f32.mrb[8].mxu1 }
 0x383   :  { %v946_v22 = vadd.f32 %v945_v19, %v541_v15  ;;  %v947_v23 = vpop.f32.mrb[9].mxu1  ;;  %v4388_v15 = vcombine.low %v1153_v59, %v1157_v61  ;;  %v1169_v19 = vld [vmem:[#allocation6 + $0x248] sm:$0xff]  ;;  %v1045_v61 = vrot.slane %v5538_v42, %v5559_v9 }
 0x384   :  { %v948_v24 = vadd.f32 %v947_v23, %v545_v16  ;;  %v949_v25 = vpop.f32.mrb[10].mxu1  ;;  %2759 = vmatpush1.bf16.msra.mxu1 %v4340_v17  ;;  %v4397_v17 = vcombine.high %v1161_v4, %v1165_v12  ;;  %v4396_v23 = vcombine.low %v1161_v4, %v1165_v12  ;;  %v4404_v28 = vcombine.low %v1169_v19, %v1173_v20  ;;  %v1217_v4 = vld [vmem:[#allocation6 + $0x3c8] sm:$0xff] }
 0x385   :  { %v964_v27 = vrot.slane %v946_v22, 4  ;;  %v950_v50 = vpop.f32.mrb[11].mxu1  ;;  %2760 = vmatprep.subr.bf16.mxu1 %v4349_v18  ;;  %v4405_v25 = vcombine.high %v1169_v19, %v1173_v20  ;;  %v1221_v12 = vld [vmem:[#allocation6 + $0x3e8] sm:$0xff] }
 0x386   :  { %v970_v53 = vrot.slane %v948_v24, 4  ;;  %v1181_v50 = vld [vmem:[#allocation6 + $0x2a8] sm:$0xff] }
 0x387   :  { %v965_v58 = vadd.f32 %v964_v27, %v946_v22  ;;  %v1177_v27 = vld [vmem:[#allocation6 + $0x288] sm:$0xff] }
 0x388   :  { %v971_v30 = vadd.f32 %v970_v53, %v948_v24  ;;  %2761 = vmatpush1.bf16.msra.mxu1 %v4348_v26  ;;  %v4412_v35 = vcombine.low %v1177_v27, %v1181_v50  ;;  %v1225_v19 = vld [vmem:[#allocation6 + $0x408] sm:$0xff] }
 0x389   :  { %v966_v32 = vrot.slane %v965_v58, 2  ;;  %2762 = vmatprep.subr.bf16.mxu1 %v4357_v51  ;;  %v1229_v20 = vld [vmem:[#allocation6 + $0x428] sm:$0xff] }
 0x38a   :  { %v972_v34 = vrot.slane %v971_v30, 2 }
 0x38b   :  { %v967_v37 = vadd.f32 %v966_v32, %v965_v58  ;;  %v4413_v58 = vcombine.high %v1177_v27, %v1181_v50  ;;  %v1189_v32 = vld [vmem:[#allocation6 + $0x2e8] sm:$0xff] }
 0x38c   :  { %v973_v38 = vadd.f32 %v972_v34, %v971_v30  ;;  %2763 = vmatpush1.bf16.msra.mxu1 %v4356_v31  ;;  %v1185_v31 = vld [vmem:[#allocation6 + $0x2c8] sm:$0xff] }
 0x38d   :  { %v968_v40 = vrot.slane %v967_v37, 1  ;;  %2764 = vmatprep.subr.bf16.mxu1 %v4365_v33  ;;  %v1233_v27 = vld [vmem:[#allocation6 + $0x448] sm:$0xff] }
 0x38e   :  { %v974_v44 = vrot.slane %v973_v38, 1  ;;  %v1237_v50 = vld [vmem:[#allocation6 + $0x468] sm:$0xff] }
 0x38f   :  { %v969_v47 = vadd.f32 %v968_v40, %v967_v37  ;;  %v4421_v37 = vcombine.high %v1185_v31, %v1189_v32  ;;  %v1197_v40 = vld [vmem:[#allocation6 + $0x328] sm:$0xff] }
 0x390   :  { %v975_v48 = vadd.f32 %v974_v44, %v973_v38  ;;  %2765 = vmatpush1.bf16.msra.mxu1 %v4364_v39  ;;  %v1193_v39 = vld [vmem:[#allocation6 + $0x308] sm:$0xff] }
 0x391   :  { %v978_v52 = vmul.f32 0.125, %v969_v47  ;;  %2766 = vmatprep.subr.bf16.mxu1 %v4373_v41  ;;  %v4420_v41 = vcombine.low %v1185_v31, %v1189_v32  ;;  %v4429_v44 = vcombine.high %v1193_v39, %v1197_v40  ;;  %v4428_v47 = vcombine.low %v1193_v39, %v1197_v40  ;;  %v1118_v31 = vld [vmem:[#allocation6 + $0xb0] sm:$0xff]  ;;  %v1241_v32 = vld [vmem:[#allocation6 + $0x488] sm:$0xff] }
 0x392   :  { %v979_v55 = vmul.f32 0.125, %v975_v48  ;;  %v4437_v48 = vcombine.high %v1201_v45, %v1205_v46  ;;  %v1126_v39 = vld [vmem:[#allocation6 + $0xf0] sm:$0xff]  ;;  %v1249_v40 = vld [vmem:[#allocation6 + $0x4c8] sm:$0xff] }
 0x393   :  { %v5573_v62 = vsub.f32 %v946_v22, %v978_v52  ;;  %v1213_v52 = vld [vmem:[#allocation6 + $0x3a8] sm:$0xff] }
 0x394   :  { %v5575_v63 = vsub.f32 %v948_v24, %v979_v55  ;;  %2767 = vmatpush1.bf16.msra.mxu1 %v4372_v49  ;;  %v1209_v49 = vld [vmem:[#allocation6 + $0x388] sm:$0xff]  ;;  %v4436_v55 = vcombine.low %v1201_v45, %v1205_v46  ;;  %v1130_v45 = vld [vmem:[#allocation6 + $0x110] sm:$0xff] }
 0x395   :  { %v986_v1 = vmul.f32 %v5573_v62, %v5573_v62  ;;  %2768 = vmatprep.subr.bf16.mxu1 %v4381_v54  ;;  %v1041_v54 = vrot.slane %v5538_v42, %v5554_v5  ;;  %v4453_v42 = vcombine.high %v1217_v4, %v1221_v12  ;;  %v1134_v46 = vld [vmem:[#allocation6 + $0x130] sm:$0xff] }
 0x396   :  { %v987_v3 = vmul.f32 %v5575_v63, %v5575_v63 }
 0x397   :  { %v1000_v13 = vrot.slane %v986_v1, 4 }
 0x398   :  { %v1006_v14 = vrot.slane %v987_v3, 4  ;;  %2769 = vmatpush1.bf16.msra.mxu1 %v4380_v0  ;;  %v4445_v0 = vcombine.high %v1209_v49, %v1213_v52 }
 0x399   :  { %v1001_v16 = vadd.f32 %v1000_v13, %v986_v1  ;;  %2770 = vmatprep.subr.bf16.mxu1 %v4389_v2 }
 0x39a   :  { %v1007_v18 = vadd.f32 %v1006_v14, %v987_v3  ;;  %v1067_v3 = vrot.slane %v5543_v43, %v5554_v5  ;;  %v1071_v14 = vrot.slane %v5543_v43, %v5559_v9  ;;  %v1106_v43 = vld [vmem:[#allocation6 + $0x50] sm:$0xff] }
 0x39b   :  { %v1002_v21 = vrot.slane %v1001_v16, 2 }
 0x39c   :  { %v1008_v22 = vrot.slane %v1007_v18, 2  ;;  %2771 = vmatpush1.bf16.msra.mxu1 %v4388_v15 }
 0x39d   :  { %v1003_v24 = vadd.f32 %v1002_v21, %v1001_v16  ;;  %2772 = vmatprep.subr.bf16.mxu1 %v4397_v17  ;;  %v4444_v16 = vcombine.low %v1209_v49, %v1213_v52  ;;  %v4452_v21 = vcombine.low %v1217_v4, %v1221_v12 }
 0x39e   :  { %v1009_v26 = vadd.f32 %v1008_v22, %v1007_v18 }
 0x39f   :  { %v1004_v51 = vrot.slane %v1003_v24, 1 }
 0x3a0   :  { %v1010_v53 = vrot.slane %v1009_v26, 1  ;;  %2773 = vmatpush1.bf16.msra.mxu1 %v4396_v23  ;;  %v4461_v23 = vcombine.high %v1225_v19, %v1229_v20 }
 0x3a1   :  { %v1005_v29 = vadd.f32 %v1004_v51, %v1003_v24  ;;  %2774 = vmatprep.subr.bf16.mxu1 %v4405_v25 }
 0x3a2   :  { %v1011_v30 = vadd.f32 %v1010_v53, %v1009_v26  ;;  %v1110_v26 = vld [vmem:[#allocation6 + $0x70] sm:$0xff]  ;;  %v4460_v53 = vcombine.low %v1225_v19, %v1229_v20 }
 0x3a3   :  { %v1014_v33 = vmul.f32 0.125, %v1005_v29  ;;  %v1114_v29 = vld [vmem:[#allocation6 + $0x90] sm:$0xff] }
 0x3a4   :  { %v1015_v34 = vmul.f32 0.125, %v1011_v30  ;;  %2775 = vmatpush1.bf16.msra.mxu1 %v4404_v28  ;;  %v4469_v30 = vcombine.high %v1233_v27, %v1237_v50  ;;  %v1154_v20 = vld [vmem:[#allocation6 + $0x1d0] sm:$0xff] }
 0x3a5   :  { %v1018_v36 = vadd.f32 1e-05, %v1014_v33  ;;  %2776 = vmatprep.subr.bf16.mxu1 %v4413_v58  ;;  %v4343_v58 = vcombine.high %v1106_v43, %v1110_v26  ;;  %v1245_v33 = vld [vmem:[#allocation6 + $0x4a8] sm:$0xff] }
 0x3a6   :  { %v1019_v38 = vadd.f32 1e-05, %v1015_v34  ;;  %v4342_v34 = vcombine.low %v1106_v43, %v1110_v26  ;;  %v4476_v56 = vcombine.low %v1241_v32, %v1245_v33  ;;  %v1166_v26 = vld [vmem:[#allocation6 + $0x230] sm:$0xff] }
 0x3a7   :  { %5123 = vrsqrt.f32 %v1018_v36  ;;  %v4351_v36 = vcombine.high %v1114_v29, %v1118_v31 }
 0x3a8   :  { %5125 = vrsqrt.f32 %v1019_v38  ;;  %2777 = vmatpush1.bf16.msra.mxu1 %v4412_v35  ;;  %v4468_v35 = vcombine.low %v1233_v27, %v1237_v50  ;;  %v1122_v38 = vld [vmem:[#allocation6 + $0xd0] sm:$0xff]  ;;  %v1289_v27 = vld [vmem:[#allocation6 + $0x608] sm:$0xff] }
 0x3a9   :  { %2778 = vmatprep.subr.bf16.mxu1 %v4421_v37  ;;  %v4477_v37 = vcombine.high %v1241_v32, %v1245_v33  ;;  %v4359_v57 = vcombine.high %v1122_v38, %v1126_v39  ;;  %v4358_v49 = vcombine.low %v1122_v38, %v1126_v39  ;;  %v1293_v50 = vld [vmem:[#allocation6 + $0x628] sm:$0xff]  ;;  %v1174_v32 = vld [vmem:[#allocation6 + $0x270] sm:$0xff] }
 0x3aa   :  { %v1297_v33 = vld [vmem:[#allocation6 + $0x648] sm:$0xff]  ;;  %v1178_v39 = vld [vmem:[#allocation6 + $0x290] sm:$0xff] }
 0x3ac   :  { %2779 = vmatpush1.bf16.msra.mxu1 %v4420_v41  ;;  %v1253_v41 = vld [vmem:[#allocation6 + $0x4e8] sm:$0xff] }
 0x3ad   :  { %2780 = vmatprep.subr.bf16.mxu1 %v4429_v44  ;;  %v4350_v44 = vcombine.low %v1114_v29, %v1118_v31  ;;  %v4484_v52 = vcombine.low %v1249_v40, %v1253_v41  ;;  %v1170_v31 = vld [vmem:[#allocation6 + $0x250] sm:$0xff] }
 0x3b0   :  { %2781 = vmatpush1.bf16.msra.mxu1 %v4428_v47  ;;  %v1257_v47 = vld [vmem:[#allocation6 + $0x508] sm:$0xff] }
 0x3b1   :  { %v5124_v59 = vpop.eup %5123  ;;  %2782 = vmatprep.subr.bf16.mxu1 %v4437_v48  ;;  %v1261_v48 = vld [vmem:[#allocation6 + $0x528] sm:$0xff] }
 0x3b2   :  { %v5126_v1 = vpop.eup %5125  ;;  %v1026_v2 = vmul.f32 %v5124_v59, %v5573_v62  ;;  %v1138_v59 = vld [vmem:[#allocation6 + $0x150] sm:$0xff] }
 0x3b3   :  { %v1027_v13 = vmul.f32 %v5126_v1, %v5575_v63  ;;  %v1269_v1 = vld [vmem:[#allocation6 + $0x568] sm:$0xff] }
 0x3b4   :  { %v1052_v15 = vmul.f32 %v1041_v54, %v1026_v2  ;;  %2783 = vmatpush1.bf16.msra.mxu1 %v4436_v55  ;;  %v4367_v54 = vcombine.high %v1130_v45, %v1134_v46  ;;  %v4493_v55 = vcombine.high %v1257_v47, %v1261_v48  ;;  %v4366_v2 = vcombine.low %v1130_v45, %v1134_v46  ;;  %v1186_v46 = vld [vmem:[#allocation6 + $0x2d0] sm:$0xff] }
 0x3b5   :  { %v1053_v17 = vmul.f32 %v1045_v61, %v1027_v13  ;;  %2784 = vmatprep.subr.bf16.mxu1 %v4445_v0  ;;  %v1142_v61 = vld [vmem:[#allocation6 + $0x170] sm:$0xff]  ;;  %v1265_v0 = vld [vmem:[#allocation6 + $0x548] sm:$0xff] }
 0x3b6   :  { %v1078_v18 = vadd.f32 %v1067_v3, %v1052_v15  ;;  %v4492_v3 = vcombine.low %v1257_v47, %v1261_v48  ;;  %v4375_v4 = vcombine.high %v1138_v59, %v1142_v61  ;;  %v4501_v12 = vcombine.high %v1265_v0, %v1269_v1  ;;  %v1146_v13 = vld [vmem:[#allocation6 + $0x190] sm:$0xff]  ;;  %v1273_v15 = vld [vmem:[#allocation6 + $0x588] sm:$0xff] }
 0x3b7   :  { %v1079_v62 = vadd.f32 %v1071_v14, %v1053_v17  ;;  %v1150_v14 = vld [vmem:[#allocation6 + $0x1b0] sm:$0xff]  ;;  %v4374_v17 = vcombine.low %v1138_v59, %v1142_v61  ;;  %v1313_v48 = vld [vmem:[#allocation6 + $0x6c8] sm:$0xff] }
 0x3b8   :  { %2785 = vmatpush1.bf16.msra.mxu1 %v4444_v16  ;;  %vm1082_vm6 = vcmp.ge.f32.partialorder %v1078_v18, 0.0  ;;  %v1086_v22 = vmul.f32 0.2, %v1078_v18  ;;  %v1277_v16 = vld [vmem:[#allocation6 + $0x5a8] sm:$0xff]  ;;  %v1190_v47 = vld [vmem:[#allocation6 + $0x2f0] sm:$0xff] }
 0x3b9   :  { %2786 = vmatprep.subr.bf16.mxu1 %v4453_v42  ;;  %vm1083_vm7 = vcmp.ge.f32.partialorder %v1079_v62, 0.0  ;;  %v1087_v63 = vmul.f32 0.2, %v1079_v62  ;;  %v4500_v42 = vcombine.low %v1265_v0, %v1269_v1  ;;  %v4509_v19 = vcombine.high %v1273_v15, %v1277_v16  ;;  %v1194_v61 = vld [vmem:[#allocation6 + $0x310] sm:$0xff]  ;;  %v1321_v1 = vld [vmem:[#allocation6 + $0x708] sm:$0xff] }
 0x3ba   :  { %v1090_v24 = vsel %vm1082_vm6, %v1078_v18, %v1086_v22  ;;  %v4383_v18 = vcombine.high %v1146_v13, %v1150_v14  ;;  %v1285_v22 = vld [vmem:[#allocation6 + $0x5e8] sm:$0xff]  ;;  %v1198_v0 = vld [vmem:[#allocation6 + $0x330] sm:$0xff] }
 0x3bb   :  { %v1091_v25 = vsel %vm1083_vm7, %v1079_v62, %v1087_v63  ;;  %v5593_v28 = vpack.c.bf16 %v1090_v24, %v1090_v24  ;;  %v1158_v62 = vld [vmem:[#allocation6 + $0x1f0] sm:$0xff]  ;;  %v4382_v63 = vcombine.low %v1146_v13, %v1150_v14 }
 0x3bc   :  { %2787 = vmatpush1.bf16.msra.mxu1 %v4452_v21  ;;  %v5591_v51 = vpack.c.bf16 %v1091_v25, %v1091_v25  ;;  %v1281_v21 = vld [vmem:[#allocation6 + $0x5c8] sm:$0xff]  ;;  %v4391_v24 = vcombine.high %v1154_v20, %v1158_v62  ;;  %v1162_v25 = vld [vmem:[#allocation6 + $0x210] sm:$0xff] }
 0x3bd   :  { %2797 = vmatprep.subr.bf16.mxu1 %v4461_v23  ;;  %v4508_v23 = vcombine.low %v1273_v15, %v1277_v16  ;;  %v4517_v43 = vcombine.high %v1281_v21, %v1285_v22  ;;  %v4516_v29 = vcombine.low %v1281_v21, %v1285_v22  ;;  %v1202_v14 = vld [vmem:[#allocation6 + $0x350] sm:$0xff]  ;;  %v1329_v16 = vld [vmem:[#allocation6 + $0x748] sm:$0xff] }
 0x3be   :  { %2747 = vmatprep.mubr.bf16.mxu0 %v5591_v51  ;;  %v1206_v15 = vld [vmem:[#allocation6 + $0x370] sm:$0xff]  ;;  %v1337_v22 = vld [vmem:[#allocation6 + $0x788] sm:$0xff] }
 0x3bf   :  { %2748 = vmatmul.mubr.bf16.vlgmr.msra.gmra.mrb[4].mxu0 %v5593_v28  ;;  %2789 = vmatmul.mubr.bf16.vlgmr.msra.gmra.mrb[16].mxu1 %v5561_v11  ;;  %v1214_v21 = vld [vmem:[#allocation6 + $0x3b0] sm:$0xff] }
 0x3c0   :  { %2839 = vmatpush1.bf16.msra.mxu0 %v4334_v60  ;;  %2798 = vmatpush1.bf16.msra.mxu1 %v4460_v53  ;;  %v4485_v60 = vcombine.high %v1249_v40, %v1253_v41  ;;  %v4390_v53 = vcombine.low %v1154_v20, %v1158_v62  ;;  %v1182_v40 = vld [vmem:[#allocation6 + $0x2b0] sm:$0xff]  ;;  %v1305_v41 = vld [vmem:[#allocation6 + $0x688] sm:$0xff] }
 0x3c1   :  { %2829 = vmatprep.mubr.bf16.mxu1 %v5591_v51  ;;  %2870 = vmatprep.mubr.bf16.mxu0 %v5556_v6  ;;  %v1210_v62 = vld [vmem:[#allocation6 + $0x390] sm:$0xff] }
 0x3c2   :  { %2840 = vmatprep.subr.bf16.mxu0 %v4343_v58  ;;  %2799 = vmatprep.subr.bf16.mxu1 %v4469_v30  ;;  %v4399_v58 = vcombine.high %v1162_v25, %v1166_v26  ;;  %v4525_v30 = vcombine.high %v1289_v27, %v1293_v50 }
 0x3c4   :  { %2841 = vmatpush1.bf16.msra.mxu0 %v4342_v34  ;;  %2800 = vmatpush1.bf16.msra.mxu1 %v4468_v35  ;;  %v1301_v34 = vld [vmem:[#allocation6 + $0x668] sm:$0xff]  ;;  %v4398_v35 = vcombine.low %v1162_v25, %v1166_v26  ;;  %v1218_v26 = vld [vmem:[#allocation6 + $0x3d0] sm:$0xff] }
 0x3c5   :  { %2842 = vmatprep.subr.bf16.mxu0 %v4351_v36  ;;  %2801 = vmatprep.subr.bf16.mxu1 %v4477_v37  ;;  %v4524_v36 = vcombine.low %v1289_v27, %v1293_v50  ;;  %v4407_v37 = vcombine.high %v1170_v31, %v1174_v32  ;;  %v4533_v38 = vcombine.high %v1297_v33, %v1301_v34  ;;  %v1222_v27 = vld [vmem:[#allocation6 + $0x3f0] sm:$0xff]  ;;  %v1345_v50 = vld [vmem:[#allocation6 + $0x7c8] sm:$0xff] }
 0x3c8   :  { %2843 = vmatpush1.bf16.msra.mxu0 %v4350_v44  ;;  %2802 = vmatpush1.bf16.msra.mxu1 %v4476_v56  ;;  %v1309_v44 = vld [vmem:[#allocation6 + $0x6a8] sm:$0xff]  ;;  %v4406_v56 = vcombine.low %v1170_v31, %v1174_v32  ;;  %v1226_v32 = vld [vmem:[#allocation6 + $0x410] sm:$0xff] }
 0x3c9   :  { %2844 = vmatprep.subr.bf16.mxu0 %v4359_v57  ;;  %2803 = vmatprep.subr.bf16.mxu1 %v4485_v60  ;;  %v4532_v57 = vcombine.low %v1297_v33, %v1301_v34  ;;  %v4415_v60 = vcombine.high %v1178_v39, %v1182_v40  ;;  %v4541_v45 = vcombine.high %v1305_v41, %v1309_v44  ;;  %v1230_v33 = vld [vmem:[#allocation6 + $0x430] sm:$0xff]  ;;  %v1099_v34 = vld [vmem:[#allocation6 + $0x18] sm:$0xff] }
 0x3cc   :  { %2845 = vmatpush1.bf16.msra.mxu0 %v4358_v49  ;;  %2804 = vmatpush1.bf16.msra.mxu1 %v4484_v52  ;;  %v1317_v49 = vld [vmem:[#allocation6 + $0x6e8] sm:$0xff]  ;;  %v4414_v52 = vcombine.low %v1178_v39, %v1182_v40  ;;  %v1234_v40 = vld [vmem:[#allocation6 + $0x450] sm:$0xff] }
 0x3cd   :  { %2846 = vmatprep.subr.bf16.mxu0 %v4367_v54  ;;  %2805 = vmatprep.subr.bf16.mxu1 %v4493_v55  ;;  %v4540_v54 = vcombine.low %v1305_v41, %v1309_v44  ;;  %v4423_v55 = vcombine.high %v1186_v46, %v1190_v47  ;;  %v4549_v59 = vcombine.high %v1313_v48, %v1317_v49  ;;  %v1238_v41 = vld [vmem:[#allocation6 + $0x470] sm:$0xff]  ;;  %v1107_v44 = vld [vmem:[#allocation6 + $0x58] sm:$0xff] }
 0x3d0   :  { %2847 = vmatpush1.bf16.msra.mxu0 %v4366_v2  ;;  %2806 = vmatpush1.bf16.msra.mxu1 %v4492_v3  ;;  %v1325_v2 = vld [vmem:[#allocation6 + $0x728] sm:$0xff]  ;;  %v4422_v3 = vcombine.low %v1186_v46, %v1190_v47  ;;  %v1242_v47 = vld [vmem:[#allocation6 + $0x490] sm:$0xff] }
 0x3d1   :  { %2848 = vmatprep.subr.bf16.mxu0 %v4375_v4  ;;  %2807 = vmatprep.subr.bf16.mxu1 %v4501_v12  ;;  %v4548_v4 = vcombine.low %v1313_v48, %v1317_v49  ;;  %v4431_v12 = vcombine.high %v1194_v61, %v1198_v0  ;;  %v4557_v13 = vcombine.high %v1321_v1, %v1325_v2  ;;  %v1246_v48 = vld [vmem:[#allocation6 + $0x4b0] sm:$0xff]  ;;  %v1115_v49 = vld [vmem:[#allocation6 + $0x98] sm:$0xff] }
 0x3d4   :  { %2849 = vmatpush1.bf16.msra.mxu0 %v4374_v17  ;;  %2808 = vmatpush1.bf16.msra.mxu1 %v4500_v42  ;;  %v1333_v17 = vld [vmem:[#allocation6 + $0x768] sm:$0xff]  ;;  %v4430_v42 = vcombine.low %v1194_v61, %v1198_v0  ;;  %v1250_v0 = vld [vmem:[#allocation6 + $0x4d0] sm:$0xff] }
 0x3d5   :  { %2850 = vmatprep.subr.bf16.mxu0 %v4383_v18  ;;  %2809 = vmatprep.subr.bf16.mxu1 %v4509_v19  ;;  %v4556_v18 = vcombine.low %v1321_v1, %v1325_v2  ;;  %v4439_v19 = vcombine.high %v1202_v14, %v1206_v15  ;;  %v4565_v20 = vcombine.high %v1329_v16, %v1333_v17  ;;  %v1254_v1 = vld [vmem:[#allocation6 + $0x4f0] sm:$0xff]  ;;  %v1123_v2 = vld [vmem:[#allocation6 + $0xd8] sm:$0xff] }
 0x3d8   :  { %2851 = vmatpush1.bf16.msra.mxu0 %v4382_v63  ;;  %2810 = vmatpush1.bf16.msra.mxu1 %v4508_v23  ;;  %v1341_v63 = vld [vmem:[#allocation6 + $0x7a8] sm:$0xff]  ;;  %v4438_v23 = vcombine.low %v1202_v14, %v1206_v15  ;;  %v1258_v15 = vld [vmem:[#allocation6 + $0x510] sm:$0xff] }
 0x3d9   :  { %2852 = vmatprep.subr.bf16.mxu0 %v4391_v24  ;;  %2811 = vmatprep.subr.bf16.mxu1 %v4517_v43  ;;  %v4564_v24 = vcombine.low %v1329_v16, %v1333_v17  ;;  %v4447_v43 = vcombine.high %v1210_v62, %v1214_v21  ;;  %v4573_v25 = vcombine.high %v1337_v22, %v1341_v63  ;;  %v1262_v16 = vld [vmem:[#allocation6 + $0x530] sm:$0xff]  ;;  %v1135_v17 = vld [vmem:[#allocation6 + $0x138] sm:$0xff] }
 0x3dc   :  { %2853 = vmatpush1.bf16.msra.mxu0 %v4390_v53  ;;  %2812 = vmatpush1.bf16.msra.mxu1 %v4516_v29  ;;  %v1349_v53 = vld [vmem:[#allocation6 + $0x7e8] sm:$0xff]  ;;  %v4446_v29 = vcombine.low %v1210_v62, %v1214_v21  ;;  %v1266_v62 = vld [vmem:[#allocation6 + $0x550] sm:$0xff] }
 0x3dd   :  { %2854 = vmatprep.subr.bf16.mxu0 %v4399_v58  ;;  %2813 = vmatprep.subr.bf16.mxu1 %v4525_v30  ;;  %v4572_v58 = vcombine.low %v1337_v22, %v1341_v63  ;;  %v4455_v30 = vcombine.high %v1218_v26, %v1222_v27  ;;  %v4581_v31 = vcombine.high %v1345_v50, %v1349_v53  ;;  %v1270_v21 = vld [vmem:[#allocation6 + $0x570] sm:$0xff]  ;;  %v1139_v22 = vld [vmem:[#allocation6 + $0x158] sm:$0xff] }
 0x3de   :  { %v1143_v63 = vld [vmem:[#allocation6 + $0x178] sm:$0xff] }
 0x3e0   :  { %2855 = vmatpush1.bf16.msra.mxu0 %v4398_v35  ;;  %2814 = vmatpush1.bf16.msra.mxu1 %v4524_v36  ;;  %v1103_v35 = vld [vmem:[#allocation6 + $0x38] sm:$0xff]  ;;  %v4454_v36 = vcombine.low %v1218_v26, %v1222_v27  ;;  %v1274_v26 = vld [vmem:[#allocation6 + $0x590] sm:$0xff] }
 0x3e1   :  { %2856 = vmatprep.subr.bf16.mxu0 %v4407_v37  ;;  %2815 = vmatprep.subr.bf16.mxu1 %v4533_v38  ;;  %v4580_v37 = vcombine.low %v1345_v50, %v1349_v53  ;;  %v4463_v38 = vcombine.high %v1226_v32, %v1230_v33  ;;  %v4337_v39 = vcombine.high %v1099_v34, %v1103_v35  ;;  %v1278_v27 = vld [vmem:[#allocation6 + $0x5b0] sm:$0xff]  ;;  %v1147_v50 = vld [vmem:[#allocation6 + $0x198] sm:$0xff] }
 0x3e2   :  { %v1151_v53 = vld [vmem:[#allocation6 + $0x1b8] sm:$0xff] }
 0x3e4   :  { %2857 = vmatpush1.bf16.msra.mxu0 %v4406_v56  ;;  %2816 = vmatpush1.bf16.msra.mxu1 %v4532_v57  ;;  %v1111_v56 = vld [vmem:[#allocation6 + $0x78] sm:$0xff]  ;;  %v4462_v57 = vcombine.low %v1226_v32, %v1230_v33  ;;  %v1282_v32 = vld [vmem:[#allocation6 + $0x5d0] sm:$0xff] }
 0x3e5   :  { %2858 = vmatprep.subr.bf16.mxu0 %v4415_v60  ;;  %2817 = vmatprep.subr.bf16.mxu1 %v4541_v45  ;;  %v4336_v60 = vcombine.low %v1099_v34, %v1103_v35  ;;  %v4471_v45 = vcombine.high %v1234_v40, %v1238_v41  ;;  %v4345_v46 = vcombine.high %v1107_v44, %v1111_v56  ;;  %v1286_v33 = vld [vmem:[#allocation6 + $0x5f0] sm:$0xff]  ;;  %v1155_v34 = vld [vmem:[#allocation6 + $0x1d8] sm:$0xff] }
 0x3e6   :  { %v1159_v35 = vld [vmem:[#allocation6 + $0x1f8] sm:$0xff] }
 0x3e8   :  { %2859 = vmatpush1.bf16.msra.mxu0 %v4414_v52  ;;  %2818 = vmatpush1.bf16.msra.mxu1 %v4540_v54  ;;  %v1119_v52 = vld [vmem:[#allocation6 + $0xb8] sm:$0xff]  ;;  %v4470_v54 = vcombine.low %v1234_v40, %v1238_v41  ;;  %v1290_v40 = vld [vmem:[#allocation6 + $0x610] sm:$0xff] }
 0x3e9   :  { %2860 = vmatprep.subr.bf16.mxu0 %v4423_v55  ;;  %2819 = vmatprep.subr.bf16.mxu1 %v4549_v59  ;;  %v4344_v55 = vcombine.low %v1107_v44, %v1111_v56  ;;  %v4479_v59 = vcombine.high %v1242_v47, %v1246_v48  ;;  %v4353_v61 = vcombine.high %v1115_v49, %v1119_v52  ;;  %v1294_v41 = vld [vmem:[#allocation6 + $0x630] sm:$0xff]  ;;  %v1163_v44 = vld [vmem:[#allocation6 + $0x218] sm:$0xff] }
 0x3ea   :  { %v1167_v56 = vld [vmem:[#allocation6 + $0x238] sm:$0xff] }
 0x3ec   :  { %2861 = vmatpush1.bf16.msra.mxu0 %v4422_v3  ;;  %2820 = vmatpush1.bf16.msra.mxu1 %v4548_v4  ;;  %v1127_v3 = vld [vmem:[#allocation6 + $0xf8] sm:$0xff]  ;;  %v4478_v4 = vcombine.low %v1242_v47, %v1246_v48  ;;  %v1298_v47 = vld [vmem:[#allocation6 + $0x650] sm:$0xff] }
 0x3ed   :  { %2862 = vmatprep.subr.bf16.mxu0 %v4431_v12  ;;  %2821 = vmatprep.subr.bf16.mxu1 %v4557_v13  ;;  %v4352_v12 = vcombine.low %v1115_v49, %v1119_v52  ;;  %v4487_v13 = vcombine.high %v1250_v0, %v1254_v1  ;;  %v4361_v14 = vcombine.high %v1123_v2, %v1127_v3  ;;  %v1302_v48 = vld [vmem:[#allocation6 + $0x670] sm:$0xff]  ;;  %v1171_v49 = vld [vmem:[#allocation6 + $0x258] sm:$0xff] }
 0x3ee   :  { %v1175_v52 = vld [vmem:[#allocation6 + $0x278] sm:$0xff] }
 0x3f0   :  { %2863 = vmatpush1.bf16.msra.mxu0 %v4430_v42  ;;  %2822 = vmatpush1.bf16.msra.mxu1 %v4556_v18  ;;  %v4486_v42 = vcombine.low %v1250_v0, %v1254_v1  ;;  %v4360_v18 = vcombine.low %v1123_v2, %v1127_v3  ;;  %v1306_v0 = vld [vmem:[#allocation6 + $0x690] sm:$0xff]  ;;  %v1179_v2 = vld [vmem:[#allocation6 + $0x298] sm:$0xff] }
 0x3f1   :  { %2864 = vmatprep.subr.bf16.mxu0 %v4439_v19  ;;  %2823 = vmatprep.subr.bf16.mxu1 %v4565_v20  ;;  %v4495_v19 = vcombine.high %v1258_v15, %v1262_v16  ;;  %v1310_v1 = vld [vmem:[#allocation6 + $0x6b0] sm:$0xff]  ;;  %v1183_v3 = vld [vmem:[#allocation6 + $0x2b8] sm:$0xff] }
 0x3f4   :  { %2865 = vmatpush1.bf16.msra.mxu0 %v4438_v23  ;;  %2824 = vmatpush1.bf16.msra.mxu1 %v4564_v24  ;;  %v4494_v23 = vcombine.low %v1258_v15, %v1262_v16  ;;  %v1314_v15 = vld [vmem:[#allocation6 + $0x6d0] sm:$0xff] }
 0x3f5   :  { %2866 = vmatprep.subr.bf16.mxu0 %v4447_v43  ;;  %2825 = vmatprep.subr.bf16.mxu1 %v4573_v25  ;;  %v4503_v43 = vcombine.high %v1266_v62, %v1270_v21  ;;  %v4377_v25 = vcombine.high %v1139_v22, %v1143_v63  ;;  %v1318_v16 = vld [vmem:[#allocation6 + $0x6f0] sm:$0xff] }
 0x3f8   :  { %2867 = vmatpush1.bf16.msra.mxu0 %v4446_v29  ;;  %2826 = vmatpush1.bf16.msra.mxu1 %v4572_v58  ;;  %v4502_v29 = vcombine.low %v1266_v62, %v1270_v21  ;;  %v4376_v58 = vcombine.low %v1139_v22, %v1143_v63  ;;  %v1322_v62 = vld [vmem:[#allocation6 + $0x710] sm:$0xff]  ;;  %v1195_v22 = vld [vmem:[#allocation6 + $0x318] sm:$0xff] }
 0x3f9   :  { %2868 = vmatprep.subr.bf16.mxu0 %v4455_v30  ;;  %2827 = vmatprep.subr.bf16.mxu1 %v4581_v31  ;;  %v4511_v30 = vcombine.high %v1274_v26, %v1278_v27  ;;  %v4385_v31 = vcombine.high %v1147_v50, %v1151_v53  ;;  %v1326_v21 = vld [vmem:[#allocation6 + $0x730] sm:$0xff]  ;;  %v1199_v63 = vld [vmem:[#allocation6 + $0x338] sm:$0xff] }
 0x3fc   :  { %2869 = vmatpush1.bf16.msra.mxu0 %v4454_v36  ;;  %2828 = vmatpush1.bf16.msra.mxu1 %v4580_v37  ;;  %v4510_v36 = vcombine.low %v1274_v26, %v1278_v27  ;;  %v4384_v37 = vcombine.low %v1147_v50, %v1151_v53  ;;  %v1330_v26 = vld [vmem:[#allocation6 + $0x750] sm:$0xff]  ;;  %v1203_v50 = vld [vmem:[#allocation6 + $0x358] sm:$0xff] }
 0x3fd   :  { %2879 = vmatprep.subr.bf16.mxu0 %v4463_v38  ;;  %2920 = vmatprep.subr.bf16.mxu1 %v4337_v39  ;;  %v4519_v38 = vcombine.high %v1282_v32, %v1286_v33  ;;  %v4393_v39 = vcombine.high %v1155_v34, %v1159_v35  ;;  %v1334_v27 = vld [vmem:[#allocation6 + $0x770] sm:$0xff]  ;;  %v1207_v53 = vld [vmem:[#allocation6 + $0x378] sm:$0xff] }
 0x3ff   :  { %2871 = vmatmul.mubr.bf16.vlgmr.msra.gmra.mrb[8].mxu0 %v5561_v11  ;;  %2830 = vmatmul.mubr.bf16.vlgmr.msra.gmra.mrb[16].mxu1 %v5593_v28 }
 0x400   :  { %2880 = vmatpush1.bf16.msra.mxu0 %v4462_v57  ;;  %2911 = vmatprep.mubr.bf16.mxu0 %v5591_v51  ;;  %v4518_v57 = vcombine.low %v1282_v32, %v1286_v33  ;;  %v1338_v32 = vld [vmem:[#allocation6 + $0x790] sm:$0xff] }
 0x401   :  { %2921 = vmatpush1.bf16.msra.mxu1 %v4336_v60  ;;  %2952 = vmatprep.mubr.bf16.mxu1 %v5556_v6  ;;  %v1131_v6 = vld [vmem:[#allocation6 + $0x118] sm:$0xff]  ;;  %v4392_v60 = vcombine.low %v1155_v34, %v1159_v35  ;;  %v1342_v33 = vld [vmem:[#allocation6 + $0x7b0] sm:$0xff] }
 0x402   :  { %2881 = vmatprep.subr.bf16.mxu0 %v4471_v45  ;;  %2922 = vmatprep.subr.bf16.mxu1 %v4345_v46  ;;  %v4369_v20 = vcombine.high %v1131_v6, %v1135_v17  ;;  %v4368_v24 = vcombine.low %v1131_v6, %v1135_v17  ;;  %v4527_v45 = vcombine.high %v1290_v40, %v1294_v41  ;;  %v1187_v6 = vld [vmem:[#allocation6 + $0x2d8] sm:$0xff] }
 0x403   :  { %v4401_v46 = vcombine.high %v1163_v44, %v1167_v56  ;;  %v1191_v17 = vld [vmem:[#allocation6 + $0x2f8] sm:$0xff] }
 0x404   :  { %2882 = vmatpush1.bf16.msra.mxu0 %v4470_v54  ;;  %v4526_v54 = vcombine.low %v1290_v40, %v1294_v41  ;;  %v1211_v34 = vld [vmem:[#allocation6 + $0x398] sm:$0xff]  ;;  %v1346_v40 = vld [vmem:[#allocation6 + $0x7d0] sm:$0xff] }
 0x405   :  { %2923 = vmatpush1.bf16.msra.mxu1 %v4344_v55  ;;  %2883 = vmatprep.subr.bf16.mxu0 %v4479_v59  ;;  %v4400_v55 = vcombine.low %v1163_v44, %v1167_v56  ;;  %v4535_v59 = vcombine.high %v1298_v47, %v1302_v48  ;;  %v1215_v35 = vld [vmem:[#allocation6 + $0x3b8] sm:$0xff]  ;;  %v1350_v41 = vld [vmem:[#allocation6 + $0x7f0] sm:$0xff] }
 0x406   :  { %2924 = vmatprep.subr.bf16.mxu1 %v4353_v61  ;;  %v4409_v61 = vcombine.high %v1171_v49, %v1175_v52  ;;  %v1219_v44 = vld [vmem:[#allocation6 + $0x3d8] sm:$0xff] }
 0x407   :  { %v1223_v56 = vld [vmem:[#allocation6 + $0x3f8] sm:$0xff] }
 0x408   :  { %2884 = vmatpush1.bf16.msra.mxu0 %v4478_v4  ;;  %v4534_v4 = vcombine.low %v1298_v47, %v1302_v48  ;;  %v1227_v47 = vld [vmem:[#allocation6 + $0x418] sm:$0xff] }
 0x409   :  { %2925 = vmatpush1.bf16.msra.mxu1 %v4352_v12  ;;  %2885 = vmatprep.subr.bf16.mxu0 %v4487_v13  ;;  %v4408_v12 = vcombine.low %v1171_v49, %v1175_v52  ;;  %v4543_v13 = vcombine.high %v1306_v0, %v1310_v1  ;;  %v1231_v48 = vld [vmem:[#allocation6 + $0x438] sm:$0xff]  ;;  %v4582_v49 = vcombine.low %v1346_v40, %v1350_v41 }
 0x40a   :  { %2926 = vmatprep.subr.bf16.mxu1 %v4361_v14  ;;  %v4417_v14 = vcombine.high %v1179_v2, %v1183_v3  ;;  %v4456_v52 = vcombine.low %v1219_v44, %v1223_v56 }
 0x40c   :  { %2886 = vmatpush1.bf16.msra.mxu0 %v4486_v42  ;;  %v4542_v42 = vcombine.low %v1306_v0, %v1310_v1  ;;  %v4923_v0 = vld [vmem:[#allocation7] ss:$8 sps:$4 sm:$0xff]   ;;  %v4464_v1 = vcombine.low %v1227_v47, %v1231_v48 }
 0x40d   :  { %2927 = vmatpush1.bf16.msra.mxu1 %v4360_v18  ;;  %2887 = vmatprep.subr.bf16.mxu0 %v4495_v19  ;;  %v4416_v18 = vcombine.low %v1179_v2, %v1183_v3  ;;  %v4551_v19 = vcombine.high %v1314_v15, %v1318_v16  ;;  %v4928_v3 = vld [vmem:[#allocation7 + $0x14] ss:$8 sps:$4 sm:$0xff]  }
 0x40e   :  { %2928 = vmatprep.subr.bf16.mxu1 %v4369_v20  ;;  %v4425_v20 = vcombine.high %v1187_v6, %v1191_v17 }
 0x410   :  { %2888 = vmatpush1.bf16.msra.mxu0 %v4494_v23  ;;  %v4550_v23 = vcombine.low %v1314_v15, %v1318_v16  ;;  %v4931_v15 = vld [vmem:[#allocation7 + $0x24] ss:$8 sps:$4 sm:$0xff]  }
 0x411   :  { %2929 = vmatpush1.bf16.msra.mxu1 %v4368_v24  ;;  %2889 = vmatprep.subr.bf16.mxu0 %v4503_v43  ;;  %v4424_v24 = vcombine.low %v1187_v6, %v1191_v17  ;;  %v4559_v43 = vcombine.high %v1322_v62, %v1326_v21  ;;  %v1251_v6 = vld [vmem:[#allocation6 + $0x4d8] sm:$0xff] }
 0x412   :  { %2930 = vmatprep.subr.bf16.mxu1 %v4377_v25  ;;  %v4433_v25 = vcombine.high %v1195_v22, %v1199_v63  ;;  %v1255_v17 = vld [vmem:[#allocation6 + $0x4f8] sm:$0xff] }
 0x414   :  { %2890 = vmatpush1.bf16.msra.mxu0 %v4502_v29  ;;  %v4558_v29 = vcombine.low %v1322_v62, %v1326_v21  ;;  %v1263_v62 = vld [vmem:[#allocation6 + $0x538] sm:$0xff] }
 0x415   :  { %2931 = vmatpush1.bf16.msra.mxu1 %v4376_v58  ;;  %2891 = vmatprep.subr.bf16.mxu0 %v4511_v30  ;;  %v4432_v58 = vcombine.low %v1195_v22, %v1199_v63  ;;  %v4567_v30 = vcombine.high %v1330_v26, %v1334_v27  ;;  %v4932_v21 = vld [vmem:[#allocation7 + $0x30] ss:$8 sps:$4 sm:$0xff]   ;;  %v4937_v22 = vld [vmem:[#allocation7 + $0x44] ss:$8 sps:$4 sm:$0xff]  }
 0x416   :  { %2932 = vmatprep.subr.bf16.mxu1 %v4385_v31  ;;  %v4441_v31 = vcombine.high %v1203_v50, %v1207_v53 }
 0x418   :  { %2892 = vmatpush1.bf16.msra.mxu0 %v4510_v36  ;;  %v4566_v36 = vcombine.low %v1330_v26, %v1334_v27  ;;  %v4940_v26 = vld [vmem:[#allocation7 + $0x54] ss:$8 sps:$4 sm:$0xff]  }
 0x419   :  { %2933 = vmatpush1.bf16.msra.mxu1 %v4384_v37  ;;  %2893 = vmatprep.subr.bf16.mxu0 %v4519_v38  ;;  %v4440_v37 = vcombine.low %v1203_v50, %v1207_v53  ;;  %v4575_v38 = vcombine.high %v1338_v32, %v1342_v33  ;;  %v1275_v50 = vld [vmem:[#allocation6 + $0x598] sm:$0xff] }
 0x41a   :  { %2934 = vmatprep.subr.bf16.mxu1 %v4393_v39  ;;  %v4449_v39 = vcombine.high %v1211_v34, %v1215_v35  ;;  %v1279_v53 = vld [vmem:[#allocation6 + $0x5b8] sm:$0xff] }
 0x41c   :  { %2894 = vmatpush1.bf16.msra.mxu0 %v4518_v57  ;;  %v4574_v57 = vcombine.low %v1338_v32, %v1342_v33  ;;  %v4513_v32 = vcombine.high %v1275_v50, %v1279_v53 }
 0x41d   :  { %2935 = vmatpush1.bf16.msra.mxu1 %v4392_v60  ;;  %2895 = vmatprep.subr.bf16.mxu0 %v4527_v45  ;;  %v4448_v60 = vcombine.low %v1211_v34, %v1215_v35  ;;  %v4583_v45 = vcombine.high %v1346_v40, %v1350_v41  ;;  %v1283_v34 = vld [vmem:[#allocation6 + $0x5d8] sm:$0xff] }
 0x41e   :  { %2936 = vmatprep.subr.bf16.mxu1 %v4401_v46  ;;  %v4457_v46 = vcombine.high %v1219_v44, %v1223_v56  ;;  %v1287_v35 = vld [vmem:[#allocation6 + $0x5f8] sm:$0xff] }
 0x41f   :  { %v4946_v40 = vld [vmem:[#allocation7 + $0x74] ss:$8 sps:$4 sm:$0xff]   ;;  %v4521_v41 = vcombine.high %v1283_v34, %v1287_v35 }
 0x420   :  { %2896 = vmatpush1.bf16.msra.mxu0 %v4526_v54  ;;  %v4925_v54 = vld [vmem:[#allocation7 + $0x4] ss:$8 sps:$4 sm:$0xff]   ;;  %v1291_v44 = vld [vmem:[#allocation6 + $0x618] sm:$0xff] }
 0x421   :  { %2937 = vmatpush1.bf16.msra.mxu1 %v4400_v55  ;;  %2897 = vmatprep.subr.bf16.mxu0 %v4535_v59  ;;  %v4465_v55 = vcombine.high %v1227_v47, %v1231_v48  ;;  %v1235_v59 = vld [vmem:[#allocation6 + $0x458] sm:$0xff] }
 0x422   :  { %2938 = vmatprep.subr.bf16.mxu1 %v4409_v61  ;;  %v1239_v61 = vld [vmem:[#allocation6 + $0x478] sm:$0xff] }
 0x423   :  { %v4473_v2 = vcombine.high %v1235_v59, %v1239_v61  ;;  %v1295_v56 = vld [vmem:[#allocation6 + $0x638] sm:$0xff] }
 0x424   :  { %2898 = vmatpush1.bf16.msra.mxu0 %v4534_v4  ;;  %v1243_v4 = vld [vmem:[#allocation6 + $0x498] sm:$0xff] }
 0x425   :  { %2939 = vmatpush1.bf16.msra.mxu1 %v4408_v12  ;;  %2899 = vmatprep.subr.bf16.mxu0 %v4543_v13  ;;  %v1247_v12 = vld [vmem:[#allocation6 + $0x4b8] sm:$0xff] }
 0x426   :  { %2940 = vmatprep.subr.bf16.mxu1 %v4417_v14  ;;  %v4926_v13 = vld [vmem:[#allocation7 + $0x10] ss:$8 sps:$4 sm:$0xff]   ;;  %v4472_v14 = vcombine.low %v1235_v59, %v1239_v61  ;;  %v4481_v16 = vcombine.high %v1243_v4, %v1247_v12 }
 0x427   :  { %v1299_v47 = vld [vmem:[#allocation6 + $0x658] sm:$0xff] }
 0x428   :  { %2900 = vmatpush1.bf16.msra.mxu0 %v4542_v42  ;;  %v4929_v42 = vld [vmem:[#allocation7 + $0x20] ss:$8 sps:$4 sm:$0xff]   ;;  %v1303_v48 = vld [vmem:[#allocation6 + $0x678] sm:$0xff] }
 0x429   :  { %2941 = vmatpush1.bf16.msra.mxu1 %v4416_v18  ;;  %2901 = vmatprep.subr.bf16.mxu0 %v4551_v19  ;;  %v4480_v18 = vcombine.low %v1243_v4, %v1247_v12  ;;  %v4934_v19 = vld [vmem:[#allocation7 + $0x34] ss:$8 sps:$4 sm:$0xff]  }
 0x42a   :  { %2942 = vmatprep.subr.bf16.mxu1 %v4425_v20  ;;  %v1259_v20 = vld [vmem:[#allocation6 + $0x518] sm:$0xff] }
 0x42b   :  { %v4497_v63 = vcombine.high %v1259_v20, %v1263_v62  ;;  %v1307_v59 = vld [vmem:[#allocation6 + $0x698] sm:$0xff] }
 0x42c   :  { %2902 = vmatpush1.bf16.msra.mxu0 %v4550_v23  ;;  %v1267_v23 = vld [vmem:[#allocation6 + $0x558] sm:$0xff] }
 0x42d   :  { %2943 = vmatpush1.bf16.msra.mxu1 %v4424_v24  ;;  %2903 = vmatprep.subr.bf16.mxu0 %v4559_v43  ;;  %v1271_v24 = vld [vmem:[#allocation6 + $0x578] sm:$0xff]  ;;  %v4935_v43 = vld [vmem:[#allocation7 + $0x40] ss:$8 sps:$4 sm:$0xff]  }
 0x42e   :  { %2944 = vmatprep.subr.bf16.mxu1 %v4433_v25  ;;  %v4496_v25 = vcombine.low %v1259_v20, %v1263_v62  ;;  %v4505_v27 = vcombine.high %v1267_v23, %v1271_v24  ;;  %v1311_v61 = vld [vmem:[#allocation6 + $0x6b8] sm:$0xff] }
 0x42f   :  { %v1315_v4 = vld [vmem:[#allocation6 + $0x6d8] sm:$0xff] }
 0x430   :  { %2904 = vmatpush1.bf16.msra.mxu0 %v4558_v29  ;;  %v4938_v29 = vld [vmem:[#allocation7 + $0x50] ss:$8 sps:$4 sm:$0xff]  }
 0x431   :  { %2945 = vmatpush1.bf16.msra.mxu1 %v4432_v58  ;;  %2905 = vmatprep.subr.bf16.mxu0 %v4567_v30  ;;  %v4504_v58 = vcombine.low %v1267_v23, %v1271_v24  ;;  %v4943_v30 = vld [vmem:[#allocation7 + $0x64] ss:$8 sps:$4 sm:$0xff]   ;;  %v1319_v12 = vld [vmem:[#allocation6 + $0x6f8] sm:$0xff] }
 0x432   :  { %2946 = vmatprep.subr.bf16.mxu1 %v4441_v31  ;;  %v1331_v20 = vld [vmem:[#allocation6 + $0x758] sm:$0xff] }
 0x433   :  { %v1335_v62 = vld [vmem:[#allocation6 + $0x778] sm:$0xff] }
 0x434   :  { %2906 = vmatpush1.bf16.msra.mxu0 %v4566_v36  ;;  %v1339_v23 = vld [vmem:[#allocation6 + $0x798] sm:$0xff] }
 0x435   :  { %2947 = vmatpush1.bf16.msra.mxu1 %v4440_v37  ;;  %2907 = vmatprep.subr.bf16.mxu0 %v4575_v38  ;;  %v4941_v37 = vld [vmem:[#allocation7 + $0x60] ss:$8 sps:$4 sm:$0xff]   ;;  %v1343_v24 = vld [vmem:[#allocation6 + $0x7b8] sm:$0xff] }
 0x436   :  { %2948 = vmatprep.subr.bf16.mxu1 %v4449_v39  ;;  %v4512_v39 = vcombine.low %v1275_v50, %v1279_v53  ;;  %v1347_v50 = vld [vmem:[#allocation6 + $0x7d8] sm:$0xff] }
 0x437   :  { %v1351_v53 = vld [vmem:[#allocation6 + $0x7f8] sm:$0xff] }
 0x438   :  { %2908 = vmatpush1.bf16.msra.mxu0 %v4574_v57  ;;  %v4944_v57 = vld [vmem:[#allocation7 + $0x70] ss:$8 sps:$4 sm:$0xff]  }
 0x439   :  { %2949 = vmatpush1.bf16.msra.mxu1 %v4448_v60  ;;  %2909 = vmatprep.subr.bf16.mxu0 %v4583_v45  ;;  %v4520_v60 = vcombine.low %v1283_v34, %v1287_v35  ;;  %v4949_v45 = vld [vmem:[#allocation7 + $0x84] ss:$8 sps:$4 sm:$0xff]   ;;  %v4968_v34 = vld [vmem:[#allocation7 + $0xf0] ss:$8 sps:$4 sm:$0xff]   ;;  %v4584_v35 = vcombine.low %v1347_v50, %v1351_v53 }
 0x43a   :  { %2950 = vmatprep.subr.bf16.mxu1 %v4457_v46  ;;  %v4529_v46 = vcombine.high %v1291_v44, %v1295_v56 }
 0x43c   :  { %2910 = vmatpush1.bf16.msra.mxu0 %v4582_v49  ;;  %v4947_v49 = vld [vmem:[#allocation7 + $0x80] ss:$8 sps:$4 sm:$0xff]  }
 0x43d   :  { %2951 = vmatpush1.bf16.msra.mxu1 %v4456_v52  ;;  %4066 = vmatprep.subr.bf16.mxu0 %v4925_v54  ;;  %v4528_v52 = vcombine.low %v1291_v44, %v1295_v56  ;;  %v4952_v54 = vld [vmem:[#allocation7 + $0x94] ss:$8 sps:$4 sm:$0xff]  }
 0x43e   :  { %2961 = vmatprep.subr.bf16.mxu1 %v4465_v55  ;;  %v4537_v55 = vcombine.high %v1299_v47, %v1303_v48 }
 0x43f   :  { %2912 = vmatmul.mubr.bf16.vlgmr.msra.gmra.mrb[8].mxu0 %v5593_v28 }
 0x440   :  { %2953 = vmatmul.mubr.bf16.vlgmr.msra.gmra.mrb[20].mxu1 %v5561_v11  ;;  %4067 = vmatpush1.bf16.msra.mxu0 %v4923_v0  ;;  %v4489_v11 = vcombine.high %v1251_v6, %v1255_v17  ;;  %v4950_v0 = vld [vmem:[#allocation7 + $0x90] ss:$8 sps:$4 sm:$0xff]  }
 0x441   :  { %2962 = vmatpush1.bf16.msra.mxu1 %v4464_v1  ;;  %2993 = vmatprep.mubr.bf16.mxu1 %v5591_v51  ;;  %v4488_v51 = vcombine.low %v1251_v6, %v1255_v17  ;;  %v4536_v1 = vcombine.low %v1299_v47, %v1303_v48  ;;  %v1323_v6 = vld [vmem:[#allocation6 + $0x718] sm:$0xff] }
 0x442   :  { %2963 = vmatprep.subr.bf16.mxu1 %v4473_v2  ;;  %4068 = vmatprep.subr.bf16.mxu0 %v4928_v3  ;;  %v4955_v2 = vld [vmem:[#allocation7 + $0xa4] ss:$8 sps:$4 sm:$0xff]   ;;  %v4545_v3 = vcombine.high %v1307_v59, %v1311_v61  ;;  %v1327_v17 = vld [vmem:[#allocation6 + $0x738] sm:$0xff] }
 0x444   :  { %4069 = vmatpush1.bf16.msra.mxu0 %v4926_v13  ;;  %v4953_v13 = vld [vmem:[#allocation7 + $0xa0] ss:$8 sps:$4 sm:$0xff]  }
 0x445   :  { %2964 = vmatpush1.bf16.msra.mxu1 %v4472_v14  ;;  %4070 = vmatprep.subr.bf16.mxu0 %v4931_v15  ;;  %v4544_v14 = vcombine.low %v1307_v59, %v1311_v61  ;;  %v4958_v15 = vld [vmem:[#allocation7 + $0xb4] ss:$8 sps:$4 sm:$0xff]  }
 0x446   :  { %2965 = vmatprep.subr.bf16.mxu1 %v4481_v16  ;;  %v4553_v16 = vcombine.high %v1315_v4, %v1319_v12 }
 0x448   :  { %4071 = vmatpush1.bf16.msra.mxu0 %v4929_v42  ;;  %v4956_v42 = vld [vmem:[#allocation7 + $0xb0] ss:$8 sps:$4 sm:$0xff]  }
 0x449   :  { %2966 = vmatpush1.bf16.msra.mxu1 %v4480_v18  ;;  %4072 = vmatprep.subr.bf16.mxu0 %v4934_v19  ;;  %v4552_v18 = vcombine.low %v1315_v4, %v1319_v12  ;;  %v4961_v19 = vld [vmem:[#allocation7 + $0xc4] ss:$8 sps:$4 sm:$0xff]  }
 0x44a   :  { %2967 = vmatprep.subr.bf16.mxu1 %v4489_v11  ;;  %v4561_v11 = vcombine.high %v1323_v6, %v1327_v17 }
 0x44c   :  { %4073 = vmatpush1.bf16.msra.mxu0 %v4932_v21  ;;  %v4959_v21 = vld [vmem:[#allocation7 + $0xc0] ss:$8 sps:$4 sm:$0xff]  }
 0x44d   :  { %2968 = vmatpush1.bf16.msra.mxu1 %v4488_v51  ;;  %4074 = vmatprep.subr.bf16.mxu0 %v4937_v22  ;;  %v4560_v51 = vcombine.low %v1323_v6, %v1327_v17  ;;  %v4964_v22 = vld [vmem:[#allocation7 + $0xd4] ss:$8 sps:$4 sm:$0xff]  }
 0x44e   :  { %2969 = vmatprep.subr.bf16.mxu1 %v4497_v63  ;;  %v4569_v63 = vcombine.high %v1331_v20, %v1335_v62 }
 0x450   :  { %4075 = vmatpush1.bf16.msra.mxu0 %v4935_v43  ;;  %v4962_v43 = vld [vmem:[#allocation7 + $0xd0] ss:$8 sps:$4 sm:$0xff]  }
 0x451   :  { %2970 = vmatpush1.bf16.msra.mxu1 %v4496_v25  ;;  %4076 = vmatprep.subr.bf16.mxu0 %v4940_v26  ;;  %v4568_v25 = vcombine.low %v1331_v20, %v1335_v62  ;;  %v4967_v26 = vld [vmem:[#allocation7 + $0xe4] ss:$8 sps:$4 sm:$0xff]  }
 0x452   :  { %v5610_v31 = vpop.f32.mrb[12].mxu1  ;;  %2971 = vmatprep.subr.bf16.mxu1 %v4505_v27  ;;  %v4577_v27 = vcombine.high %v1339_v23, %v1343_v24 }
 0x453   :  { %v5612_v33 = vpop.f32.mrb[13].mxu1 }
 0x454   :  { %v2712_v36 = vpop.f32.mrb[14].mxu1  ;;  %4077 = vmatpush1.bf16.msra.mxu0 %v4938_v29  ;;  %v4965_v29 = vld [vmem:[#allocation7 + $0xe0] ss:$8 sps:$4 sm:$0xff]  }
 0x455   :  { %2972 = vmatpush1.bf16.msra.mxu1 %v4504_v58  ;;  %v2713_v38 = vpop.f32.mrb[15].mxu1  ;;  %4078 = vmatprep.subr.bf16.mxu0 %v4943_v30  ;;  %v4576_v58 = vcombine.low %v1339_v23, %v1343_v24  ;;  %v4970_v30 = vld [vmem:[#allocation7 + $0xf4] ss:$8 sps:$4 sm:$0xff]   ;;  %v4973_v36 = vld [vmem:[#allocation7 + $0x104] ss:$8 sps:$4 sm:$0xff]  }
 0x456   :  { %2973 = vmatprep.subr.bf16.mxu1 %v4513_v32  ;;  %v4585_v32 = vcombine.high %v1347_v50, %v1351_v53  ;;  %v5629_v24 = vld [vmem:[%s5713_s13] sm:$0xff] }
 0x458   :  { %4079 = vmatpush1.bf16.msra.mxu0 %v4941_v37  ;;  %v5618_v37 = vld [vmem:[%s5712_s12] sm:$0xff] }
 0x459   :  { %2974 = vmatpush1.bf16.msra.mxu1 %v4512_v39  ;;  %4080 = vmatprep.subr.bf16.mxu0 %v4946_v40  ;;  %v1357_v38 = vrot.slane %v5618_v37, %v5486_v8  ;;  %v1361_v39 = vrot.slane %v5618_v37, %v5492_v10 }
 0x45a   :  { %2975 = vmatprep.subr.bf16.mxu1 %v4521_v41 }
 0x45b   :  { %v2709_v40 = vadd.f32 %v5610_v31, %v1357_v38  ;;  %v2711_v41 = vadd.f32 %v5612_v33, %v1361_v39 }
 0x45c   :  { %4081 = vmatpush1.bf16.msra.mxu0 %v4944_v57 }
 0x45d   :  { %2976 = vmatpush1.bf16.msra.mxu1 %v4520_v60  ;;  %4082 = vmatprep.subr.bf16.mxu0 %v4949_v45 }
 0x45e   :  { %2977 = vmatprep.subr.bf16.mxu1 %v4529_v46 }
 0x460   :  { %4083 = vmatpush1.bf16.msra.mxu0 %v4947_v49 }
 0x461   :  { %2978 = vmatpush1.bf16.msra.mxu1 %v4528_v52  ;;  %4084 = vmatprep.subr.bf16.mxu0 %v4952_v54 }
 0x462   :  { %2979 = vmatprep.subr.bf16.mxu1 %v4537_v55 }
 0x464   :  { %4085 = vmatpush1.bf16.msra.mxu0 %v4950_v0 }
 0x465   :  { %2980 = vmatpush1.bf16.msra.mxu1 %v4536_v1  ;;  %4086 = vmatprep.subr.bf16.mxu0 %v4955_v2 }
 0x466   :  { %2981 = vmatprep.subr.bf16.mxu1 %v4545_v3 }
 0x468   :  { %4087 = vmatpush1.bf16.msra.mxu0 %v4953_v13 }
 0x469   :  { %2982 = vmatpush1.bf16.msra.mxu1 %v4544_v14  ;;  %4088 = vmatprep.subr.bf16.mxu0 %v4958_v15 }
 0x46a   :  { %2983 = vmatprep.subr.bf16.mxu1 %v4553_v16 }
 0x46c   :  { %4089 = vmatpush1.bf16.msra.mxu0 %v4956_v42 }
 0x46d   :  { %2984 = vmatpush1.bf16.msra.mxu1 %v4552_v18  ;;  %4090 = vmatprep.subr.bf16.mxu0 %v4961_v19 }
 0x46e   :  { %2985 = vmatprep.subr.bf16.mxu1 %v4561_v11 }
 0x470   :  { %4091 = vmatpush1.bf16.msra.mxu0 %v4959_v21 }
 0x471   :  { %2986 = vmatpush1.bf16.msra.mxu1 %v4560_v51  ;;  %4092 = vmatprep.subr.bf16.mxu0 %v4964_v22 }
 0x472   :  { %2987 = vmatprep.subr.bf16.mxu1 %v4569_v63 }
 0x474   :  { %4093 = vmatpush1.bf16.msra.mxu0 %v4962_v43  ;;  %v5634_v43 = vld [vmem:[%s5714_s14] sm:$0xff] }
 0x475   :  { %2988 = vmatpush1.bf16.msra.mxu1 %v4568_v25  ;;  %4094 = vmatprep.subr.bf16.mxu0 %v4967_v26  ;;  %v3159_v25 = vrot.slane %v5629_v24, %v5486_v8 }
 0x476   :  { %2989 = vmatprep.subr.bf16.mxu1 %v4577_v27  ;;  %v3163_v27 = vrot.slane %v5629_v24, %v5492_v10 }
 0x478   :  { %4095 = vmatpush1.bf16.msra.mxu0 %v4965_v29  ;;  %v3209_v29 = vrot.slane %v5634_v43, %v5486_v8 }
 0x479   :  { %2990 = vmatpush1.bf16.msra.mxu1 %v4576_v58  ;;  %4096 = vmatprep.subr.bf16.mxu0 %v4970_v30  ;;  %v3213_v30 = vrot.slane %v5634_v43, %v5492_v10 }
 0x47a   :  { %2991 = vmatprep.subr.bf16.mxu1 %v4585_v32 }
 0x47c   :  { %4097 = vmatpush1.bf16.msra.mxu0 %v4968_v34 }
 0x47d   :  { %2992 = vmatpush1.bf16.msra.mxu1 %v4584_v35  ;;  %4107 = vmatprep.subr.bf16.mxu0 %v4973_v36 }
 0x480   :  { %2994 = vmatmul.mubr.bf16.vlgmr.msra.gmra.mrb[20].mxu1 %v5593_v28 }
 0x492   :  { %v2749_v44 = vpop.f32.mrb[4].mxu0 }
 0x493   :  { %v2750_v56 = vadd.f32 %v2749_v44, %v2709_v40  ;;  %v2751_v57 = vpop.f32.mrb[5].mxu0 }
 0x494   :  { %v2752_v60 = vadd.f32 %v2751_v57, %v2711_v41  ;;  %v2753_v28 = vpop.f32.mrb[6].mxu0 }
 0x495   :  { %v3002_v45 = vrot.slane %v2750_v56, 4  ;;  %v2754_v46 = vpop.f32.mrb[7].mxu0  ;;  %v1365_v28 = vrot.slane %v5618_v37, %v5554_v5 }
 0x496   :  { %v3008_v47 = vrot.slane %v2752_v60, 4  ;;  %v1369_v46 = vrot.slane %v5618_v37, %v5559_v9 }
 0x497   :  { %v3003_v48 = vadd.f32 %v3002_v45, %v2750_v56  ;;  %v4974_v45 = vld [vmem:[#allocation7 + $0x110] ss:$8 sps:$4 sm:$0xff]  }
 0x498   :  { %v3009_v49 = vadd.f32 %v3008_v47, %v2752_v60  ;;  %v4979_v47 = vld [vmem:[#allocation7 + $0x124] ss:$8 sps:$4 sm:$0xff]  }
 0x499   :  { %v3004_v52 = vrot.slane %v3003_v48, 2 }
 0x49a   :  { %v3010_v54 = vrot.slane %v3009_v49, 2 }
 0x49b   :  { %v3005_v55 = vadd.f32 %v3004_v52, %v3003_v48 }
 0x49c   :  { %v3011_v59 = vadd.f32 %v3010_v54, %v3009_v49 }
 0x49d   :  { %v3006_v61 = vrot.slane %v3005_v55, 1 }
 0x49e   :  { %v3012_v0 = vrot.slane %v3011_v59, 1 }
 0x49f   :  { %v3007_v1 = vadd.f32 %v3006_v61, %v3005_v55 }
 0x4a0   :  { %v3013_v31 = vadd.f32 %v3012_v0, %v3011_v59  ;;  %v4977_v59 = vld [vmem:[#allocation7 + $0x120] ss:$8 sps:$4 sm:$0xff]  }
 0x4a1   :  { %v3050_v2 = vmul.f32 0.125, %v3007_v1  ;;  %v4982_v1 = vld [vmem:[#allocation7 + $0x134] ss:$8 sps:$4 sm:$0xff]  }
 0x4a2   :  { %v3051_v33 = vmul.f32 0.125, %v3013_v31 }
 0x4a3   :  { %v3058_v3 = vsub.f32 %v2750_v56, %v3050_v2  ;;  %v4971_v56 = vld [vmem:[#allocation7 + $0x100] ss:$8 sps:$4 sm:$0xff]  }
 0x4a4   :  { %v3059_v4 = vsub.f32 %v2752_v60, %v3051_v33  ;;  %v4976_v60 = vld [vmem:[#allocation7 + $0x114] ss:$8 sps:$4 sm:$0xff]  }
 0x4a5   :  { %v3066_v12 = vmul.f32 %v3058_v3, %v3058_v3 }
 0x4a6   :  { %v3067_v13 = vmul.f32 %v3059_v4, %v3059_v4 }
 0x4a7   :  { %v3074_v14 = vrot.slane %v3066_v12, 4 }
 0x4a8   :  { %v3080_v15 = vrot.slane %v3067_v13, 4 }
 0x4a9   :  { %v3075_v16 = vadd.f32 %v3074_v14, %v3066_v12  ;;  %v4985_v12 = vld [vmem:[#allocation7 + $0x144] ss:$8 sps:$4 sm:$0xff]  }
 0x4aa   :  { %v3081_v6 = vadd.f32 %v3080_v15, %v3067_v13 }
 0x4ab   :  { %v3076_v17 = vrot.slane %v3075_v16, 2 }
 0x4ac   :  { %v3082_v42 = vrot.slane %v3081_v6, 2 }
 0x4ad   :  { %v3077_v18 = vadd.f32 %v3076_v17, %v3075_v16  ;;  %v4983_v16 = vld [vmem:[#allocation7 + $0x140] ss:$8 sps:$4 sm:$0xff]   ;;  %v4988_v17 = vld [vmem:[#allocation7 + $0x154] ss:$8 sps:$4 sm:$0xff]  }
 0x4ae   :  { %v3083_v19 = vadd.f32 %v3082_v42, %v3081_v6 }
 0x4af   :  { %v3078_v11 = vrot.slane %v3077_v18, 1 }
 0x4b0   :  { %v3084_v20 = vrot.slane %v3083_v19, 1 }
 0x4b1   :  { %v3079_v62 = vadd.f32 %v3078_v11, %v3077_v18  ;;  %v4986_v11 = vld [vmem:[#allocation7 + $0x150] ss:$8 sps:$4 sm:$0xff]  }
 0x4b2   :  { %v3085_v21 = vadd.f32 %v3084_v20, %v3083_v19 }
 0x4b3   :  { %v3122_v51 = vmul.f32 0.125, %v3079_v62  ;;  %v4991_v62 = vld [vmem:[#allocation7 + $0x164] ss:$8 sps:$4 sm:$0xff]  }
 0x4b4   :  { %v3123_v22 = vmul.f32 0.125, %v3085_v21 }
 0x4b5   :  { %v3130_v63 = vadd.f32 1e-05, %v3122_v51 }
 0x4b6   :  { %v3131_v23 = vadd.f32 1e-05, %v3123_v22 }
 0x4b7   :  { %5127 = vrsqrt.f32 %v3130_v63  ;;  %v4989_v63 = vld [vmem:[#allocation7 + $0x160] ss:$8 sps:$4 sm:$0xff]  }
 0x4b8   :  { %5129 = vrsqrt.f32 %v3131_v23 }
 0x4c1   :  { %v5128_v26 = vpop.eup %5127 }
 0x4c2   :  { %v5130_v50 = vpop.eup %5129  ;;  %v3146_v53 = vmul.f32 %v5128_v26, %v3058_v3  ;;  %v4980_v3 = vld [vmem:[#allocation7 + $0x130] ss:$8 sps:$4 sm:$0xff]  }
 0x4c3   :  { %v3147_v58 = vmul.f32 %v5130_v50, %v3059_v4 }
 0x4c4   :  { %v3196_v32 = vmul.f32 %v3159_v25, %v3146_v53  ;;  %v4994_v25 = vld [vmem:[#allocation7 + $0x174] ss:$8 sps:$4 sm:$0xff]   ;;  %v4992_v53 = vld [vmem:[#allocation7 + $0x170] ss:$8 sps:$4 sm:$0xff]  }
 0x4c5   :  { %v3197_v34 = vmul.f32 %v3163_v27, %v3147_v58  ;;  %v4997_v58 = vld [vmem:[#allocation7 + $0x184] ss:$8 sps:$4 sm:$0xff]  }
 0x4c6   :  { %v3246_v35 = vadd.f32 %v3209_v29, %v3196_v32 }
 0x4c7   :  { %v3247_v36 = vadd.f32 %v3213_v30, %v3197_v34 }
 0x4c8   :  { %vm3254_vm8 = vcmp.ge.f32.partialorder %v3246_v35, 0.0  ;;  %v3262_v38 = vmul.f32 0.2, %v3246_v35 }
 0x4c9   :  { %vm3255_vm9 = vcmp.ge.f32.partialorder %v3247_v36, 0.0  ;;  %v3263_v39 = vmul.f32 0.2, %v3247_v36 }
 0x4ca   :  { %v3270_v40 = vsel %vm3254_vm8, %v3246_v35, %v3262_v38  ;;  %v4995_v35 = vld [vmem:[#allocation7 + $0x180] ss:$8 sps:$4 sm:$0xff]   ;;  %v5000_v38 = vld [vmem:[#allocation7 + $0x194] ss:$8 sps:$4 sm:$0xff]  }
 0x4cb   :  { %v3271_v41 = vsel %vm3255_vm9, %v3247_v36, %v3263_v39  ;;  %v3278_v57 = vpack.c.bf16 %v3270_v40, %v3270_v40 }
 0x4cc   :  { %v3279_v44 = vpack.c.bf16 %v3271_v41, %v3271_v41 }
 0x4ce   :  { %4098 = vmatprep.mubr.bf16.mxu0 %v3279_v44  ;;  %v4998_v44 = vld [vmem:[#allocation7 + $0x190] ss:$8 sps:$4 sm:$0xff]  }
 0x4cf   :  { %4099 = vmatmul.mubr.bf16.vlgmr.msra.gmra.mrb[12].mxu0 %v3278_v57  ;;  %v5003_v57 = vld [vmem:[#allocation7 + $0x1a4] ss:$8 sps:$4 sm:$0xff]  }
 0x4d0   :  { %4108 = vmatpush1.bf16.msra.mxu0 %v4971_v56 }
 0x4d1   :  { %4109 = vmatprep.subr.bf16.mxu0 %v4976_v60 }
 0x4d2   :  { %v2831_v48 = vpop.f32.mrb[16].mxu1 }
 0x4d3   :  { %v4747_v49 = vadd.f32 %v2831_v48, %v1365_v28  ;;  %v2833_v52 = vpop.f32.mrb[17].mxu1  ;;  %v5006_v48 = vld [vmem:[#allocation7 + $0x1b4] ss:$8 sps:$4 sm:$0xff]  }
 0x4d4   :  { %v4748_v54 = vadd.f32 %v2833_v52, %v1369_v46  ;;  %4110 = vmatpush1.bf16.msra.mxu0 %v4974_v45  ;;  %v2835_v55 = vpop.f32.mrb[18].mxu1  ;;  %v5001_v46 = vld [vmem:[#allocation7 + $0x1a0] ss:$8 sps:$4 sm:$0xff]   ;;  %v5004_v52 = vld [vmem:[#allocation7 + $0x1b0] ss:$8 sps:$4 sm:$0xff]  }
 0x4d5   :  { %v3014_v61 = vrot.slane %v4747_v49, 4  ;;  %v2836_v0 = vpop.f32.mrb[19].mxu1  ;;  %4111 = vmatprep.subr.bf16.mxu0 %v4979_v47  ;;  %v5007_v55 = vld [vmem:[#allocation7 + $0x1c0] ss:$8 sps:$4 sm:$0xff]  }
 0x4d6   :  { %v3020_v31 = vrot.slane %v4748_v54, 4  ;;  %v5010_v0 = vld [vmem:[#allocation7 + $0x1d0] ss:$8 sps:$4 sm:$0xff]  }
 0x4d7   :  { %v3015_v2 = vadd.f32 %v4747_v49, %v3014_v61  ;;  %v3167_v61 = vrot.slane %v5629_v24, %v5554_v5 }
 0x4d8   :  { %v3021_v33 = vadd.f32 %v4748_v54, %v3020_v31  ;;  %4112 = vmatpush1.bf16.msra.mxu0 %v4977_v59  ;;  %v5012_v59 = vld [vmem:[#allocation7 + $0x1d4] ss:$8 sps:$4 sm:$0xff]   ;;  %v3171_v31 = vrot.slane %v5629_v24, %v5559_v9 }
 0x4d9   :  { %v3016_v4 = vrot.slane %v3015_v2, 2  ;;  %4113 = vmatprep.subr.bf16.mxu0 %v4982_v1 }
 0x4da   :  { %v3022_v13 = vrot.slane %v3021_v33, 2 }
 0x4db   :  { %v3017_v14 = vadd.f32 %v3016_v4, %v3015_v2  ;;  %v5015_v2 = vld [vmem:[#allocation7 + $0x1e4] ss:$8 sps:$4 sm:$0xff]   ;;  %v3217_v4 = vrot.slane %v5634_v43, %v5554_v5 }
 0x4dc   :  { %v3023_v15 = vadd.f32 %v3022_v13, %v3021_v33  ;;  %4114 = vmatpush1.bf16.msra.mxu0 %v4980_v3  ;;  %v3221_v13 = vrot.slane %v5634_v43, %v5559_v9  ;;  %v5021_v5 = vld [vmem:[#allocation7 + $0x204] ss:$8 sps:$4 sm:$0xff]   ;;  %v5657_v9 = vsub.s32 4, %v5483_v7 }
 0x4dd   :  { %v3018_v6 = vrot.slane %v3017_v14, 1  ;;  %4115 = vmatprep.subr.bf16.mxu0 %v4985_v12 }
 0x4de   :  { %v3024_v42 = vrot.slane %v3023_v15, 1 }
 0x4df   :  { %v3019_v18 = vadd.f32 %v3018_v6, %v3017_v14  ;;  %v5018_v6 = vld [vmem:[#allocation7 + $0x1f4] ss:$8 sps:$4 sm:$0xff]  }
 0x4e0   :  { %v3025_v19 = vadd.f32 %v3024_v42, %v3023_v15  ;;  %4116 = vmatpush1.bf16.msra.mxu0 %v4983_v16  ;;  %v5013_v15 = vld [vmem:[#allocation7 + $0x1e0] ss:$8 sps:$4 sm:$0xff]  }
 0x4e1   :  { %v3052_v20 = vmul.f32 0.125, %v3019_v18  ;;  %4117 = vmatprep.subr.bf16.mxu0 %v4988_v17  ;;  %v5016_v18 = vld [vmem:[#allocation7 + $0x1f0] ss:$8 sps:$4 sm:$0xff]  }
 0x4e2   :  { %v3053_v21 = vmul.f32 0.125, %v3025_v19 }
 0x4e3   :  { %v3060_v51 = vsub.f32 %v4747_v49, %v3052_v20 }
 0x4e4   :  { %v3061_v22 = vsub.f32 %v4748_v54, %v3053_v21  ;;  %4118 = vmatpush1.bf16.msra.mxu0 %v4986_v11  ;;  %v5009_v54 = vld [vmem:[#allocation7 + $0x1c4] ss:$8 sps:$4 sm:$0xff]  }
 0x4e5   :  { %v3068_v23 = vmul.f32 %v3060_v51, %v3060_v51  ;;  %4119 = vmatprep.subr.bf16.mxu0 %v4991_v62 }
 0x4e6   :  { %v3069_v26 = vmul.f32 %v3061_v22, %v3061_v22 }
 0x4e7   :  { %v3086_v27 = vrot.slane %v3068_v23, 4 }
 0x4e8   :  { %v3092_v50 = vrot.slane %v3069_v26, 4  ;;  %4120 = vmatpush1.bf16.msra.mxu0 %v4989_v63 }
 0x4e9   :  { %v3087_v29 = vadd.f32 %v3086_v27, %v3068_v23  ;;  %4121 = vmatprep.subr.bf16.mxu0 %v4994_v25  ;;  %v5024_v23 = vld [vmem:[#allocation7 + $0x214] ss:$8 sps:$4 sm:$0xff]   ;;  %v1373_v25 = vrot.slane %v5618_v37, %v5657_v9  ;;  %v5022_v27 = vld [vmem:[#allocation7 + $0x210] ss:$8 sps:$4 sm:$0xff]  }
 0x4ea   :  { %v3093_v30 = vadd.f32 %v3092_v50, %v3069_v26  ;;  %v5027_v50 = vld [vmem:[#allocation7 + $0x224] ss:$8 sps:$4 sm:$0xff]  }
 0x4eb   :  { %v3088_v32 = vrot.slane %v3087_v29, 2 }
 0x4ec   :  { %v3094_v34 = vrot.slane %v3093_v30, 2  ;;  %4122 = vmatpush1.bf16.msra.mxu0 %v4992_v53 }
 0x4ed   :  { %v3089_v36 = vadd.f32 %v3088_v32, %v3087_v29  ;;  %4123 = vmatprep.subr.bf16.mxu0 %v4997_v58 }
 0x4ee   :  { %v3095_v39 = vadd.f32 %v3094_v34, %v3093_v30  ;;  %v5025_v34 = vld [vmem:[#allocation7 + $0x220] ss:$8 sps:$4 sm:$0xff]  }
 0x4ef   :  { %v3090_v40 = vrot.slane %v3089_v36, 1 }
 0x4f0   :  { %v3096_v41 = vrot.slane %v3095_v39, 1  ;;  %4124 = vmatpush1.bf16.msra.mxu0 %v4995_v35 }
 0x4f1   :  { %v3091_v56 = vadd.f32 %v3090_v40, %v3089_v36  ;;  %4125 = vmatprep.subr.bf16.mxu0 %v5000_v38  ;;  %v5030_v38 = vld [vmem:[#allocation7 + $0x234] ss:$8 sps:$4 sm:$0xff]  }
 0x4f2   :  { %v3097_v60 = vadd.f32 %v3096_v41, %v3095_v39 }
 0x4f3   :  { %v3124_v28 = vmul.f32 0.125, %v3091_v56 }
 0x4f4   :  { %v3125_v45 = vmul.f32 0.125, %v3097_v60  ;;  %4126 = vmatpush1.bf16.msra.mxu0 %v4998_v44  ;;  %v5028_v44 = vld [vmem:[#allocation7 + $0x230] ss:$8 sps:$4 sm:$0xff]  }
 0x4f5   :  { %v3132_v47 = vadd.f32 1e-05, %v3124_v28  ;;  %4127 = vmatprep.subr.bf16.mxu0 %v5003_v57  ;;  %v5033_v57 = vld [vmem:[#allocation7 + $0x244] ss:$8 sps:$4 sm:$0xff]  }
 0x4f6   :  { %v3133_v49 = vadd.f32 1e-05, %v3125_v45 }
 0x4f7   :  { %5131 = vrsqrt.f32 %v3132_v47 }
 0x4f8   :  { %5133 = vrsqrt.f32 %v3133_v49  ;;  %4128 = vmatpush1.bf16.msra.mxu0 %v5001_v46  ;;  %v5031_v46 = vld [vmem:[#allocation7 + $0x240] ss:$8 sps:$4 sm:$0xff]  }
 0x4f9   :  { %4129 = vmatprep.subr.bf16.mxu0 %v5006_v48  ;;  %v5036_v48 = vld [vmem:[#allocation7 + $0x254] ss:$8 sps:$4 sm:$0xff]  }
 0x4fc   :  { %4130 = vmatpush1.bf16.msra.mxu0 %v5004_v52 }
 0x4fd   :  { %4131 = vmatprep.subr.bf16.mxu0 %v5009_v54 }
 0x500   :  { %4132 = vmatpush1.bf16.msra.mxu0 %v5007_v55  ;;  %v5034_v55 = vld [vmem:[#allocation7 + $0x250] ss:$8 sps:$4 sm:$0xff]  }
 0x501   :  { %v5132_v1 = vpop.eup %5131  ;;  %4133 = vmatprep.subr.bf16.mxu0 %v5012_v59 }
 0x502   :  { %v5134_v33 = vpop.eup %5133  ;;  %v3148_v3 = vmul.f32 %v5132_v1, %v3060_v51  ;;  %v5019_v51 = vld [vmem:[#allocation7 + $0x200] ss:$8 sps:$4 sm:$0xff]  }
 0x503   :  { %v3149_v12 = vmul.f32 %v5134_v33, %v3061_v22  ;;  %v5660_v22 = vsub.s32 5, %v5483_v7 }
 0x504   :  { %v3198_v14 = vmul.f32 %v3167_v61, %v3148_v3  ;;  %4134 = vmatpush1.bf16.msra.mxu0 %v5010_v0  ;;  %v5039_v61 = vld [vmem:[#allocation7 + $0x264] ss:$8 sps:$4 sm:$0xff]   ;;  %v5042_v3 = vld [vmem:[#allocation7 + $0x274] ss:$8 sps:$4 sm:$0xff]  }
 0x505   :  { %v3199_v16 = vmul.f32 %v3171_v31, %v3149_v12  ;;  %4135 = vmatprep.subr.bf16.mxu0 %v5015_v2  ;;  %v1377_v26 = vrot.slane %v5618_v37, %v5660_v22  ;;  %v5037_v2 = vld [vmem:[#allocation7 + $0x260] ss:$8 sps:$4 sm:$0xff]  }
 0x506   :  { %v3248_v17 = vadd.f32 %v3217_v4, %v3198_v14  ;;  %v5040_v14 = vld [vmem:[#allocation7 + $0x270] ss:$8 sps:$4 sm:$0xff]  }
 0x507   :  { %v3249_v42 = vadd.f32 %v3221_v13, %v3199_v16  ;;  %v5045_v16 = vld [vmem:[#allocation7 + $0x284] ss:$8 sps:$4 sm:$0xff]  }
 0x508   :  { %4136 = vmatpush1.bf16.msra.mxu0 %v5013_v15  ;;  %vm3256_vm10 = vcmp.ge.f32.partialorder %v3248_v17, 0.0  ;;  %v3264_v19 = vmul.f32 0.2, %v3248_v17 }
 0x509   :  { %4137 = vmatprep.subr.bf16.mxu0 %v5018_v6  ;;  %vm3257_vm11 = vcmp.ge.f32.partialorder %v3249_v42, 0.0  ;;  %v3265_v11 = vmul.f32 0.2, %v3249_v42 }
 0x50a   :  { %v3272_v20 = vsel %vm3256_vm10, %v3248_v17, %v3264_v19 }
 0x50b   :  { %v3273_v62 = vsel %vm3257_vm11, %v3249_v42, %v3265_v11  ;;  %v3280_v63 = vpack.c.bf16 %v3272_v20, %v3272_v20  ;;  %v5048_v11 = vld [vmem:[#allocation7 + $0x294] ss:$8 sps:$4 sm:$0xff]  }
 0x50c   :  { %4138 = vmatpush1.bf16.msra.mxu0 %v5016_v18  ;;  %v3281_v21 = vpack.c.bf16 %v3273_v62, %v3273_v62  ;;  %v5043_v18 = vld [vmem:[#allocation7 + $0x280] ss:$8 sps:$4 sm:$0xff]  }
 0x50d   :  { %4148 = vmatprep.subr.bf16.mxu0 %v5021_v5 }
 0x50e   :  { %4139 = vmatprep.mubr.bf16.mxu0 %v3281_v21  ;;  %v5046_v21 = vld [vmem:[#allocation7 + $0x290] ss:$8 sps:$4 sm:$0xff]  }
 0x50f   :  { %4140 = vmatmul.mubr.bf16.vlgmr.msra.gmra.mrb[12].mxu0 %v3280_v63  ;;  %v5051_v63 = vld [vmem:[#allocation7 + $0x2a4] ss:$8 sps:$4 sm:$0xff]  }
 0x510   :  { %4149 = vmatpush1.bf16.msra.mxu0 %v5019_v51 }
 0x511   :  { %4150 = vmatprep.subr.bf16.mxu0 %v5024_v23 }
 0x512   :  { %v2913_v53 = vpop.f32.mrb[8].mxu0 }
 0x513   :  { %v4749_v29 = vadd.f32 %v2913_v53, %v1373_v25  ;;  %v2915_v58 = vpop.f32.mrb[9].mxu0  ;;  %v5054_v53 = vld [vmem:[#allocation7 + $0x2b4] ss:$8 sps:$4 sm:$0xff]  }
 0x514   :  { %v4750_v30 = vadd.f32 %v2915_v58, %v1377_v26  ;;  %v2917_v32 = vpop.f32.mrb[10].mxu0  ;;  %4151 = vmatpush1.bf16.msra.mxu0 %v5022_v27  ;;  %v5049_v27 = vld [vmem:[#allocation7 + $0x2a0] ss:$8 sps:$4 sm:$0xff]   ;;  %v5052_v58 = vld [vmem:[#allocation7 + $0x2b0] ss:$8 sps:$4 sm:$0xff]  }
 0x515   :  { %v3026_v35 = vrot.slane %v4749_v29, 4  ;;  %v2918_v36 = vpop.f32.mrb[11].mxu0  ;;  %4152 = vmatprep.subr.bf16.mxu0 %v5027_v50  ;;  %v5055_v32 = vld [vmem:[#allocation7 + $0x2c0] ss:$8 sps:$4 sm:$0xff]  }
 0x516   :  { %v3032_v39 = vrot.slane %v4750_v30, 4  ;;  %v5058_v36 = vld [vmem:[#allocation7 + $0x2d0] ss:$8 sps:$4 sm:$0xff]  }
 0x517   :  { %v3027_v40 = vadd.f32 %v4749_v29, %v3026_v35  ;;  %v3175_v35 = vrot.slane %v5629_v24, %v5657_v9 }
 0x518   :  { %v3033_v41 = vadd.f32 %v4750_v30, %v3032_v39  ;;  %4153 = vmatpush1.bf16.msra.mxu0 %v5025_v34  ;;  %v5060_v34 = vld [vmem:[#allocation7 + $0x2d4] ss:$8 sps:$4 sm:$0xff]   ;;  %v3179_v39 = vrot.slane %v5629_v24, %v5660_v22 }
 0x519   :  { %v3028_v56 = vrot.slane %v3027_v40, 2  ;;  %4154 = vmatprep.subr.bf16.mxu0 %v5030_v38 }
 0x51a   :  { %v3034_v60 = vrot.slane %v3033_v41, 2 }
 0x51b   :  { %v3029_v28 = vadd.f32 %v3028_v56, %v3027_v40  ;;  %v5063_v40 = vld [vmem:[#allocation7 + $0x2e4] ss:$8 sps:$4 sm:$0xff]   ;;  %v3225_v56 = vrot.slane %v5634_v43, %v5657_v9 }
 0x51c   :  { %v3035_v45 = vadd.f32 %v3034_v60, %v3033_v41  ;;  %4155 = vmatpush1.bf16.msra.mxu0 %v5028_v44  ;;  %v3229_v60 = vrot.slane %v5634_v43, %v5660_v22  ;;  %v5069_v9 = vld [vmem:[#allocation7 + $0x304] ss:$8 sps:$4 sm:$0xff]  }
 0x51d   :  { %v3030_v47 = vrot.slane %v3029_v28, 1  ;;  %4156 = vmatprep.subr.bf16.mxu0 %v5033_v57 }
 0x51e   :  { %v3036_v49 = vrot.slane %v3035_v45, 1 }
 0x51f   :  { %v3031_v52 = vadd.f32 %v3030_v47, %v3029_v28  ;;  %v5066_v47 = vld [vmem:[#allocation7 + $0x2f4] ss:$8 sps:$4 sm:$0xff]  }
 0x520   :  { %v3037_v54 = vadd.f32 %v3036_v49, %v3035_v45  ;;  %4157 = vmatpush1.bf16.msra.mxu0 %v5031_v46  ;;  %v5061_v45 = vld [vmem:[#allocation7 + $0x2e0] ss:$8 sps:$4 sm:$0xff]  }
 0x521   :  { %v3054_v59 = vmul.f32 0.125, %v3031_v52  ;;  %4158 = vmatprep.subr.bf16.mxu0 %v5036_v48  ;;  %v5064_v52 = vld [vmem:[#allocation7 + $0x2f0] ss:$8 sps:$4 sm:$0xff]  }
 0x522   :  { %v3055_v0 = vmul.f32 0.125, %v3037_v54 }
 0x523   :  { %v3062_v1 = vsub.f32 %v4749_v29, %v3054_v59 }
 0x524   :  { %v3063_v31 = vsub.f32 %v4750_v30, %v3055_v0  ;;  %4159 = vmatpush1.bf16.msra.mxu0 %v5034_v55  ;;  %v5057_v30 = vld [vmem:[#allocation7 + $0x2c4] ss:$8 sps:$4 sm:$0xff]   ;;  %v5067_v0 = vld [vmem:[#allocation7 + $0x300] ss:$8 sps:$4 sm:$0xff]  }
 0x525   :  { %v3070_v33 = vmul.f32 %v3062_v1, %v3062_v1  ;;  %4160 = vmatprep.subr.bf16.mxu0 %v5039_v61 }
 0x526   :  { %v3071_v4 = vmul.f32 %v3063_v31, %v3063_v31 }
 0x527   :  { %v3098_v12 = vrot.slane %v3070_v33, 4 }
 0x528   :  { %v3104_v13 = vrot.slane %v3071_v4, 4  ;;  %4161 = vmatpush1.bf16.msra.mxu0 %v5037_v2  ;;  %v5678_v2 = vsub.s32 7, %v5483_v7 }
 0x529   :  { %v3099_v15 = vadd.f32 %v3098_v12, %v3070_v33  ;;  %4162 = vmatprep.subr.bf16.mxu0 %v5042_v3  ;;  %v5072_v33 = vld [vmem:[#allocation7 + $0x314] ss:$8 sps:$4 sm:$0xff]  }
 0x52a   :  { %v3105_v6 = vadd.f32 %v3104_v13, %v3071_v4  ;;  %v5070_v4 = vld [vmem:[#allocation7 + $0x310] ss:$8 sps:$4 sm:$0xff]   ;;  %v1385_v12 = vrot.slane %v5618_v37, %v5678_v2  ;;  %v5075_v13 = vld [vmem:[#allocation7 + $0x324] ss:$8 sps:$4 sm:$0xff]  }
 0x52b   :  { %v3100_v17 = vrot.slane %v3099_v15, 2 }
 0x52c   :  { %v3106_v42 = vrot.slane %v3105_v6, 2  ;;  %4163 = vmatpush1.bf16.msra.mxu0 %v5040_v14 }
 0x52d   :  { %v3101_v19 = vadd.f32 %v3100_v17, %v3099_v15  ;;  %4164 = vmatprep.subr.bf16.mxu0 %v5045_v16 }
 0x52e   :  { %v3107_v5 = vadd.f32 %v3106_v42, %v3105_v6  ;;  %v5073_v6 = vld [vmem:[#allocation7 + $0x320] ss:$8 sps:$4 sm:$0xff]   ;;  %v5078_v42 = vld [vmem:[#allocation7 + $0x334] ss:$8 sps:$4 sm:$0xff]  }
 0x52f   :  { %v3102_v20 = vrot.slane %v3101_v19, 1 }
 0x530   :  { %v3108_v62 = vrot.slane %v3107_v5, 1  ;;  %4165 = vmatpush1.bf16.msra.mxu0 %v5043_v18 }
 0x531   :  { %v3103_v51 = vadd.f32 %v3102_v20, %v3101_v19  ;;  %4166 = vmatprep.subr.bf16.mxu0 %v5048_v11  ;;  %v5076_v20 = vld [vmem:[#allocation7 + $0x330] ss:$8 sps:$4 sm:$0xff]  }
 0x532   :  { %v3109_v23 = vadd.f32 %v3108_v62, %v3107_v5 }
 0x533   :  { %v3126_v25 = vmul.f32 0.125, %v3103_v51 }
 0x534   :  { %v3127_v26 = vmul.f32 0.125, %v3109_v23  ;;  %4167 = vmatpush1.bf16.msra.mxu0 %v5046_v21  ;;  %v5079_v23 = vld [vmem:[#allocation7 + $0x340] ss:$8 sps:$4 sm:$0xff]  }
 0x535   :  { %v3134_v50 = vadd.f32 1e-05, %v3126_v25  ;;  %4168 = vmatprep.subr.bf16.mxu0 %v5051_v63 }
 0x536   :  { %v3135_v29 = vadd.f32 1e-05, %v3127_v26  ;;  %v5084_v26 = vld [vmem:[#allocation7 + $0x354] ss:$8 sps:$4 sm:$0xff]  }
 0x537   :  { %5135 = vrsqrt.f32 %v3134_v50 }
 0x538   :  { %5137 = vrsqrt.f32 %v3135_v29  ;;  %4169 = vmatpush1.bf16.msra.mxu0 %v5049_v27  ;;  %v5082_v29 = vld [vmem:[#allocation7 + $0x350] ss:$8 sps:$4 sm:$0xff]  }
 0x539   :  { %4170 = vmatprep.subr.bf16.mxu0 %v5054_v53 }
 0x53c   :  { %4171 = vmatpush1.bf16.msra.mxu0 %v5052_v58 }
 0x53d   :  { %4172 = vmatprep.subr.bf16.mxu0 %v5057_v30  ;;  %v5087_v30 = vld [vmem:[#allocation7 + $0x364] ss:$8 sps:$4 sm:$0xff]  }
 0x540   :  { %4173 = vmatpush1.bf16.msra.mxu0 %v5055_v32 }
 0x541   :  { %v5136_v38 = vpop.eup %5135  ;;  %4174 = vmatprep.subr.bf16.mxu0 %v5060_v34 }
 0x542   :  { %v5138_v41 = vpop.eup %5137  ;;  %v3150_v44 = vmul.f32 %v5136_v38, %v3062_v1  ;;  %v5675_v1 = vsub.s32 6, %v5483_v7 }
 0x543   :  { %v3151_v57 = vmul.f32 %v5138_v41, %v3063_v31 }
 0x544   :  { %v3200_v28 = vmul.f32 %v3175_v35, %v3150_v44  ;;  %4175 = vmatpush1.bf16.msra.mxu0 %v5058_v36  ;;  %v1381_v3 = vrot.slane %v5618_v37, %v5675_v1  ;;  %v5081_v37 = vld [vmem:[#allocation7 + $0x344] ss:$8 sps:$4 sm:$0xff]   ;;  %v5085_v36 = vld [vmem:[#allocation7 + $0x360] ss:$8 sps:$4 sm:$0xff]  }
 0x545   :  { %v3201_v46 = vmul.f32 %v3179_v39, %v3151_v57  ;;  %4176 = vmatprep.subr.bf16.mxu0 %v5063_v40  ;;  %v5090_v39 = vld [vmem:[#allocation7 + $0x374] ss:$8 sps:$4 sm:$0xff]  }
 0x546   :  { %v3250_v48 = vadd.f32 %v3225_v56, %v3200_v28  ;;  %v5088_v56 = vld [vmem:[#allocation7 + $0x370] ss:$8 sps:$4 sm:$0xff]  }
 0x547   :  { %v3251_v49 = vadd.f32 %v3229_v60, %v3201_v46  ;;  %v5093_v60 = vld [vmem:[#allocation7 + $0x384] ss:$8 sps:$4 sm:$0xff]  }
 0x548   :  { %4177 = vmatpush1.bf16.msra.mxu0 %v5061_v45  ;;  %vm3258_vm12 = vcmp.ge.f32.partialorder %v3250_v48, 0.0  ;;  %v3266_v54 = vmul.f32 0.2, %v3250_v48 }
 0x549   :  { %4178 = vmatprep.subr.bf16.mxu0 %v5066_v47  ;;  %vm3259_vm13 = vcmp.ge.f32.partialorder %v3251_v49, 0.0  ;;  %v3267_v55 = vmul.f32 0.2, %v3251_v49  ;;  %v5091_v47 = vld [vmem:[#allocation7 + $0x380] ss:$8 sps:$4 sm:$0xff]  }
 0x54a   :  { %v3274_v59 = vsel %vm3258_vm12, %v3250_v48, %v3266_v54 }
 0x54b   :  { %v3275_v61 = vsel %vm3259_vm13, %v3251_v49, %v3267_v55  ;;  %v3282_v31 = vpack.c.bf16 %v3274_v59, %v3274_v59  ;;  %v5096_v49 = vld [vmem:[#allocation7 + $0x394] ss:$8 sps:$4 sm:$0xff]  }
 0x54c   :  { %4179 = vmatpush1.bf16.msra.mxu0 %v5064_v52  ;;  %v3283_v22 = vpack.c.bf16 %v3275_v61, %v3275_v61  ;;  %v5099_v61 = vld [vmem:[#allocation7 + $0x3a4] ss:$8 sps:$4 sm:$0xff]  }
 0x54d   :  { %4189 = vmatprep.subr.bf16.mxu0 %v5069_v9  ;;  %v5094_v9 = vld [vmem:[#allocation7 + $0x390] ss:$8 sps:$4 sm:$0xff]  }
 0x54e   :  { %4180 = vmatprep.mubr.bf16.mxu0 %v3283_v22 }
 0x54f   :  { %4181 = vmatmul.mubr.bf16.vlgmr.msra.gmra.mrb[12].mxu0 %v3282_v31 }
 0x550   :  { %4190 = vmatpush1.bf16.msra.mxu0 %v5067_v0 }
 0x551   :  { %4191 = vmatprep.subr.bf16.mxu0 %v5072_v33  ;;  %v5097_v33 = vld [vmem:[#allocation7 + $0x3a0] ss:$8 sps:$4 sm:$0xff]  }
 0x553   :  { %v2995_v14 = vpop.f32.mrb[20].mxu1 }
 0x554   :  { %v4751_v15 = vadd.f32 %v2995_v14, %v1381_v3  ;;  %v2997_v16 = vpop.f32.mrb[21].mxu1  ;;  %4192 = vmatpush1.bf16.msra.mxu0 %v5070_v4  ;;  %v5102_v4 = vld [vmem:[#allocation7 + $0x3b4] ss:$8 sps:$4 sm:$0xff]   ;;  %v5100_v14 = vld [vmem:[#allocation7 + $0x3b0] ss:$8 sps:$4 sm:$0xff]  }
 0x555   :  { %v4752_v7 = vadd.f32 %v2997_v16, %v1385_v12  ;;  %v2999_v17 = vpop.f32.mrb[22].mxu1  ;;  %4193 = vmatprep.subr.bf16.mxu0 %v5075_v13  ;;  %v5103_v16 = vld [vmem:[#allocation7 + $0x3c0] ss:$8 sps:$4 sm:$0xff]  }
 0x556   :  { %v3038_v18 = vrot.slane %v4751_v15, 4  ;;  %v3000_v19 = vpop.f32.mrb[23].mxu1  ;;  %v3183_v17 = vrot.slane %v5629_v24, %v5675_v1 }
 0x557   :  { %v3044_v11 = vrot.slane %v4752_v7, 4  ;;  %v3187_v19 = vrot.slane %v5629_v24, %v5678_v2 }
 0x558   :  { %v3039_v5 = vadd.f32 %v4751_v15, %v3038_v18  ;;  %4194 = vmatpush1.bf16.msra.mxu0 %v5073_v6  ;;  %v5108_v6 = vld [vmem:[#allocation7 + $0x3d4] ss:$8 sps:$4 sm:$0xff]  }
 0x559   :  { %v3045_v62 = vadd.f32 %v4752_v7, %v3044_v11  ;;  %4195 = vmatprep.subr.bf16.mxu0 %v5078_v42  ;;  %v5111_v42 = vld [vmem:[#allocation7 + $0x3e4] ss:$8 sps:$4 sm:$0xff]  }
 0x55a   :  { %v3040_v21 = vrot.slane %v3039_v5, 2 }
 0x55b   :  { %v3046_v51 = vrot.slane %v3045_v62, 2 }
 0x55c   :  { %v3041_v63 = vadd.f32 %v3040_v21, %v3039_v5  ;;  %4196 = vmatpush1.bf16.msra.mxu0 %v5076_v20  ;;  %v3233_v20 = vrot.slane %v5634_v43, %v5675_v1  ;;  %v3237_v21 = vrot.slane %v5634_v43, %v5678_v2  ;;  %v3414_v43 = vld [vmem:[#allocation9] sm:$0x3] }
 0x55d   :  { %v3047_v25 = vadd.f32 %v3046_v51, %v3045_v62  ;;  %4197 = vmatprep.subr.bf16.mxu0 %v5081_v37  ;;  %v5109_v37 = vld [vmem:[#allocation7 + $0x3e0] ss:$8 sps:$4 sm:$0xff]   ;;  %v3419_v2 = vrot.slane %v3414_v43, %v5486_v8 }
 0x55e   :  { %v3042_v27 = vrot.slane %v3041_v63, 1 }
 0x55f   :  { %v3048_v50 = vrot.slane %v3047_v25, 1 }
 0x560   :  { %v3043_v53 = vadd.f32 %v3042_v27, %v3041_v63  ;;  %4198 = vmatpush1.bf16.msra.mxu0 %v5079_v23  ;;  %v5114_v63 = vld [vmem:[#allocation7 + $0x3f4] ss:$8 sps:$4 sm:$0xff]  }
 0x561   :  { %v3049_v58 = vadd.f32 %v3048_v50, %v3047_v25  ;;  %4199 = vmatprep.subr.bf16.mxu0 %v5084_v26  ;;  %v5112_v26 = vld [vmem:[#allocation7 + $0x3f0] ss:$8 sps:$4 sm:$0xff]  }
 0x562   :  { %v3056_v32 = vmul.f32 0.125, %v3043_v53 }
 0x563   :  { %v3057_v34 = vmul.f32 0.125, %v3049_v58 }
 0x564   :  { %v3064_v35 = vsub.f32 %v4751_v15, %v3056_v32  ;;  %4200 = vmatpush1.bf16.msra.mxu0 %v5082_v29  ;;  %v5105_v15 = vld [vmem:[#allocation7 + $0x3c4] ss:$8 sps:$4 sm:$0xff]  }
 0x565   :  { %v3065_v38 = vsub.f32 %v4752_v7, %v3057_v34  ;;  %4201 = vmatprep.subr.bf16.mxu0 %v5087_v30  ;;  %v5106_v7 = vld [vmem:[#allocation7 + $0x3d0] ss:$8 sps:$4 sm:$0xff]   ;;  %v3423_v30 = vrot.slane %v3414_v43, %v5492_v10 }
 0x566   :  { %v3072_v40 = vmul.f32 %v3064_v35, %v3064_v35 }
 0x567   :  { %v3073_v41 = vmul.f32 %v3065_v38, %v3065_v38 }
 0x568   :  { %v3110_v44 = vrot.slane %v3072_v40, 4  ;;  %4202 = vmatpush1.bf16.msra.mxu0 %v5085_v36 }
 0x569   :  { %v3116_v57 = vrot.slane %v3073_v41, 4  ;;  %4203 = vmatprep.subr.bf16.mxu0 %v5090_v39 }
 0x56a   :  { %v3111_v28 = vadd.f32 %v3110_v44, %v3072_v40 }
 0x56b   :  { %v3117_v45 = vadd.f32 %v3116_v57, %v3073_v41 }
 0x56c   :  { %v3112_v46 = vrot.slane %v3111_v28, 2  ;;  %4204 = vmatpush1.bf16.msra.mxu0 %v5088_v56 }
 0x56d   :  { %v3118_v48 = vrot.slane %v3117_v45, 2  ;;  %4205 = vmatprep.subr.bf16.mxu0 %v5093_v60 }
 0x56e   :  { %v3113_v52 = vadd.f32 %v3112_v46, %v3111_v28 }
 0x56f   :  { %v3119_v54 = vadd.f32 %v3118_v48, %v3117_v45 }
 0x570   :  { %v3114_v55 = vrot.slane %v3113_v52, 1  ;;  %4206 = vmatpush1.bf16.msra.mxu0 %v5091_v47 }
 0x571   :  { %v3120_v59 = vrot.slane %v3119_v54, 1  ;;  %4207 = vmatprep.subr.bf16.mxu0 %v5096_v49 }
 0x572   :  { %v3115_v22 = vadd.f32 %v3114_v55, %v3113_v52 }
 0x573   :  { %v3121_v0 = vadd.f32 %v3120_v59, %v3119_v54 }
 0x574   :  { %v3128_v31 = vmul.f32 0.125, %v3115_v22  ;;  %4208 = vmatpush1.bf16.msra.mxu0 %v5094_v9 }
 0x575   :  { %v3129_v3 = vmul.f32 0.125, %v3121_v0  ;;  %4209 = vmatprep.subr.bf16.mxu0 %v5099_v61 }
 0x576   :  { %v3136_v12 = vadd.f32 1e-05, %v3128_v31 }
 0x577   :  { %v3137_v13 = vadd.f32 1e-05, %v3129_v3 }
 0x578   :  { %5139 = vrsqrt.f32 %v3136_v12  ;;  %4210 = vmatpush1.bf16.msra.mxu0 %v5097_v33 }
 0x579   :  { %5141 = vrsqrt.f32 %v3137_v13  ;;  %4211 = vmatprep.subr.bf16.mxu0 %v5102_v4 }
 0x57c   :  { %4212 = vmatpush1.bf16.msra.mxu0 %v5100_v14 }
 0x57d   :  { %4213 = vmatprep.subr.bf16.mxu0 %v5105_v15 }
 0x580   :  { %4214 = vmatpush1.bf16.msra.mxu0 %v5103_v16 }
 0x581   :  { %4215 = vmatprep.subr.bf16.mxu0 %v5108_v6 }
 0x582   :  { %v5140_v18 = vpop.eup %5139 }
 0x583   :  { %v5142_v11 = vpop.eup %5141  ;;  %v3152_v5 = vmul.f32 %v5140_v18, %v3064_v35 }
 0x584   :  { %v3153_v62 = vmul.f32 %v5142_v11, %v3065_v38  ;;  %4216 = vmatpush1.bf16.msra.mxu0 %v5106_v7 }
 0x585   :  { %v3202_v51 = vmul.f32 %v3183_v17, %v3152_v5  ;;  %4217 = vmatprep.subr.bf16.mxu0 %v5111_v42 }
 0x586   :  { %v3203_v23 = vmul.f32 %v3187_v19, %v3153_v62 }
 0x587   :  { %v3252_v25 = vadd.f32 %v3233_v20, %v3202_v51 }
 0x588   :  { %4218 = vmatpush1.bf16.msra.mxu0 %v5109_v37  ;;  %v3253_v27 = vadd.f32 %v3237_v21, %v3203_v23 }
 0x589   :  { %4219 = vmatprep.subr.bf16.mxu0 %v5114_v63  ;;  %vm3260_vm14 = vcmp.ge.f32.partialorder %v3252_v25, 0.0  ;;  %v3268_v24 = vmul.f32 0.2, %v3252_v25 }
 0x58a   :  { %vm3261_vm15 = vcmp.ge.f32.partialorder %v3253_v27, 0.0  ;;  %v3269_v50 = vmul.f32 0.2, %v3253_v27 }
 0x58b   :  { %v3276_v1 = vsel %vm3260_vm14, %v3252_v25, %v3268_v24 }
 0x58c   :  { %4220 = vmatpush1.bf16.msra.mxu0 %v5112_v26  ;;  %v3277_v53 = vsel %vm3261_vm15, %v3253_v27, %v3269_v50  ;;  %v3284_v58 = vpack.c.bf16 %v3276_v1, %v3276_v1 }
 0x58d   :  { %v3285_v29 = vpack.c.bf16 %v3277_v53, %v3277_v53 }
 0x58f   :  { %4221 = vmatprep.mubr.bf16.mxu0 %v3285_v29 }
 0x590   :  { %4222 = vmatmul.mubr.bf16.vlgmr.msra.gmra.mrb[12].mxu0 %v3284_v58 }
 0x663   :  { %v4223_v32 = vpop.f32.mrb[12].mxu0 }
 0x664   :  { %v4753_v34 = vadd.f32 %v4223_v32, %v3419_v2  ;;  %v4225_v35 = vpop.f32.mrb[13].mxu0 }
 0x665   :  { %v4754_v36 = vadd.f32 %v4225_v35, %v3423_v30  ;;  %v4227_v38 = vpop.f32.mrb[14].mxu0 }
 0x666   :  { %5143 = vtanh.f32 %v4753_v34  ;;  %v4228_v39 = vpop.f32.mrb[15].mxu0 }
 0x667   :  { %5145 = vtanh.f32 %v4754_v36 }
 0x670   :  { %v5144_v40 = vpop.eup %5143 }
 0x671   :  { %v5146_v41 = vpop.eup %5145  ;;  %4232 = vst [vmem:[%s5717_s17] sm:$0xff] %v5144_v40 }
 0x672   :  { %4233 = vst [vmem:[%s5717_s17 + $0x8] sm:$0xff] %v5146_v41 }
 0x673   :  { %4238 = vsyncpa [#allocation3], 1 }
 0x674   :  { %4239 = vsyncpa [#allocation5], 1 }
 0x675   :  { %4240 = vsyncpa [#allocation8], 1 }

</bundles_post_ra>
